<compile_context>
chip_gen: v7x
topology: tpu7x:2x2x1
jax: 0.10.0
libtpu: 0.0.40
codegen_flags: <defaults>
</compile_context>

<pallas_src>
import functools

import numpy as np
import jax
import jax.numpy as jnp
from jax.experimental import pallas as pl
from jax.experimental.pallas import tpu as pltpu


# --------------------------------------------------------------------------
# Fused kernel: conv1+ReLU -> pool1 -> conv2+ReLU -> pool2 -> fc1 -> fc2 -> fc3
# --------------------------------------------------------------------------
def _lenet5_fused_kernel(x_ref, m1_ref, b1_ref, c1_ref,
                         m2_ref, b2_ref, c2_ref,
                         fc1w_ref, fc1b_ref, fc2w_ref, fc2b_ref,
                         fc3w_ref, fc3b_ref,
                         out_ref, rows1_ref, p1_ref, rows2_ref, p2_ref, *, bt):
    f32 = jnp.float32

    # ---- conv1 (5x5 valid, Cin=1, Cout=6) + bias + ReLU ------------------
    # x_ref: (28*bt, 28)  rows = h*bt + b, cols = w
    # m1_ref[ki]: (28, 24*6) maps input row h+ki to output row h (all w_out, co)
    acc1 = jnp.dot(x_ref[pl.ds(0, 24 * bt), :], m1_ref[0],
                   preferred_element_type=f32)
    for ki in range(1, 5):
        acc1 += jnp.dot(x_ref[pl.ds(ki * bt, 24 * bt), :], m1_ref[ki],
                        preferred_element_type=f32)
    y1 = jnp.maximum(acc1 + b1_ref[...], 0.0)              # (24*bt, 144)

    # ---- max-pool1 2x2 -----------------------------------------------------
    # rows: elementwise max of sublane-aligned bt-row blocks (no matmul needed)
    for p in range(12):
        rows1_ref[pl.ds(p * bt, bt), :] = jnp.maximum(
            y1[(2 * p) * bt:(2 * p + 1) * bt, :],
            y1[(2 * p + 1) * bt:(2 * p + 2) * bt, :])
    rows1 = rows1_ref[...]                                  # (12*bt, 144)
    # cols: lane-group selection via tiny constant 0/1 matmuls (MXU slack)
    p1_ref[...] = jnp.maximum(
        jnp.dot(rows1, c1_ref[0], preferred_element_type=f32),
        jnp.dot(rows1, c1_ref[1], preferred_element_type=f32))  # (12*bt, 72)

    # ---- conv2 (5x5 valid, Cin=6, Cout=16) + bias + ReLU -----------------
    acc2 = jnp.dot(p1_ref[pl.ds(0, 8 * bt), :], m2_ref[0],
                   preferred_element_type=f32)
    for ki in range(1, 5):
        acc2 += jnp.dot(p1_ref[pl.ds(ki * bt, 8 * bt), :], m2_ref[ki],
                        preferred_element_type=f32)
    y2 = jnp.maximum(acc2 + b2_ref[...], 0.0)               # (8*bt, 128)

    # ---- max-pool2 2x2 -----------------------------------------------------
    for p in range(4):
        rows2_ref[pl.ds(p * bt, bt), :] = jnp.maximum(
            y2[(2 * p) * bt:(2 * p + 1) * bt, :],
            y2[(2 * p + 1) * bt:(2 * p + 2) * bt, :])
    rows2 = rows2_ref[...]                                  # (4*bt, 128)
    p2_ref[...] = jnp.maximum(
        jnp.dot(rows2, c2_ref[0], preferred_element_type=f32),
        jnp.dot(rows2, c2_ref[1], preferred_element_type=f32))  # (4*bt, 64)

    # ---- fc1 (PyTorch channel-first flatten folded into fc1w) + ReLU ------
    z = jnp.dot(p2_ref[pl.ds(0, bt), :], fc1w_ref[0],
                preferred_element_type=f32)
    for h in range(1, 4):
        z += jnp.dot(p2_ref[pl.ds(h * bt, bt), :], fc1w_ref[h],
                     preferred_element_type=f32)
    z = jnp.maximum(z + fc1b_ref[...], 0.0)                 # (bt, 128) padded

    # ---- fc2 + ReLU, fc3 (lane-padded to 128; sliced outside) -------------
    z = jnp.maximum(jnp.dot(z, fc2w_ref[...], preferred_element_type=f32)
                    + fc2b_ref[...], 0.0)
    out_ref[...] = (jnp.dot(z, fc3w_ref[...], preferred_element_type=f32)
                    + fc3b_ref[...]).astype(out_ref.dtype)


# --------------------------------------------------------------------------
# One-time weight preprocessing (hoisted out of the forward pass)
# --------------------------------------------------------------------------
def prepare_params(params):
    """Fold conv weights into shifted 'line' matrices, fold the channel-first
    flatten into fc1, pre-transpose fc weights and lane-pad fc layers to 128."""
    f32 = jnp.float32
    w1 = params['conv1_w'].astype(f32)          # (6, 1, 5, 5)
    w2 = params['conv2_w'].astype(f32)          # (16, 6, 5, 5)

    # T[kj, i, w] = 1 iff i == w + kj   (valid conv column alignment)
    t1 = np.zeros((5, 28, 24), np.float32)
    for kj in range(5):
        for w in range(24):
            t1[kj, w + kj, w] = 1.0
    t2 = np.zeros((5, 12, 8), np.float32)
    for kj in range(5):
        for w in range(8):
            t2[kj, w + kj, w] = 1.0

    # m1[ki][w_in, w_out*6 + co] = w1[co, 0, ki, w_in - w_out]
    m1 = jnp.einsum('jiw,ckj->kiwc', jnp.asarray(t1),
                    w1[:, 0, :, :]).reshape(5, 28, 24 * 6)
    # m2[ki][(w_in)*6 + ci, w_out*16 + co] = w2[co, ci, ki, w_in - w_out]
    m2 = jnp.einsum('jiw,ockj->kicwo', jnp.asarray(t2),
                    w2).reshape(5, 12 * 6, 8 * 16)

    b1 = jnp.tile(params['conv1_b'].astype(f32), 24).reshape(1, 24 * 6)
    b2 = jnp.tile(params['conv2_b'].astype(f32), 8).reshape(1, 8 * 16)

    # fc1: fold PyTorch's view(-1, 16*4*4) (c-major, then h, then w) into the
    # weight so the kernel can consume the (h, w*16+c) layout directly.
    fc1_w = params['fc1_w'].astype(f32)                     # (120, 256)
    n1 = fc1_w.shape[0]
    w1h = (fc1_w.reshape(n1, 16, 4, 4)                      # (n, c, h, w)
                .transpose(2, 3, 1, 0)                      # (h, w, c, n)
                .reshape(4, 64, n1))
    w1h = jnp.pad(w1h, ((0, 0), (0, 0), (0, 128 - n1)))
    b_fc1 = jnp.pad(params['fc1_b'].astype(f32), (0, 128 - n1)).reshape(1, 128)

    fc2_w = params['fc2_w'].astype(f32)                     # (84, 120)
    w2fc = jnp.pad(fc2_w.T, ((0, 128 - fc2_w.shape[1]),
                             (0, 128 - fc2_w.shape[0])))
    b_fc2 = jnp.pad(params['fc2_b'].astype(f32),
                    (0, 128 - fc2_w.shape[0])).reshape(1, 128)

    fc3_w = params['fc3_w'].astype(f32)                     # (num_classes, 84)
    nc = fc3_w.shape[0]
    w3fc = jnp.pad(fc3_w.T, ((0, 128 - fc3_w.shape[1]), (0, 128 - nc)))
    b_fc3 = jnp.pad(params['fc3_b'].astype(f32), (0, 128 - nc)).reshape(1, 128)

    return dict(m1=m1, b1=b1, m2=m2, b2=b2,
                fc1_w=w1h, fc1_b=b_fc1,
                fc2_w=w2fc, fc2_b=b_fc2,
                fc3_w=w3fc, fc3_b=b_fc3)


def _col_pool_selectors(size_in, channels):
    """Constant 0/1 matrices selecting even/odd pooling columns (lane groups)."""
    size_out = size_in // 2
    c = np.zeros((2, size_in * channels, size_out * channels), np.float32)
    for d in range(2):
        for q in range(size_out):
            for ch in range(channels):
                c[d, (2 * q + d) * channels + ch, q * channels + ch] = 1.0
    return jnp.asarray(c)


# --------------------------------------------------------------------------
# Public forward pass (one pallas_call)
# --------------------------------------------------------------------------
def lenet5_nas_forward(prepared, x_nchw, *, num_classes=10, batch_tile=None):
    B = x_nchw.shape[0]
    assert x_nchw.shape[1:] == (1, 28, 28), "expected (B, 1, 28, 28) input"
    if batch_tile is None:
        # Multiple of 8 (sublane alignment for the in-kernel row slices),
        # capped at 32 to bound per-step VMEM.
        bt = max(8, min(32, -(-B // 8) * 8))
    else:
        bt = batch_tile
    assert bt % 8 == 0, "batch_tile must be a multiple of 8 (sublane tile)"

    G = -(-B // bt)                 # number of batch tiles (grid steps)
    Bp = G * bt

    x = x_nchw.astype(jnp.float32).reshape(B, 28, 28)
    if Bp != B:
        x = jnp.pad(x, ((0, Bp - B), (0, 0), (0, 0)))
    # rows = g*(28*bt) + h*bt + b_local ; cols = w
    x2d = (x.reshape(G, bt, 28, 28)
             .transpose(0, 2, 1, 3)
             .reshape(G * 28 * bt, 28))

    c1 = _col_pool_selectors(24, 6)     # (2, 144, 72)
    c2 = _col_pool_selectors(8, 16)     # (2, 128, 64)

    operands = (x2d, prepared['m1'], prepared['b1'], c1,
                prepared['m2'], prepared['b2'], c2,
                prepared['fc1_w'], prepared['fc1_b'],
                prepared['fc2_w'], prepared['fc2_b'],
                prepared['fc3_w'], prepared['fc3_b'])

    def full_spec(arr):
        # Constant block index -> fetched into VMEM once, kept resident.
        return pl.BlockSpec(arr.shape, lambda *_: (0,) * arr.ndim)

    in_specs = [pl.BlockSpec((28 * bt, 28), lambda g: (g, 0))]
    in_specs += [full_spec(a) for a in operands[1:]]

    # Advisory cost estimate (matmul flops of one tile x number of tiles).
    mm = lambda M, K, N: 2 * M * K * N
    per_tile = (5 * mm(24 * bt, 28, 144)
                + 2 * mm(12 * bt, 144, 72)
                + 5 * mm(8 * bt, 72, 128)
                + 2 * mm(4 * bt, 128, 64)
                + 4 * mm(bt, 64, 128) + 2 * mm(bt, 128, 128))
    bytes_accessed = int(sum(int(a.size) * 4 for a in operands)) + Bp * 128 * 4

    out = pl.pallas_call(
        functools.partial(_lenet5_fused_kernel, bt=bt),
        out_shape=jax.ShapeDtypeStruct((Bp, 128), jnp.float32),
        grid=(G,),
        in_specs=in_specs,
        out_specs=pl.BlockSpec((bt, 128), lambda g: (g, 0)),
        scratch_shapes=[pltpu.VMEM((12 * bt, 144), jnp.float32),   # rows1
                        pltpu.VMEM((12 * bt, 72), jnp.float32),    # p1
                        pltpu.VMEM((4 * bt, 128), jnp.float32),    # rows2
                        pltpu.VMEM((4 * bt, 64), jnp.float32)],    # p2
        compiler_params=pltpu.CompilerParams(
            dimension_semantics=("parallel",)),
        cost_estimate=pl.CostEstimate(flops=int(per_tile * G),
                                      transcendentals=0,
                                      bytes_accessed=bytes_accessed),
    )(*operands)

    # Padded lane-dense logits -> slice to the real classes at the very end.
    return out[:B, :num_classes]


# --------------------------------------------------------------------------
# Deterministic parameter initialization (PyTorch-style shapes / fan-in bound)
# --------------------------------------------------------------------------
def init_params(key, num_classes=10):
    ks = jax.random.split(key, 10)

    def u(k, shape, fan_in):
        bound = 1.0 / jnp.sqrt(jnp.float32(fan_in))
        return jax.random.uniform(k, shape, jnp.float32, -bound, bound)

    return dict(
        conv1_w=u(ks[0], (6, 1, 5, 5), 1 * 5 * 5),
        conv1_b=u(ks[1], (6,), 1 * 5 * 5),
        conv2_w=u(ks[2], (16, 6, 5, 5), 6 * 5 * 5),
        conv2_b=u(ks[3], (16,), 6 * 5 * 5),
        fc1_w=u(ks[4], (120, 256), 256),   # PyTorch Linear: (out, in)
        fc1_b=u(ks[5], (120,), 256),
        fc2_w=u(ks[6], (84, 120), 120),
        fc2_b=u(ks[7], (84,), 120),
        fc3_w=u(ks[8], (num_classes, 84), 84),
        fc3_b=u(ks[9], (num_classes,), 84),
    )


# --------------------------------------------------------------------------
# Pure-JAX reference (mirrors the PyTorch forward) for validation
# --------------------------------------------------------------------------
def _reference_forward(params, x):
    dn = ('NCHW', 'OIHW', 'NCHW')
    y = jax.lax.conv_general_dilated(x, params['conv1_w'], (1, 1), 'VALID',
                                     dimension_numbers=dn)
    y = jax.nn.relu(y + params['conv1_b'][None, :, None, None])
    y = jax.lax.reduce_window(y, -jnp.inf, jax.lax.max,
                              (1, 1, 2, 2), (1, 1, 2, 2), 'VALID')
    y = jax.lax.conv_general_dilated(y, params['conv2_w'], (1, 1), 'VALID',
                                     dimension_numbers=dn)
    y = jax.nn.relu(y + params['conv2_b'][None, :, None, None])
    y = jax.lax.reduce_window(y, -jnp.inf, jax.lax.max,
                              (1, 1, 2, 2), (1, 1, 2, 2), 'VALID')
    y = y.reshape(y.shape[0], -1)                       # NCHW channel-first flatten
    y = jax.nn.relu(y @ params['fc1_w'].T + params['fc1_b'])
    y = jax.nn.relu(y @ params['fc2_w'].T + params['fc2_b'])
    return y @ params['fc3_w'].T + params['fc3_b']


if __name__ == "__main__":
    key = jax.random.PRNGKey(0)
    pkey, xkey = jax.random.split(key)
    params = init_params(pkey, num_classes=10)
    prepared = prepare_params(params)

    # MNIST-shaped input (fc1 = 16*4*4 requires 28x28 spatial), batch=2
    x = jax.random.normal(xkey, (2, 1, 28, 28), dtype=jnp.float32)

    fwd = jax.jit(functools.partial(lenet5_nas_forward, num_classes=10))
    logits = fwd(prepared, x)
    jax.block_until_ready(logits)
    assert logits.shape == (2, 10) and logits.dtype == jnp.float32

    ref = _reference_forward(params, x)
    np.testing.assert_allclose(np.asarray(logits), np.asarray(ref),
                               rtol=1e-4, atol=1e-4)
    print("KERNEL_OK")
</pallas_src>

<mosaic_0001>
module attributes {stable_mosaic.version = 11 : i64} {
  func.func @_lenet5_fused_kernel(%arg0: i32, %arg1: memref<224x28xf32, #tpu.memory_space<vmem>>, %arg2: memref<5x28x144xf32, #tpu.memory_space<vmem>>, %arg3: memref<1x144xf32, #tpu.memory_space<vmem>>, %arg4: memref<2x144x72xf32, #tpu.memory_space<vmem>>, %arg5: memref<5x72x128xf32, #tpu.memory_space<vmem>>, %arg6: memref<1x128xf32, #tpu.memory_space<vmem>>, %arg7: memref<2x128x64xf32, #tpu.memory_space<vmem>>, %arg8: memref<4x64x128xf32, #tpu.memory_space<vmem>>, %arg9: memref<1x128xf32, #tpu.memory_space<vmem>>, %arg10: memref<128x128xf32, #tpu.memory_space<vmem>>, %arg11: memref<1x128xf32, #tpu.memory_space<vmem>>, %arg12: memref<128x128xf32, #tpu.memory_space<vmem>>, %arg13: memref<1x128xf32, #tpu.memory_space<vmem>>, %arg14: memref<8x128xf32, #tpu.memory_space<vmem>>, %arg15: memref<96x144xf32, #tpu.memory_space<vmem>>, %arg16: memref<96x72xf32, #tpu.memory_space<vmem>>, %arg17: memref<32x128xf32, #tpu.memory_space<vmem>>, %arg18: memref<32x64xf32, #tpu.memory_space<vmem>>) attributes {dimension_semantics = [#tpu.dimension_semantics<parallel>], iteration_bounds = array<i64: 1>, scalar_prefetch = 0 : i64, scratch_operands = 4 : i64, tpu.core_type = #tpu.core_type<tc>, window_params = [{transform_indices = @transform_0, window_bounds = array<i64: 224, 28>}, {pipeline_mode = #tpu.pipeline_mode<synchronous>, transform_indices = @transform_1, window_bounds = array<i64: 5, 28, 144>}, {pipeline_mode = #tpu.pipeline_mode<synchronous>, transform_indices = @transform_2, window_bounds = array<i64: 1, 144>}, {pipeline_mode = #tpu.pipeline_mode<synchronous>, transform_indices = @transform_3, window_bounds = array<i64: 2, 144, 72>}, {pipeline_mode = #tpu.pipeline_mode<synchronous>, transform_indices = @transform_4, window_bounds = array<i64: 5, 72, 128>}, {pipeline_mode = #tpu.pipeline_mode<synchronous>, transform_indices = @transform_5, window_bounds = array<i64: 1, 128>}, {pipeline_mode = #tpu.pipeline_mode<synchronous>, transform_indices = @transform_6, window_bounds = array<i64: 2, 128, 64>}, {pipeline_mode = #tpu.pipeline_mode<synchronous>, transform_indices = @transform_7, window_bounds = array<i64: 4, 64, 128>}, {pipeline_mode = #tpu.pipeline_mode<synchronous>, transform_indices = @transform_8, window_bounds = array<i64: 1, 128>}, {pipeline_mode = #tpu.pipeline_mode<synchronous>, transform_indices = @transform_9, window_bounds = array<i64: 128, 128>}, {pipeline_mode = #tpu.pipeline_mode<synchronous>, transform_indices = @transform_10, window_bounds = array<i64: 1, 128>}, {pipeline_mode = #tpu.pipeline_mode<synchronous>, transform_indices = @transform_11, window_bounds = array<i64: 128, 128>}, {pipeline_mode = #tpu.pipeline_mode<synchronous>, transform_indices = @transform_12, window_bounds = array<i64: 1, 128>}, {transform_indices = @transform_13, window_bounds = array<i64: 8, 128>}]} {
    %c0 = arith.constant 0 : index
    %c0_0 = arith.constant 0 : index
    %0 = vector.load %arg1[%c0, %c0_0] : memref<224x28xf32, #tpu.memory_space<vmem>>, vector<192x28xf32>
    %c0_1 = arith.constant 0 : index
    %c0_2 = arith.constant 0 : index
    %c0_3 = arith.constant 0 : index
    %1 = vector.load %arg2[%c0_1, %c0_2, %c0_3] : memref<5x28x144xf32, #tpu.memory_space<vmem>>, vector<1x28x144xf32>
    %2 = vector.shape_cast %1 : vector<1x28x144xf32> to vector<28x144xf32>
    %cst = arith.constant dense<0.000000e+00> : vector<192x144xf32>
    %3 = tpu.matmul %0, %2, %cst {dimension_numbers = #tpu.dot_dimension_numbers<[1], [0], [0], [1], [0, 0, 1, 1], [], []>} : vector<192x28xf32>, vector<28x144xf32>, vector<192x144xf32> -> vector<192x144xf32>
    %c8 = arith.constant 8 : index
    %c0_4 = arith.constant 0 : index
    %4 = vector.load %arg1[%c8, %c0_4] : memref<224x28xf32, #tpu.memory_space<vmem>>, vector<192x28xf32>
    %c1 = arith.constant 1 : index
    %c0_5 = arith.constant 0 : index
    %c0_6 = arith.constant 0 : index
    %5 = vector.load %arg2[%c1, %c0_5, %c0_6] : memref<5x28x144xf32, #tpu.memory_space<vmem>>, vector<1x28x144xf32>
    %6 = vector.shape_cast %5 : vector<1x28x144xf32> to vector<28x144xf32>
    %cst_7 = arith.constant dense<0.000000e+00> : vector<192x144xf32>
    %7 = tpu.matmul %4, %6, %cst_7 {dimension_numbers = #tpu.dot_dimension_numbers<[1], [0], [0], [1], [0, 0, 1, 1], [], []>} : vector<192x28xf32>, vector<28x144xf32>, vector<192x144xf32> -> vector<192x144xf32>
    %8 = arith.addf %3, %7 : vector<192x144xf32>
    %c16 = arith.constant 16 : index
    %c0_8 = arith.constant 0 : index
    %9 = vector.load %arg1[%c16, %c0_8] : memref<224x28xf32, #tpu.memory_space<vmem>>, vector<192x28xf32>
    %c2 = arith.constant 2 : index
    %c0_9 = arith.constant 0 : index
    %c0_10 = arith.constant 0 : index
    %10 = vector.load %arg2[%c2, %c0_9, %c0_10] : memref<5x28x144xf32, #tpu.memory_space<vmem>>, vector<1x28x144xf32>
    %11 = vector.shape_cast %10 : vector<1x28x144xf32> to vector<28x144xf32>
    %cst_11 = arith.constant dense<0.000000e+00> : vector<192x144xf32>
    %12 = tpu.matmul %9, %11, %cst_11 {dimension_numbers = #tpu.dot_dimension_numbers<[1], [0], [0], [1], [0, 0, 1, 1], [], []>} : vector<192x28xf32>, vector<28x144xf32>, vector<192x144xf32> -> vector<192x144xf32>
    %13 = arith.addf %8, %12 : vector<192x144xf32>
    %c24 = arith.constant 24 : index
    %c0_12 = arith.constant 0 : index
    %14 = vector.load %arg1[%c24, %c0_12] : memref<224x28xf32, #tpu.memory_space<vmem>>, vector<192x28xf32>
    %c3 = arith.constant 3 : index
    %c0_13 = arith.constant 0 : index
    %c0_14 = arith.constant 0 : index
    %15 = vector.load %arg2[%c3, %c0_13, %c0_14] : memref<5x28x144xf32, #tpu.memory_space<vmem>>, vector<1x28x144xf32>
    %16 = vector.shape_cast %15 : vector<1x28x144xf32> to vector<28x144xf32>
    %cst_15 = arith.constant dense<0.000000e+00> : vector<192x144xf32>
    %17 = tpu.matmul %14, %16, %cst_15 {dimension_numbers = #tpu.dot_dimension_numbers<[1], [0], [0], [1], [0, 0, 1, 1], [], []>} : vector<192x28xf32>, vector<28x144xf32>, vector<192x144xf32> -> vector<192x144xf32>
    %18 = arith.addf %13, %17 : vector<192x144xf32>
    %c32 = arith.constant 32 : index
    %c0_16 = arith.constant 0 : index
    %19 = vector.load %arg1[%c32, %c0_16] : memref<224x28xf32, #tpu.memory_space<vmem>>, vector<192x28xf32>
    %c4 = arith.constant 4 : index
    %c0_17 = arith.constant 0 : index
    %c0_18 = arith.constant 0 : index
    %20 = vector.load %arg2[%c4, %c0_17, %c0_18] : memref<5x28x144xf32, #tpu.memory_space<vmem>>, vector<1x28x144xf32>
    %21 = vector.shape_cast %20 : vector<1x28x144xf32> to vector<28x144xf32>
    %cst_19 = arith.constant dense<0.000000e+00> : vector<192x144xf32>
    %22 = tpu.matmul %19, %21, %cst_19 {dimension_numbers = #tpu.dot_dimension_numbers<[1], [0], [0], [1], [0, 0, 1, 1], [], []>} : vector<192x28xf32>, vector<28x144xf32>, vector<192x144xf32> -> vector<192x144xf32>
    %23 = arith.addf %18, %22 : vector<192x144xf32>
    %c0_20 = arith.constant 0 : index
    %c0_21 = arith.constant 0 : index
    %24 = vector.load %arg3[%c0_20, %c0_21] : memref<1x144xf32, #tpu.memory_space<vmem>>, vector<1x144xf32>
    %25 = vector.broadcast %24 : vector<1x144xf32> to vector<192x144xf32>
    %26 = arith.addf %23, %25 : vector<192x144xf32>
    %cst_22 = arith.constant 0.000000e+00 : f32
    %27 = vector.broadcast %cst_22 : f32 to vector<192x144xf32>
    %28 = arith.maximumf %26, %27 : vector<192x144xf32>
    %29 = vector.extract_strided_slice %28 {offsets = [0, 0], sizes = [8, 144], strides = [1, 1]} : vector<192x144xf32> to vector<8x144xf32>
    %30 = vector.extract_strided_slice %28 {offsets = [8, 0], sizes = [8, 144], strides = [1, 1]} : vector<192x144xf32> to vector<8x144xf32>
    %31 = arith.maximumf %29, %30 : vector<8x144xf32>
    %c0_23 = arith.constant 0 : index
    %c0_24 = arith.constant 0 : index
    %32 = vector.load %arg15[%c0_23, %c0_24] : memref<96x144xf32, #tpu.memory_space<vmem>>, vector<8x144xf32>
    tpu.vector_store %arg15[%c0_23, %c0_24], %31 {strides = array<i32>} : memref<96x144xf32, #tpu.memory_space<vmem>>, vector<8x144xf32>,
    %33 = vector.extract_strided_slice %28 {offsets = [16, 0], sizes = [8, 144], strides = [1, 1]} : vector<192x144xf32> to vector<8x144xf32>
    %34 = vector.extract_strided_slice %28 {offsets = [24, 0], sizes = [8, 144], strides = [1, 1]} : vector<192x144xf32> to vector<8x144xf32>
    %35 = arith.maximumf %33, %34 : vector<8x144xf32>
    %c8_25 = arith.constant 8 : index
    %c0_26 = arith.constant 0 : index
    %36 = vector.load %arg15[%c8_25, %c0_26] : memref<96x144xf32, #tpu.memory_space<vmem>>, vector<8x144xf32>
    tpu.vector_store %arg15[%c8_25, %c0_26], %35 {strides = array<i32>} : memref<96x144xf32, #tpu.memory_space<vmem>>, vector<8x144xf32>,
    %37 = vector.extract_strided_slice %28 {offsets = [32, 0], sizes = [8, 144], strides = [1, 1]} : vector<192x144xf32> to vector<8x144xf32>
    %38 = vector.extract_strided_slice %28 {offsets = [40, 0], sizes = [8, 144], strides = [1, 1]} : vector<192x144xf32> to vector<8x144xf32>
    %39 = arith.maximumf %37, %38 : vector<8x144xf32>
    %c16_27 = arith.constant 16 : index
    %c0_28 = arith.constant 0 : index
    %40 = vector.load %arg15[%c16_27, %c0_28] : memref<96x144xf32, #tpu.memory_space<vmem>>, vector<8x144xf32>
    tpu.vector_store %arg15[%c16_27, %c0_28], %39 {strides = array<i32>} : memref<96x144xf32, #tpu.memory_space<vmem>>, vector<8x144xf32>,
    %41 = vector.extract_strided_slice %28 {offsets = [48, 0], sizes = [8, 144], strides = [1, 1]} : vector<192x144xf32> to vector<8x144xf32>
    %42 = vector.extract_strided_slice %28 {offsets = [56, 0], sizes = [8, 144], strides = [1, 1]} : vector<192x144xf32> to vector<8x144xf32>
    %43 = arith.maximumf %41, %42 : vector<8x144xf32>
    %c24_29 = arith.constant 24 : index
    %c0_30 = arith.constant 0 : index
    %44 = vector.load %arg15[%c24_29, %c0_30] : memref<96x144xf32, #tpu.memory_space<vmem>>, vector<8x144xf32>
    tpu.vector_store %arg15[%c24_29, %c0_30], %43 {strides = array<i32>} : memref<96x144xf32, #tpu.memory_space<vmem>>, vector<8x144xf32>,
    %45 = vector.extract_strided_slice %28 {offsets = [64, 0], sizes = [8, 144], strides = [1, 1]} : vector<192x144xf32> to vector<8x144xf32>
    %46 = vector.extract_strided_slice %28 {offsets = [72, 0], sizes = [8, 144], strides = [1, 1]} : vector<192x144xf32> to vector<8x144xf32>
    %47 = arith.maximumf %45, %46 : vector<8x144xf32>
    %c32_31 = arith.constant 32 : index
    %c0_32 = arith.constant 0 : index
    %48 = vector.load %arg15[%c32_31, %c0_32] : memref<96x144xf32, #tpu.memory_space<vmem>>, vector<8x144xf32>
    tpu.vector_store %arg15[%c32_31, %c0_32], %47 {strides = array<i32>} : memref<96x144xf32, #tpu.memory_space<vmem>>, vector<8x144xf32>,
    %49 = vector.extract_strided_slice %28 {offsets = [80, 0], sizes = [8, 144], strides = [1, 1]} : vector<192x144xf32> to vector<8x144xf32>
    %50 = vector.extract_strided_slice %28 {offsets = [88, 0], sizes = [8, 144], strides = [1, 1]} : vector<192x144xf32> to vector<8x144xf32>
    %51 = arith.maximumf %49, %50 : vector<8x144xf32>
    %c40 = arith.constant 40 : index
    %c0_33 = arith.constant 0 : index
    %52 = vector.load %arg15[%c40, %c0_33] : memref<96x144xf32, #tpu.memory_space<vmem>>, vector<8x144xf32>
    tpu.vector_store %arg15[%c40, %c0_33], %51 {strides = array<i32>} : memref<96x144xf32, #tpu.memory_space<vmem>>, vector<8x144xf32>,
    %53 = vector.extract_strided_slice %28 {offsets = [96, 0], sizes = [8, 144], strides = [1, 1]} : vector<192x144xf32> to vector<8x144xf32>
    %54 = vector.extract_strided_slice %28 {offsets = [104, 0], sizes = [8, 144], strides = [1, 1]} : vector<192x144xf32> to vector<8x144xf32>
    %55 = arith.maximumf %53, %54 : vector<8x144xf32>
    %c48 = arith.constant 48 : index
    %c0_34 = arith.constant 0 : index
    %56 = vector.load %arg15[%c48, %c0_34] : memref<96x144xf32, #tpu.memory_space<vmem>>, vector<8x144xf32>
    tpu.vector_store %arg15[%c48, %c0_34], %55 {strides = array<i32>} : memref<96x144xf32, #tpu.memory_space<vmem>>, vector<8x144xf32>,
    %57 = vector.extract_strided_slice %28 {offsets = [112, 0], sizes = [8, 144], strides = [1, 1]} : vector<192x144xf32> to vector<8x144xf32>
    %58 = vector.extract_strided_slice %28 {offsets = [120, 0], sizes = [8, 144], strides = [1, 1]} : vector<192x144xf32> to vector<8x144xf32>
    %59 = arith.maximumf %57, %58 : vector<8x144xf32>
    %c56 = arith.constant 56 : index
    %c0_35 = arith.constant 0 : index
    %60 = vector.load %arg15[%c56, %c0_35] : memref<96x144xf32, #tpu.memory_space<vmem>>, vector<8x144xf32>
    tpu.vector_store %arg15[%c56, %c0_35], %59 {strides = array<i32>} : memref<96x144xf32, #tpu.memory_space<vmem>>, vector<8x144xf32>,
    %61 = vector.extract_strided_slice %28 {offsets = [128, 0], sizes = [8, 144], strides = [1, 1]} : vector<192x144xf32> to vector<8x144xf32>
    %62 = vector.extract_strided_slice %28 {offsets = [136, 0], sizes = [8, 144], strides = [1, 1]} : vector<192x144xf32> to vector<8x144xf32>
    %63 = arith.maximumf %61, %62 : vector<8x144xf32>
    %c64 = arith.constant 64 : index
    %c0_36 = arith.constant 0 : index
    %64 = vector.load %arg15[%c64, %c0_36] : memref<96x144xf32, #tpu.memory_space<vmem>>, vector<8x144xf32>
    tpu.vector_store %arg15[%c64, %c0_36], %63 {strides = array<i32>} : memref<96x144xf32, #tpu.memory_space<vmem>>, vector<8x144xf32>,
    %65 = vector.extract_strided_slice %28 {offsets = [144, 0], sizes = [8, 144], strides = [1, 1]} : vector<192x144xf32> to vector<8x144xf32>
    %66 = vector.extract_strided_slice %28 {offsets = [152, 0], sizes = [8, 144], strides = [1, 1]} : vector<192x144xf32> to vector<8x144xf32>
    %67 = arith.maximumf %65, %66 : vector<8x144xf32>
    %c72 = arith.constant 72 : index
    %c0_37 = arith.constant 0 : index
    %68 = vector.load %arg15[%c72, %c0_37] : memref<96x144xf32, #tpu.memory_space<vmem>>, vector<8x144xf32>
    tpu.vector_store %arg15[%c72, %c0_37], %67 {strides = array<i32>} : memref<96x144xf32, #tpu.memory_space<vmem>>, vector<8x144xf32>,
    %69 = vector.extract_strided_slice %28 {offsets = [160, 0], sizes = [8, 144], strides = [1, 1]} : vector<192x144xf32> to vector<8x144xf32>
    %70 = vector.extract_strided_slice %28 {offsets = [168, 0], sizes = [8, 144], strides = [1, 1]} : vector<192x144xf32> to vector<8x144xf32>
    %71 = arith.maximumf %69, %70 : vector<8x144xf32>
    %c80 = arith.constant 80 : index
    %c0_38 = arith.constant 0 : index
    %72 = vector.load %arg15[%c80, %c0_38] : memref<96x144xf32, #tpu.memory_space<vmem>>, vector<8x144xf32>
    tpu.vector_store %arg15[%c80, %c0_38], %71 {strides = array<i32>} : memref<96x144xf32, #tpu.memory_space<vmem>>, vector<8x144xf32>,
    %73 = vector.extract_strided_slice %28 {offsets = [176, 0], sizes = [8, 144], strides = [1, 1]} : vector<192x144xf32> to vector<8x144xf32>
    %74 = vector.extract_strided_slice %28 {offsets = [184, 0], sizes = [8, 144], strides = [1, 1]} : vector<192x144xf32> to vector<8x144xf32>
    %75 = arith.maximumf %73, %74 : vector<8x144xf32>
    %c88 = arith.constant 88 : index
    %c0_39 = arith.constant 0 : index
    %76 = vector.load %arg15[%c88, %c0_39] : memref<96x144xf32, #tpu.memory_space<vmem>>, vector<8x144xf32>
    tpu.vector_store %arg15[%c88, %c0_39], %75 {strides = array<i32>} : memref<96x144xf32, #tpu.memory_space<vmem>>, vector<8x144xf32>,
    %c0_40 = arith.constant 0 : index
    %c0_41 = arith.constant 0 : index
    %77 = vector.load %arg15[%c0_40, %c0_41] : memref<96x144xf32, #tpu.memory_space<vmem>>, vector<96x144xf32>
    %c0_42 = arith.constant 0 : index
    %c0_43 = arith.constant 0 : index
    %c0_44 = arith.constant 0 : index
    %78 = vector.load %arg4[%c0_42, %c0_43, %c0_44] : memref<2x144x72xf32, #tpu.memory_space<vmem>>, vector<1x144x72xf32>
    %79 = vector.shape_cast %78 : vector<1x144x72xf32> to vector<144x72xf32>
    %cst_45 = arith.constant dense<0.000000e+00> : vector<96x72xf32>
    %80 = tpu.matmul %77, %79, %cst_45 {dimension_numbers = #tpu.dot_dimension_numbers<[1], [0], [0], [1], [0, 0, 1, 1], [], []>} : vector<96x144xf32>, vector<144x72xf32>, vector<96x72xf32> -> vector<96x72xf32>
    %c1_46 = arith.constant 1 : index
    %c0_47 = arith.constant 0 : index
    %c0_48 = arith.constant 0 : index
    %81 = vector.load %arg4[%c1_46, %c0_47, %c0_48] : memref<2x144x72xf32, #tpu.memory_space<vmem>>, vector<1x144x72xf32>
    %82 = vector.shape_cast %81 : vector<1x144x72xf32> to vector<144x72xf32>
    %cst_49 = arith.constant dense<0.000000e+00> : vector<96x72xf32>
    %83 = tpu.matmul %77, %82, %cst_49 {dimension_numbers = #tpu.dot_dimension_numbers<[1], [0], [0], [1], [0, 0, 1, 1], [], []>} : vector<96x144xf32>, vector<144x72xf32>, vector<96x72xf32> -> vector<96x72xf32>
    %84 = arith.maximumf %80, %83 : vector<96x72xf32>
    %c0_50 = arith.constant 0 : index
    %c0_51 = arith.constant 0 : index
    %85 = vector.load %arg16[%c0_50, %c0_51] : memref<96x72xf32, #tpu.memory_space<vmem>>, vector<96x72xf32>
    tpu.vector_store %arg16[%c0_50, %c0_51], %84 {strides = array<i32>} : memref<96x72xf32, #tpu.memory_space<vmem>>, vector<96x72xf32>,
    %c0_52 = arith.constant 0 : index
    %c0_53 = arith.constant 0 : index
    %86 = vector.load %arg16[%c0_52, %c0_53] : memref<96x72xf32, #tpu.memory_space<vmem>>, vector<64x72xf32>
    %c0_54 = arith.constant 0 : index
    %c0_55 = arith.constant 0 : index
    %c0_56 = arith.constant 0 : index
    %87 = vector.load %arg5[%c0_54, %c0_55, %c0_56] : memref<5x72x128xf32, #tpu.memory_space<vmem>>, vector<1x72x128xf32>
    %88 = vector.shape_cast %87 : vector<1x72x128xf32> to vector<72x128xf32>
    %cst_57 = arith.constant dense<0.000000e+00> : vector<64x128xf32>
    %89 = tpu.matmul %86, %88, %cst_57 {dimension_numbers = #tpu.dot_dimension_numbers<[1], [0], [0], [1], [0, 0, 1, 1], [], []>} : vector<64x72xf32>, vector<72x128xf32>, vector<64x128xf32> -> vector<64x128xf32>
    %c8_58 = arith.constant 8 : index
    %c0_59 = arith.constant 0 : index
    %90 = vector.load %arg16[%c8_58, %c0_59] : memref<96x72xf32, #tpu.memory_space<vmem>>, vector<64x72xf32>
    %c1_60 = arith.constant 1 : index
    %c0_61 = arith.constant 0 : index
    %c0_62 = arith.constant 0 : index
    %91 = vector.load %arg5[%c1_60, %c0_61, %c0_62] : memref<5x72x128xf32, #tpu.memory_space<vmem>>, vector<1x72x128xf32>
    %92 = vector.shape_cast %91 : vector<1x72x128xf32> to vector<72x128xf32>
    %cst_63 = arith.constant dense<0.000000e+00> : vector<64x128xf32>
    %93 = tpu.matmul %90, %92, %cst_63 {dimension_numbers = #tpu.dot_dimension_numbers<[1], [0], [0], [1], [0, 0, 1, 1], [], []>} : vector<64x72xf32>, vector<72x128xf32>, vector<64x128xf32> -> vector<64x128xf32>
    %94 = arith.addf %89, %93 : vector<64x128xf32>
    %c16_64 = arith.constant 16 : index
    %c0_65 = arith.constant 0 : index
    %95 = vector.load %arg16[%c16_64, %c0_65] : memref<96x72xf32, #tpu.memory_space<vmem>>, vector<64x72xf32>
    %c2_66 = arith.constant 2 : index
    %c0_67 = arith.constant 0 : index
    %c0_68 = arith.constant 0 : index
    %96 = vector.load %arg5[%c2_66, %c0_67, %c0_68] : memref<5x72x128xf32, #tpu.memory_space<vmem>>, vector<1x72x128xf32>
    %97 = vector.shape_cast %96 : vector<1x72x128xf32> to vector<72x128xf32>
    %cst_69 = arith.constant dense<0.000000e+00> : vector<64x128xf32>
    %98 = tpu.matmul %95, %97, %cst_69 {dimension_numbers = #tpu.dot_dimension_numbers<[1], [0], [0], [1], [0, 0, 1, 1], [], []>} : vector<64x72xf32>, vector<72x128xf32>, vector<64x128xf32> -> vector<64x128xf32>
    %99 = arith.addf %94, %98 : vector<64x128xf32>
    %c24_70 = arith.constant 24 : index
    %c0_71 = arith.constant 0 : index
    %100 = vector.load %arg16[%c24_70, %c0_71] : memref<96x72xf32, #tpu.memory_space<vmem>>, vector<64x72xf32>
    %c3_72 = arith.constant 3 : index
    %c0_73 = arith.constant 0 : index
    %c0_74 = arith.constant 0 : index
    %101 = vector.load %arg5[%c3_72, %c0_73, %c0_74] : memref<5x72x128xf32, #tpu.memory_space<vmem>>, vector<1x72x128xf32>
    %102 = vector.shape_cast %101 : vector<1x72x128xf32> to vector<72x128xf32>
    %cst_75 = arith.constant dense<0.000000e+00> : vector<64x128xf32>
    %103 = tpu.matmul %100, %102, %cst_75 {dimension_numbers = #tpu.dot_dimension_numbers<[1], [0], [0], [1], [0, 0, 1, 1], [], []>} : vector<64x72xf32>, vector<72x128xf32>, vector<64x128xf32> -> vector<64x128xf32>
    %104 = arith.addf %99, %103 : vector<64x128xf32>
    %c32_76 = arith.constant 32 : index
    %c0_77 = arith.constant 0 : index
    %105 = vector.load %arg16[%c32_76, %c0_77] : memref<96x72xf32, #tpu.memory_space<vmem>>, vector<64x72xf32>
    %c4_78 = arith.constant 4 : index
    %c0_79 = arith.constant 0 : index
    %c0_80 = arith.constant 0 : index
    %106 = vector.load %arg5[%c4_78, %c0_79, %c0_80] : memref<5x72x128xf32, #tpu.memory_space<vmem>>, vector<1x72x128xf32>
    %107 = vector.shape_cast %106 : vector<1x72x128xf32> to vector<72x128xf32>
    %cst_81 = arith.constant dense<0.000000e+00> : vector<64x128xf32>
    %108 = tpu.matmul %105, %107, %cst_81 {dimension_numbers = #tpu.dot_dimension_numbers<[1], [0], [0], [1], [0, 0, 1, 1], [], []>} : vector<64x72xf32>, vector<72x128xf32>, vector<64x128xf32> -> vector<64x128xf32>
    %109 = arith.addf %104, %108 : vector<64x128xf32>
    %c0_82 = arith.constant 0 : index
    %c0_83 = arith.constant 0 : index
    %110 = vector.load %arg6[%c0_82, %c0_83] : memref<1x128xf32, #tpu.memory_space<vmem>>, vector<1x128xf32>
    %111 = vector.broadcast %110 : vector<1x128xf32> to vector<64x128xf32>
    %112 = arith.addf %109, %111 : vector<64x128xf32>
    %cst_84 = arith.constant 0.000000e+00 : f32
    %113 = vector.broadcast %cst_84 : f32 to vector<64x128xf32>
    %114 = arith.maximumf %112, %113 : vector<64x128xf32>
    %115 = vector.extract_strided_slice %114 {offsets = [0, 0], sizes = [8, 128], strides = [1, 1]} : vector<64x128xf32> to vector<8x128xf32>
    %116 = vector.extract_strided_slice %114 {offsets = [8, 0], sizes = [8, 128], strides = [1, 1]} : vector<64x128xf32> to vector<8x128xf32>
    %117 = arith.maximumf %115, %116 : vector<8x128xf32>
    %c0_85 = arith.constant 0 : index
    %c0_86 = arith.constant 0 : index
    %118 = vector.load %arg17[%c0_85, %c0_86] : memref<32x128xf32, #tpu.memory_space<vmem>>, vector<8x128xf32>
    tpu.vector_store %arg17[%c0_85, %c0_86], %117 {strides = array<i32>} : memref<32x128xf32, #tpu.memory_space<vmem>>, vector<8x128xf32>,
    %119 = vector.extract_strided_slice %114 {offsets = [16, 0], sizes = [8, 128], strides = [1, 1]} : vector<64x128xf32> to vector<8x128xf32>
    %120 = vector.extract_strided_slice %114 {offsets = [24, 0], sizes = [8, 128], strides = [1, 1]} : vector<64x128xf32> to vector<8x128xf32>
    %121 = arith.maximumf %119, %120 : vector<8x128xf32>
    %c8_87 = arith.constant 8 : index
    %c0_88 = arith.constant 0 : index
    %122 = vector.load %arg17[%c8_87, %c0_88] : memref<32x128xf32, #tpu.memory_space<vmem>>, vector<8x128xf32>
    tpu.vector_store %arg17[%c8_87, %c0_88], %121 {strides = array<i32>} : memref<32x128xf32, #tpu.memory_space<vmem>>, vector<8x128xf32>,
    %123 = vector.extract_strided_slice %114 {offsets = [32, 0], sizes = [8, 128], strides = [1, 1]} : vector<64x128xf32> to vector<8x128xf32>
    %124 = vector.extract_strided_slice %114 {offsets = [40, 0], sizes = [8, 128], strides = [1, 1]} : vector<64x128xf32> to vector<8x128xf32>
    %125 = arith.maximumf %123, %124 : vector<8x128xf32>
    %c16_89 = arith.constant 16 : index
    %c0_90 = arith.constant 0 : index
    %126 = vector.load %arg17[%c16_89, %c0_90] : memref<32x128xf32, #tpu.memory_space<vmem>>, vector<8x128xf32>
    tpu.vector_store %arg17[%c16_89, %c0_90], %125 {strides = array<i32>} : memref<32x128xf32, #tpu.memory_space<vmem>>, vector<8x128xf32>,
    %127 = vector.extract_strided_slice %114 {offsets = [48, 0], sizes = [8, 128], strides = [1, 1]} : vector<64x128xf32> to vector<8x128xf32>
    %128 = vector.extract_strided_slice %114 {offsets = [56, 0], sizes = [8, 128], strides = [1, 1]} : vector<64x128xf32> to vector<8x128xf32>
    %129 = arith.maximumf %127, %128 : vector<8x128xf32>
    %c24_91 = arith.constant 24 : index
    %c0_92 = arith.constant 0 : index
    %130 = vector.load %arg17[%c24_91, %c0_92] : memref<32x128xf32, #tpu.memory_space<vmem>>, vector<8x128xf32>
    tpu.vector_store %arg17[%c24_91, %c0_92], %129 {strides = array<i32>} : memref<32x128xf32, #tpu.memory_space<vmem>>, vector<8x128xf32>,
    %c0_93 = arith.constant 0 : index
    %c0_94 = arith.constant 0 : index
    %131 = vector.load %arg17[%c0_93, %c0_94] : memref<32x128xf32, #tpu.memory_space<vmem>>, vector<32x128xf32>
    %c0_95 = arith.constant 0 : index
    %c0_96 = arith.constant 0 : index
    %c0_97 = arith.constant 0 : index
    %132 = vector.load %arg7[%c0_95, %c0_96, %c0_97] : memref<2x128x64xf32, #tpu.memory_space<vmem>>, vector<1x128x64xf32>
    %133 = vector.shape_cast %132 : vector<1x128x64xf32> to vector<128x64xf32>
    %cst_98 = arith.constant dense<0.000000e+00> : vector<32x64xf32>
    %134 = tpu.matmul %131, %133, %cst_98 {dimension_numbers = #tpu.dot_dimension_numbers<[1], [0], [0], [1], [0, 0, 1, 1], [], []>} : vector<32x128xf32>, vector<128x64xf32>, vector<32x64xf32> -> vector<32x64xf32>
    %c1_99 = arith.constant 1 : index
    %c0_100 = arith.constant 0 : index
    %c0_101 = arith.constant 0 : index
    %135 = vector.load %arg7[%c1_99, %c0_100, %c0_101] : memref<2x128x64xf32, #tpu.memory_space<vmem>>, vector<1x128x64xf32>
    %136 = vector.shape_cast %135 : vector<1x128x64xf32> to vector<128x64xf32>
    %cst_102 = arith.constant dense<0.000000e+00> : vector<32x64xf32>
    %137 = tpu.matmul %131, %136, %cst_102 {dimension_numbers = #tpu.dot_dimension_numbers<[1], [0], [0], [1], [0, 0, 1, 1], [], []>} : vector<32x128xf32>, vector<128x64xf32>, vector<32x64xf32> -> vector<32x64xf32>
    %138 = arith.maximumf %134, %137 : vector<32x64xf32>
    %c0_103 = arith.constant 0 : index
    %c0_104 = arith.constant 0 : index
    %139 = vector.load %arg18[%c0_103, %c0_104] : memref<32x64xf32, #tpu.memory_space<vmem>>, vector<32x64xf32>
    tpu.vector_store %arg18[%c0_103, %c0_104], %138 {strides = array<i32>} : memref<32x64xf32, #tpu.memory_space<vmem>>, vector<32x64xf32>,
    %c0_105 = arith.constant 0 : index
    %c0_106 = arith.constant 0 : index
    %140 = vector.load %arg18[%c0_105, %c0_106] : memref<32x64xf32, #tpu.memory_space<vmem>>, vector<8x64xf32>
    %c0_107 = arith.constant 0 : index
    %c0_108 = arith.constant 0 : index
    %c0_109 = arith.constant 0 : index
    %141 = vector.load %arg8[%c0_107, %c0_108, %c0_109] : memref<4x64x128xf32, #tpu.memory_space<vmem>>, vector<1x64x128xf32>
    %142 = vector.shape_cast %141 : vector<1x64x128xf32> to vector<64x128xf32>
    %cst_110 = arith.constant dense<0.000000e+00> : vector<8x128xf32>
    %143 = tpu.matmul %140, %142, %cst_110 {dimension_numbers = #tpu.dot_dimension_numbers<[1], [0], [0], [1], [0, 0, 1, 1], [], []>} : vector<8x64xf32>, vector<64x128xf32>, vector<8x128xf32> -> vector<8x128xf32>
    %c8_111 = arith.constant 8 : index
    %c0_112 = arith.constant 0 : index
    %144 = vector.load %arg18[%c8_111, %c0_112] : memref<32x64xf32, #tpu.memory_space<vmem>>, vector<8x64xf32>
    %c1_113 = arith.constant 1 : index
    %c0_114 = arith.constant 0 : index
    %c0_115 = arith.constant 0 : index
    %145 = vector.load %arg8[%c1_113, %c0_114, %c0_115] : memref<4x64x128xf32, #tpu.memory_space<vmem>>, vector<1x64x128xf32>
    %146 = vector.shape_cast %145 : vector<1x64x128xf32> to vector<64x128xf32>
    %cst_116 = arith.constant dense<0.000000e+00> : vector<8x128xf32>
    %147 = tpu.matmul %144, %146, %cst_116 {dimension_numbers = #tpu.dot_dimension_numbers<[1], [0], [0], [1], [0, 0, 1, 1], [], []>} : vector<8x64xf32>, vector<64x128xf32>, vector<8x128xf32> -> vector<8x128xf32>
    %148 = arith.addf %143, %147 : vector<8x128xf32>
    %c16_117 = arith.constant 16 : index
    %c0_118 = arith.constant 0 : index
    %149 = vector.load %arg18[%c16_117, %c0_118] : memref<32x64xf32, #tpu.memory_space<vmem>>, vector<8x64xf32>
    %c2_119 = arith.constant 2 : index
    %c0_120 = arith.constant 0 : index
    %c0_121 = arith.constant 0 : index
    %150 = vector.load %arg8[%c2_119, %c0_120, %c0_121] : memref<4x64x128xf32, #tpu.memory_space<vmem>>, vector<1x64x128xf32>
    %151 = vector.shape_cast %150 : vector<1x64x128xf32> to vector<64x128xf32>
    %cst_122 = arith.constant dense<0.000000e+00> : vector<8x128xf32>
    %152 = tpu.matmul %149, %151, %cst_122 {dimension_numbers = #tpu.dot_dimension_numbers<[1], [0], [0], [1], [0, 0, 1, 1], [], []>} : vector<8x64xf32>, vector<64x128xf32>, vector<8x128xf32> -> vector<8x128xf32>
    %153 = arith.addf %148, %152 : vector<8x128xf32>
    %c24_123 = arith.constant 24 : index
    %c0_124 = arith.constant 0 : index
    %154 = vector.load %arg18[%c24_123, %c0_124] : memref<32x64xf32, #tpu.memory_space<vmem>>, vector<8x64xf32>
    %c3_125 = arith.constant 3 : index
    %c0_126 = arith.constant 0 : index
    %c0_127 = arith.constant 0 : index
    %155 = vector.load %arg8[%c3_125, %c0_126, %c0_127] : memref<4x64x128xf32, #tpu.memory_space<vmem>>, vector<1x64x128xf32>
    %156 = vector.shape_cast %155 : vector<1x64x128xf32> to vector<64x128xf32>
    %cst_128 = arith.constant dense<0.000000e+00> : vector<8x128xf32>
    %157 = tpu.matmul %154, %156, %cst_128 {dimension_numbers = #tpu.dot_dimension_numbers<[1], [0], [0], [1], [0, 0, 1, 1], [], []>} : vector<8x64xf32>, vector<64x128xf32>, vector<8x128xf32> -> vector<8x128xf32>
    %158 = arith.addf %153, %157 : vector<8x128xf32>
    %c0_129 = arith.constant 0 : index
    %c0_130 = arith.constant 0 : index
    %159 = vector.load %arg9[%c0_129, %c0_130] : memref<1x128xf32, #tpu.memory_space<vmem>>, vector<1x128xf32>
    %160 = vector.broadcast %159 : vector<1x128xf32> to vector<8x128xf32>
    %161 = arith.addf %158, %160 : vector<8x128xf32>
    %cst_131 = arith.constant 0.000000e+00 : f32
    %162 = vector.broadcast %cst_131 : f32 to vector<8x128xf32>
    %163 = arith.maximumf %161, %162 : vector<8x128xf32>
    %c0_132 = arith.constant 0 : index
    %c0_133 = arith.constant 0 : index
    %164 = vector.load %arg10[%c0_132, %c0_133] : memref<128x128xf32, #tpu.memory_space<vmem>>, vector<128x128xf32>
    %cst_134 = arith.constant dense<0.000000e+00> : vector<8x128xf32>
    %165 = tpu.matmul %163, %164, %cst_134 {dimension_numbers = #tpu.dot_dimension_numbers<[1], [0], [0], [1], [0, 0, 1, 1], [], []>} : vector<8x128xf32>, vector<128x128xf32>, vector<8x128xf32> -> vector<8x128xf32>
    %c0_135 = arith.constant 0 : index
    %c0_136 = arith.constant 0 : index
    %166 = vector.load %arg11[%c0_135, %c0_136] : memref<1x128xf32, #tpu.memory_space<vmem>>, vector<1x128xf32>
    %167 = vector.broadcast %166 : vector<1x128xf32> to vector<8x128xf32>
    %168 = arith.addf %165, %167 : vector<8x128xf32>
    %cst_137 = arith.constant 0.000000e+00 : f32
    %169 = vector.broadcast %cst_137 : f32 to vector<8x128xf32>
    %170 = arith.maximumf %168, %169 : vector<8x128xf32>
    %c0_138 = arith.constant 0 : index
    %c0_139 = arith.constant 0 : index
    %171 = vector.load %arg12[%c0_138, %c0_139] : memref<128x128xf32, #tpu.memory_space<vmem>>, vector<128x128xf32>
    %cst_140 = arith.constant dense<0.000000e+00> : vector<8x128xf32>
    %172 = tpu.matmul %170, %171, %cst_140 {dimension_numbers = #tpu.dot_dimension_numbers<[1], [0], [0], [1], [0, 0, 1, 1], [], []>} : vector<8x128xf32>, vector<128x128xf32>, vector<8x128xf32> -> vector<8x128xf32>
    %c0_141 = arith.constant 0 : index
    %c0_142 = arith.constant 0 : index
    %173 = vector.load %arg13[%c0_141, %c0_142] : memref<1x128xf32, #tpu.memory_space<vmem>>, vector<1x128xf32>
    %174 = vector.broadcast %173 : vector<1x128xf32> to vector<8x128xf32>
    %175 = arith.addf %172, %174 : vector<8x128xf32>
    %c0_143 = arith.constant 0 : index
    %c0_144 = arith.constant 0 : index
    %176 = vector.load %arg14[%c0_143, %c0_144] : memref<8x128xf32, #tpu.memory_space<vmem>>, vector<8x128xf32>
    tpu.vector_store %arg14[%c0_143, %c0_144], %175 {strides = array<i32>} : memref<8x128xf32, #tpu.memory_space<vmem>>, vector<8x128xf32>,
    return
  }
  func.func @transform_0(%arg0: i32) -> (i32, i32) {
    %c0_i32 = arith.constant 0 : i32
    %c0_i32_0 = arith.constant 0 : i32
    return %arg0, %c0_i32 : i32, i32
  }
  func.func @transform_1(%arg0: i32) -> (i32, i32, i32) {
    %c0_i32 = arith.constant 0 : i32
    %c0_i32_0 = arith.constant 0 : i32
    %c0_i32_1 = arith.constant 0 : i32
    %c0_i32_2 = arith.constant 0 : i32
    return %c0_i32, %c0_i32_0, %c0_i32_1 : i32, i32, i32
  }
  func.func @transform_2(%arg0: i32) -> (i32, i32) {
    %c0_i32 = arith.constant 0 : i32
    %c0_i32_0 = arith.constant 0 : i32
    %c0_i32_1 = arith.constant 0 : i32
    return %c0_i32, %c0_i32_0 : i32, i32
  }
  func.func @transform_3(%arg0: i32) -> (i32, i32, i32) {
    %c0_i32 = arith.constant 0 : i32
    %c0_i32_0 = arith.constant 0 : i32
    %c0_i32_1 = arith.constant 0 : i32
    %c0_i32_2 = arith.constant 0 : i32
    return %c0_i32, %c0_i32_0, %c0_i32_1 : i32, i32, i32
  }
  func.func @transform_4(%arg0: i32) -> (i32, i32, i32) {
    %c0_i32 = arith.constant 0 : i32
    %c0_i32_0 = arith.constant 0 : i32
    %c0_i32_1 = arith.constant 0 : i32
    %c0_i32_2 = arith.constant 0 : i32
    return %c0_i32, %c0_i32_0, %c0_i32_1 : i32, i32, i32
  }
  func.func @transform_5(%arg0: i32) -> (i32, i32) {
    %c0_i32 = arith.constant 0 : i32
    %c0_i32_0 = arith.constant 0 : i32
    %c0_i32_1 = arith.constant 0 : i32
    return %c0_i32, %c0_i32_0 : i32, i32
  }
  func.func @transform_6(%arg0: i32) -> (i32, i32, i32) {
    %c0_i32 = arith.constant 0 : i32
    %c0_i32_0 = arith.constant 0 : i32
    %c0_i32_1 = arith.constant 0 : i32
    %c0_i32_2 = arith.constant 0 : i32
    return %c0_i32, %c0_i32_0, %c0_i32_1 : i32, i32, i32
  }
  func.func @transform_7(%arg0: i32) -> (i32, i32, i32) {
    %c0_i32 = arith.constant 0 : i32
    %c0_i32_0 = arith.constant 0 : i32
    %c0_i32_1 = arith.constant 0 : i32
    %c0_i32_2 = arith.constant 0 : i32
    return %c0_i32, %c0_i32_0, %c0_i32_1 : i32, i32, i32
  }
  func.func @transform_8(%arg0: i32) -> (i32, i32) {
    %c0_i32 = arith.constant 0 : i32
    %c0_i32_0 = arith.constant 0 : i32
    %c0_i32_1 = arith.constant 0 : i32
    return %c0_i32, %c0_i32_0 : i32, i32
  }
  func.func @transform_9(%arg0: i32) -> (i32, i32) {
    %c0_i32 = arith.constant 0 : i32
    %c0_i32_0 = arith.constant 0 : i32
    %c0_i32_1 = arith.constant 0 : i32
    return %c0_i32, %c0_i32_0 : i32, i32
  }
  func.func @transform_10(%arg0: i32) -> (i32, i32) {
    %c0_i32 = arith.constant 0 : i32
    %c0_i32_0 = arith.constant 0 : i32
    %c0_i32_1 = arith.constant 0 : i32
    return %c0_i32, %c0_i32_0 : i32, i32
  }
  func.func @transform_11(%arg0: i32) -> (i32, i32) {
    %c0_i32 = arith.constant 0 : i32
    %c0_i32_0 = arith.constant 0 : i32
    %c0_i32_1 = arith.constant 0 : i32
    return %c0_i32, %c0_i32_0 : i32, i32
  }
  func.func @transform_12(%arg0: i32) -> (i32, i32) {
    %c0_i32 = arith.constant 0 : i32
    %c0_i32_0 = arith.constant 0 : i32
    %c0_i32_1 = arith.constant 0 : i32
    return %c0_i32, %c0_i32_0 : i32, i32
  }
  func.func @transform_13(%arg0: i32) -> (i32, i32) {
    %c0_i32 = arith.constant 0 : i32
    %c0_i32_0 = arith.constant 0 : i32
    return %arg0, %c0_i32 : i32, i32
  }
}

</mosaic_0001>

<bundles_post_ra>
// kernel: lenet5_nas_forward.1
= control target key start
LH: loop header
LB: loop body
LE: loop exit
PB: predicated region body
PF: predicated region fallthrough
CT: control target
= control target key end

     0   :  { %18 = vsyncpa [#allocation7], 0  ;;  %s6626_s0 = inlined_call_operand.vmem [shape: f32[224,28], index: 0, kind: input, shape index: {}]   ;;  %s6627_s1 = inlined_call_operand.hbm [shape: f32[5,28,144], index: 1, kind: input, shape index: {}]   ;;  %s6628_s2 = inlined_call_operand.vmem [shape: f32[1,144], index: 2, kind: input, shape index: {}]   ;;  %s6629_s3 = inlined_call_operand.hbm [shape: f32[2,144,72], index: 3, kind: input, shape index: {}]   ;;  %s6630_s4 = inlined_call_operand.vmem [shape: f32[5,72,128], index: 4, kind: input, shape index: {}]   ;;  %s6631_s5 = inlined_call_operand.vmem [shape: f32[1,128], index: 5, kind: input, shape index: {}]   ;;  %s6632_s6 = inlined_call_operand.hbm [shape: f32[2,128,64], index: 6, kind: input, shape index: {}]   ;;  %s6633_s7 = inlined_call_operand.hbm [shape: f32[4,64,128], index: 7, kind: input, shape index: {}]   ;;  %s6634_s8 = inlined_call_operand.vmem [shape: f32[1,128], index: 8, kind: input, shape index: {}]   ;;  %s6635_s9 = inlined_call_operand.hbm [shape: f32[128,128], index: 9, kind: input, shape index: {}]   ;;  %s6636_s10 = inlined_call_operand.vmem [shape: f32[1,128], index: 10, kind: input, shape index: {}]   ;;  %s6637_s11 = inlined_call_operand.hbm [shape: f32[128,128], index: 11, kind: input, shape index: {}]   ;;  %s6638_s12 = inlined_call_operand.vmem [shape: f32[1,128], index: 12, kind: input, shape index: {}]   ;;  %s6639_s13 = inlined_call_operand.vmem [shape: f32[8,128], index: 13, kind: output, shape index: {}]  }
   0x1   :  { %19 = vsyncpa [#allocation9], 0 }
   0x2   :  { %20 = vsyncpa [#allocation12], 0 }
   0x3   :  { %21 = vsyncpa [#allocation15], 0  ;;  %s5354_s25 = smov [#allocation8]   ;;  %s5214_s29 = scalar_lea.hbm %s6629_s3, 4608 }
   0x4   :  { %s43_s26 = sshll.u32 %s5354_s25, 4  ;;  %p5215_p0 = scmp.ne.s32.totalorder %s6629_s3, %s5214_s29  ;;  %s44_s26 = int_to_ptr.vmem [resolvable:$true] %s43_s26 }
   0x5   :  { %p5218_p1 = scmp.lt.u32.totalorder %s5214_s29, %s6629_s3 }
   0x7   :  { %p5220_p2 = pnand %p5218_p1, %p5215_p0 }
   0x9   :  { %5223 = shalt.err (!%p5220_p2)
}
   0xa   :  { %s5224_s17 = scalar_lea.vmem %s44_s26, 4608  ;;  %p5229_p4 = scmp.lt.s32.totalorder %s44_s26, %s44_s26 }
   0xb   :  { %p5225_p3 = scmp.ne.s32.totalorder %s44_s26, %s5224_s17  ;;  %p5230_p5 = scmp.lt.s32.totalorder %s5224_s17, %s5224_s17 }
   0xd   :  { %p5231_p6 = por %p5230_p5, %p5229_p4 }
   0xf   :  { %p5232_p7 = pnand %p5231_p6, %p5225_p3 }
  0x11   :  { %5235 = shalt.err (!%p5232_p7)
}
  0x12   :  { %s5355_s18 = smov 128   ;;  %s5356_s19 = smov 8  }
  0x13   :  { %49 = dma.hbm_to_vmem [thread:$0]  %s6629_s3, 4608, %s44_s26, [#allocation9], %s5355_s18, %s5355_s18, %s5356_s19  }
  0x14   :  { %s5357_s22 = smov [#allocation11]   ;;  %s5358_s24 = smov [#allocation6]  }
  0x15   :  { %s71_s23 = sshll.u32 %s5357_s22, 4  ;;  %s29_s25 = sshll.u32 %s5358_s24, 4  ;;  %s72_s23 = int_to_ptr.vmem [resolvable:$true] %s71_s23  ;;  %s30_s25 = int_to_ptr.vmem [resolvable:$true] %s29_s25 }
  0x16   :  { %s5236_s29 = scalar_lea.hbm %s6633_s7, 4096 }
  0x17   :  { %p5237_p8 = scmp.ne.s32.totalorder %s6633_s7, %s5236_s29  ;;  %p5240_p9 = scmp.lt.u32.totalorder %s5236_s29, %s6633_s7 }
  0x19   :  { %p5242_p10 = pnand %p5240_p9, %p5237_p8 }
  0x1b   :  { %5245 = shalt.err (!%p5242_p10)
}
  0x1c   :  { %s5246_s3 = scalar_lea.vmem %s72_s23, 4096  ;;  %p5251_p12 = scmp.lt.s32.totalorder %s72_s23, %s72_s23 }
  0x1d   :  { %p5247_p11 = scmp.ne.s32.totalorder %s72_s23, %s5246_s3  ;;  %p5252_p13 = scmp.lt.s32.totalorder %s5246_s3, %s5246_s3 }
  0x1f   :  { %p5253_p0 = por %p5252_p13, %p5251_p12 }
  0x21   :  { %p5254_p1 = pnand %p5253_p0, %p5247_p11 }
  0x23   :  { %5257 = shalt.err (!%p5254_p1)
}
  0x24   :  { %77 = dma.hbm_to_vmem [thread:$0]  %s6633_s7, 4096, %s72_s23, [#allocation12], %s5355_s18, %s5355_s18, %s5356_s19  }
  0x25   :  { %s5258_s22 = scalar_lea.hbm %s6627_s1, 5120 }
  0x26   :  { %p5259_p2 = scmp.ne.s32.totalorder %s6627_s1, %s5258_s22  ;;  %p5262_p3 = scmp.lt.u32.totalorder %s5258_s22, %s6627_s1 }
  0x28   :  { %p5264_p4 = pnand %p5262_p3, %p5259_p2 }
  0x2a   :  { %5267 = shalt.err (!%p5264_p4)
}
  0x2b   :  { %s5268_s30 = scalar_lea.vmem %s30_s25, 5120  ;;  %p5273_p6 = scmp.lt.s32.totalorder %s30_s25, %s30_s25 }
  0x2c   :  { %p5269_p5 = scmp.ne.s32.totalorder %s30_s25, %s5268_s30  ;;  %p5274_p7 = scmp.lt.s32.totalorder %s5268_s30, %s5268_s30 }
  0x2e   :  { %p5275_p8 = por %p5274_p7, %p5273_p6 }
  0x30   :  { %p5276_p9 = pnand %p5275_p8, %p5269_p5 }
  0x32   :  { %5279 = shalt.err (!%p5276_p9)
}
  0x33   :  { %s5359_s7 = smov 256   ;;  %s5360_s23 = smov 16  }
  0x34   :  { %35 = dma.hbm_to_vmem [thread:$0]  %s6627_s1, 5120, %s30_s25, [#allocation7], %s5359_s7, %s5359_s7, %s5360_s23  }
  0x35   :  { %s5361_s16 = smov [#allocation10]   ;;  %s5362_s26 = smov [#allocation13]  }
  0x36   :  { %s59_s3 = sshll.u32 %s5361_s16, 4  ;;  %s85_s17 = sshll.u32 %s5362_s26, 4  ;;  %s60_s3 = int_to_ptr.vmem [resolvable:$true] %s59_s3  ;;  %s86_s17 = int_to_ptr.vmem [resolvable:$true] %s85_s17 }
  0x37   :  { %s5280_s22 = scalar_lea.hbm %s6632_s6, 4096 }
  0x38   :  { %p5281_p10 = scmp.ne.s32.totalorder %s6632_s6, %s5280_s22  ;;  %p5284_p11 = scmp.lt.u32.totalorder %s5280_s22, %s6632_s6 }
  0x3a   :  { %p5286_p12 = pnand %p5284_p11, %p5281_p10 }
  0x3c   :  { %5289 = shalt.err (!%p5286_p12)
}
  0x3d   :  { %s5290_s1 = scalar_lea.vmem %s60_s3, 4096  ;;  %p5295_p0 = scmp.lt.s32.totalorder %s60_s3, %s60_s3 }
  0x3e   :  { %p5291_p13 = scmp.ne.s32.totalorder %s60_s3, %s5290_s1  ;;  %p5296_p1 = scmp.lt.s32.totalorder %s5290_s1, %s5290_s1 }
  0x40   :  { %p5297_p2 = por %p5296_p1, %p5295_p0 }
  0x42   :  { %p5298_p3 = pnand %p5297_p2, %p5291_p13 }
  0x44   :  { %5301 = shalt.err (!%p5298_p3)
}
  0x45   :  { %65 = dma.hbm_to_vmem [thread:$0]  %s6632_s6, 4096, %s60_s3, [#allocation9], %s5355_s18, %s5355_s18, %s5356_s19  }
  0x46   :  { %s5302_s14 = scalar_lea.hbm %s6635_s9, 2048 }
  0x47   :  { %p5303_p4 = scmp.ne.s32.totalorder %s6635_s9, %s5302_s14  ;;  %p5306_p5 = scmp.lt.u32.totalorder %s5302_s14, %s6635_s9 }
  0x49   :  { %p5308_p6 = pnand %p5306_p5, %p5303_p4 }
  0x4b   :  { %5311 = shalt.err (!%p5308_p6)
}
  0x4c   :  { %s5312_s21 = scalar_lea.vmem %s86_s17, 2048  ;;  %p5317_p8 = scmp.lt.s32.totalorder %s86_s17, %s86_s17 }
  0x4d   :  { %p5313_p7 = scmp.ne.s32.totalorder %s86_s17, %s5312_s21  ;;  %p5318_p9 = scmp.lt.s32.totalorder %s5312_s21, %s5312_s21 }
  0x4f   :  { %p5319_p10 = por %p5318_p9, %p5317_p8 }
  0x51   :  { %p5320_p11 = pnand %p5319_p10, %p5313_p7 }
  0x53   :  { %5323 = shalt.err (!%p5320_p11)
}
  0x54   :  { %91 = dma.hbm_to_vmem [thread:$0]  %s6635_s9, 2048, %s86_s17, [#allocation12], %s5355_s18, %s5355_s18, %s5356_s19  }
  0x55   :  { %s5363_s22 = smov [#allocation14]   ;;  %s5324_s29 = scalar_lea.hbm %s6637_s11, 2048 }
  0x56   :  { %s99_s24 = sshll.u32 %s5363_s22, 4  ;;  %p5325_p12 = scmp.ne.s32.totalorder %s6637_s11, %s5324_s29  ;;  %s100_s24 = int_to_ptr.vmem [resolvable:$true] %s99_s24 }
  0x57   :  { %p5328_p13 = scmp.lt.u32.totalorder %s5324_s29, %s6637_s11 }
  0x59   :  { %p5330_p0 = pnand %p5328_p13, %p5325_p12 }
  0x5b   :  { %5333 = shalt.err (!%p5330_p0)
}
  0x5c   :  { %s5334_s23 = scalar_lea.vmem %s100_s24, 2048  ;;  %p5339_p2 = scmp.lt.s32.totalorder %s100_s24, %s100_s24 }
  0x5d   :  { %p5335_p1 = scmp.ne.s32.totalorder %s100_s24, %s5334_s23  ;;  %p5340_p3 = scmp.lt.s32.totalorder %s5334_s23, %s5334_s23 }
  0x5f   :  { %p5341_p4 = por %p5340_p3, %p5339_p2 }
  0x61   :  { %p5342_p5 = pnand %p5341_p4, %p5335_p1 }
  0x63   :  { %5345 = shalt.err (!%p5342_p5)
}
  0x64   :  { %105 = dma.hbm_to_vmem [thread:$0]  %s6637_s11, 2048, %s100_s24, [#allocation15], %s5355_s18, %s5355_s18, %s5356_s19  }
  0x65   :  { %5346 = dma.done.wait [#allocation7], 5120  }
  0x66   :  { %5347 = vsyncadd [#allocation7], 4294962176 }
  0x67   :  { %5348 = dma.done.wait [#allocation9], 8704  }
  0x68   :  { %5349 = vsyncadd [#allocation9], 4294958592 }
  0x69   :  { %5350 = dma.done.wait [#allocation12], 6144  }
  0x6a   :  { %5351 = vsyncadd [#allocation12], 4294961152 }
  0x6b   :  { %5352 = dma.done.wait [#allocation15], 2048  }
  0x6c   :  { %5353 = vsyncadd [#allocation15], 4294965248  ;;  %v5364_v0 = vmov 0.0   ;;  %vm241_vm0 = vcmask 1043456   ;;  %v161_v1 = vld [vmem:[#allocation6 + $0x48] sm:$0xff]  ;;  %v163_v2 = vld [vmem:[#allocation6 + $0x58] sm:$0xff] }
  0x6d   :  { %312 = vmatprep.mubr.f32.mxu0 %v5364_v0  ;;  %372 = vmatprep.mubr.f32.mxu1 %v5364_v0  ;;  %v160_v3 = vld [vmem:[#allocation6 + $0x40] sm:$0xff]  ;;  %v4628_v4 = vpack.c.bf16 %v163_v2, %v161_v1  ;;  %v162_v5 = vld [vmem:[#allocation6 + $0x50] sm:$0xff]  ;;  %v165_v6 = vld [vmem:[#allocation6 + $0x68] sm:$0xff]  ;;  %vm5365_vm1 = vmmov 1   ;;  %vm168_vm3 = vcmask 228352   ;;  %vm1890_vm4 = vcmask 130048  }
  0x6e   :  { %v167_v7 = vld [vmem:[#allocation6 + $0x78] sm:$0xf]  ;;  %v4630_v8 = vpack.c.bf16 %v162_v5, %v160_v3  ;;  %vm5527_vm2 = vmpackc.low %vm241_vm0, %vm5365_vm1  ;;  %v164_v11 = vld [vmem:[#allocation6 + $0x60] sm:$0xff]  ;;  %vm2295_vm5 = vcmask 588800   ;;  %vm5367_vm6 = vmmov 0   ;;  %vm3280_vm7 = vcmask 523264  }
  0x6f   :  { %v4632_v9 = vpack.c.bf16 %v167_v7, %v165_v6  ;;  %v166_v12 = vld [vmem:[#allocation6 + $0x70] sm:$0xf]  ;;  %4629 = vmatprep.subr.bf16.mxu0 %v4628_v4  ;;  %v151_v13 = vld [vmem:[#allocation6 + $0x8] sm:$0xff]  ;;  %v153_v14 = vld [vmem:[#allocation6 + $0x18] sm:$0xff]  ;;  %4972 = vmatprep.subr.bf16.mxu1 %v4628_v4 }
  0x70   :  { %4631 = vmatpush1.bf16.msra.mxu0 %v4630_v8  ;;  %v4635_v15 = vpack.c.bf16 %v166_v12, %v164_v11  ;;  %4974 = vmatpush1.bf16.msra.mxu1 %v4630_v8  ;;  %v4638_v16 = vpack.c.bf16 %v153_v14, %v151_v13  ;;  %v150_v17 = vld [vmem:[#allocation6] sm:$0xff]  ;;  %v152_v18 = vld [vmem:[#allocation6 + $0x10] sm:$0xff]  ;;  %v155_v19 = vld [vmem:[#allocation6 + $0x28] sm:$0xff] }
  0x71   :  { %4634 = vmatprep.subr.msk.bf16.mxu0 %vm5527_vm2, %v4632_v9  ;;  %4973 = vmatprep.subr.msk.bf16.mxu1 %vm5527_vm2, %v4632_v9  ;;  %v157_v20 = vld [vmem:[#allocation6 + $0x38] sm:$0xf]  ;;  %v5540_v21 = vld [vmem:[%s6626_s0 + $0x8] sm:$0xff]  ;;  %v4640_v22 = vpack.c.bf16 %v152_v18, %v150_v17  ;;  %v154_v24 = vld [vmem:[#allocation6 + $0x20] sm:$0xff] }
  0x72   :  { %v4642_v23 = vpack.c.bf16 %v157_v20, %v155_v19  ;;  %v156_v25 = vld [vmem:[#allocation6 + $0x30] sm:$0xf]  ;;  %v701_v26 = vld [vmem:[#allocation6 + $0x88] sm:$0xff]  ;;  %v703_v27 = vld [vmem:[#allocation6 + $0x98] sm:$0xff] }
  0x73   :  { %v5547_v28 = vld [vmem:[%s6626_s0 + $0x58] sm:$0xff]  ;;  %v5557_v29 = vld [vmem:[%s6626_s0 + $0x10] sm:$0xff]  ;;  %v4645_v30 = vpack.c.bf16 %v156_v25, %v154_v24  ;;  %v4648_v31 = vpack.c.bf16 %v703_v27, %v701_v26  ;;  %v5565_v32 = vld [vmem:[%s6626_s0 + $0x60] sm:$0xff] }
  0x74   :  { %4637 = vmatpush1.bf16.msk.msra.mxu0 %vm5527_vm2, %v4635_v15  ;;  %4975 = vmatpush1.bf16.msk.msra.mxu1 %vm5527_vm2, %v4635_v15  ;;  %v5575_v33 = vld [vmem:[%s6626_s0 + $0x18] sm:$0xff]  ;;  %v5583_v34 = vld [vmem:[%s6626_s0 + $0x68] sm:$0xff]  ;;  %v5593_v35 = vld [vmem:[%s6626_s0 + $0x20] sm:$0xff] }
  0x75   :  { %4639 = vmatprep.subr.bf16.mxu0 %v4638_v16  ;;  %v5599_v36 = vld [vmem:[%s6626_s0 + $0x70] sm:$0xff]  ;;  %v5609_v37 = vld [vmem:[%s6626_s0 + $0x28] sm:$0xff]  ;;  %v5615_v38 = vld [vmem:[%s6626_s0 + $0x78] sm:$0xff] }
  0x76   :  { %v5625_v39 = vld [vmem:[%s6626_s0 + $0x30] sm:$0xff]  ;;  %v5631_v40 = vld [vmem:[%s6626_s0 + $0x80] sm:$0xff]  ;;  %v5641_v41 = vld [vmem:[%s6626_s0 + $0x38] sm:$0xff] }
  0x77   :  { %3825 = vmatmul.mubr.msk.f32.vlgmr.msra.gmra.mrb[0].mxu0 %vm168_vm3, %v5540_v21  ;;  %3835 = vmatmul.mubr.msk.f32.vlgmr.msra.gmra.mrb[0].mxu1 %vm168_vm3, %v5547_v28  ;;  %v5647_v42 = vld [vmem:[%s6626_s0 + $0x88] sm:$0xff]  ;;  %v5657_v43 = vld [vmem:[%s6626_s0 + $0x40] sm:$0xff]  ;;  %v5663_v44 = vld [vmem:[%s6626_s0 + $0x90] sm:$0xff] }
  0x78   :  { %4641 = vmatpush1.bf16.msra.mxu0 %v4640_v22  ;;  %318 = vmatprep.mubr.f32.mxu0 %v5364_v0  ;;  %v5673_v45 = vld [vmem:[%s6626_s0 + $0x48] sm:$0xff]  ;;  %v5679_v46 = vld [vmem:[%s6626_s0 + $0x98] sm:$0xff]  ;;  %v5689_v47 = vld [vmem:[%s6626_s0 + $0x50] sm:$0xff] }
  0x79   :  { %4644 = vmatprep.subr.msk.bf16.mxu0 %vm5527_vm2, %v4642_v23  ;;  %378 = vmatprep.mubr.f32.mxu1 %v5364_v0  ;;  %v700_v48 = vld [vmem:[#allocation6 + $0x80] sm:$0xff]  ;;  %v702_v49 = vld [vmem:[#allocation6 + $0x90] sm:$0xff]  ;;  %v705_v50 = vld [vmem:[#allocation6 + $0xa8] sm:$0xff] }
  0x7a   :  { %v707_v51 = vld [vmem:[#allocation6 + $0xb8] sm:$0xf]  ;;  %v5695_v52 = vld [vmem:[%s6626_s0 + $0xa0] sm:$0xff]  ;;  %v4650_v54 = vpack.c.bf16 %v702_v49, %v700_v48  ;;  %v706_v57 = vld [vmem:[#allocation6 + $0xb0] sm:$0xf] }
  0x7b   :  { %3826 = vmatmul.mubr.msk.f32.gmra.mrb[2].mxu0 %vm168_vm3, %v5557_v29  ;;  %3836 = vmatmul.mubr.msk.f32.gmra.mrb[2].mxu1 %vm168_vm3, %v5565_v32  ;;  %v126_v53 = vld [vmem:[%s6626_s0] sm:$0xff]  ;;  %v4652_v55 = vpack.c.bf16 %v707_v51, %v705_v50  ;;  %v5709_v58 = vld [vmem:[%s6626_s0 + $0xa8] sm:$0xff]  ;;  %v1071_v60 = vld [vmem:[#allocation6 + $0xd8] sm:$0xff] }
  0x7c   :  { %324 = vmatprep.mubr.f32.mxu0 %v5364_v0  ;;  %4647 = vmatpush1.bf16.msk.msra.mxu0 %vm5527_vm2, %v4645_v30  ;;  %v704_v56 = vld [vmem:[#allocation6 + $0xa0] sm:$0xff]  ;;  %v1069_v59 = vld [vmem:[#allocation6 + $0xc8] sm:$0xff]  ;;  %v5721_v63 = vld [vmem:[%s6626_s0 + $0xb0] sm:$0xff] }
  0x7d   :  { %4649 = vmatprep.subr.bf16.mxu0 %v4648_v31  ;;  %384 = vmatprep.mubr.f32.mxu1 %v5364_v0  ;;  %v4655_v61 = vpack.c.bf16 %v706_v57, %v704_v56  ;;  %v4658_v62 = vpack.c.bf16 %v1071_v60, %v1069_v59  ;;  %v5734_v1 = vld [vmem:[%s6626_s0 + $0xb8] sm:$0xff]  ;;  %v5778_v2 = vld [vmem:[%s6626_s0 + $0xc0] sm:$0xff]  ;;  %v1070_v4 = vld [vmem:[#allocation6 + $0xd0] sm:$0xff] }
  0x7e   :  { %v1068_v3 = vld [vmem:[#allocation6 + $0xc0] sm:$0xff]  ;;  %v1073_v5 = vld [vmem:[#allocation6 + $0xe8] sm:$0xff]  ;;  %v1075_v6 = vld [vmem:[#allocation6 + $0xf8] sm:$0xf] }
  0x7f   :  { %3827 = vmatmul.mubr.msk.f32.gmra.mrb[4].mxu0 %vm168_vm3, %v5575_v33  ;;  %3837 = vmatmul.mubr.msk.f32.gmra.mrb[4].mxu1 %vm168_vm3, %v5583_v34  ;;  %v4660_v7 = vpack.c.bf16 %v1070_v4, %v1068_v3  ;;  %v4662_v8 = vpack.c.bf16 %v1075_v6, %v1073_v5  ;;  %v1072_v9 = vld [vmem:[#allocation6 + $0xe0] sm:$0xff]  ;;  %v1074_v11 = vld [vmem:[#allocation6 + $0xf0] sm:$0xf]  ;;  %v1437_v12 = vld [vmem:[#allocation6 + $0x108] sm:$0xff] }
  0x80   :  { %330 = vmatprep.mubr.f32.mxu0 %v5364_v0  ;;  %390 = vmatprep.mubr.f32.mxu1 %v5364_v0  ;;  %v1439_v13 = vld [vmem:[#allocation6 + $0x118] sm:$0xff]  ;;  %v4665_v14 = vpack.c.bf16 %v1074_v11, %v1072_v9  ;;  %v5888_v16 = vld [vmem:[%s6626_s0 + $0xc8] sm:$0xff]  ;;  %v1436_v17 = vld [vmem:[#allocation6 + $0x100] sm:$0xff] }
  0x81   :  { %v4668_v15 = vpack.c.bf16 %v1439_v13, %v1437_v12  ;;  %v1438_v18 = vld [vmem:[#allocation6 + $0x110] sm:$0xff]  ;;  %v1441_v19 = vld [vmem:[#allocation6 + $0x128] sm:$0xff]  ;;  %v1443_v20 = vld [vmem:[#allocation6 + $0x138] sm:$0xf] }
  0x82   :  { %v4672_v22 = vpack.c.bf16 %v1443_v20, %v1441_v19  ;;  %v1440_v23 = vld [vmem:[#allocation6 + $0x120] sm:$0xff]  ;;  %v1442_v24 = vld [vmem:[#allocation6 + $0x130] sm:$0xf]  ;;  %v1961_v26 = vld [vmem:[#allocation8 + $0x8] sm:$0xff] }
  0x83   :  { %3828 = vmatmul.mubr.msk.f32.gmra.mrb[6].mxu0 %vm168_vm3, %v5593_v35  ;;  %3838 = vmatmul.mubr.msk.f32.gmra.mrb[6].mxu1 %vm168_vm3, %v5599_v36  ;;  %v4675_v25 = vpack.c.bf16 %v1442_v24, %v1440_v23  ;;  %v1960_v10 = vld [vmem:[#allocation8] sm:$0xff]  ;;  %v1962_v27 = vld [vmem:[#allocation8 + $0x10] sm:$0xff]  ;;  %v1963_v31 = vld [vmem:[#allocation8 + $0x18] sm:$0xff] }
  0x84   :  { %336 = vmatprep.mubr.f32.mxu0 %v5364_v0  ;;  %396 = vmatprep.mubr.f32.mxu1 %v5364_v0  ;;  %v4679_v30 = vpack.c.bf16 %v1961_v26, %v1960_v10  ;;  %v1964_v48 = vld [vmem:[#allocation8 + $0x20] sm:$0xff]  ;;  %v1965_v49 = vld [vmem:[#allocation8 + $0x28] sm:$0xff]  ;;  %v1966_v51 = vld [vmem:[#allocation8 + $0x30] sm:$0xff] }
  0x85   :  { %v4685_v50 = vpack.c.bf16 %v1965_v49, %v1964_v48  ;;  %v1779_v24 = vld [vmem:[%s6628_s2] sm:$0x3] }
  0x87   :  { %3829 = vmatmul.mubr.msk.f32.gmra.mrb[8].mxu0 %vm168_vm3, %v5609_v37  ;;  %3839 = vmatmul.mubr.msk.f32.gmra.mrb[8].mxu1 %vm168_vm3, %v5615_v38 }
  0x88   :  { %342 = vmatprep.mubr.f32.mxu0 %v5364_v0  ;;  %402 = vmatprep.mubr.f32.mxu1 %v5364_v0 }
  0x8b   :  { %3830 = vmatmul.mubr.msk.f32.gmra.mrb[10].mxu0 %vm168_vm3, %v5625_v39  ;;  %3840 = vmatmul.mubr.msk.f32.gmra.mrb[10].mxu1 %vm168_vm3, %v5631_v40 }
  0x8c   :  { %348 = vmatprep.mubr.f32.mxu0 %v5364_v0  ;;  %408 = vmatprep.mubr.f32.mxu1 %v5364_v0 }
  0x8f   :  { %3831 = vmatmul.mubr.msk.f32.gmra.mrb[12].mxu0 %vm168_vm3, %v5641_v41  ;;  %3841 = vmatmul.mubr.msk.f32.gmra.mrb[12].mxu1 %vm168_vm3, %v5647_v42 }
  0x90   :  { %354 = vmatprep.mubr.f32.mxu0 %v5364_v0  ;;  %414 = vmatprep.mubr.f32.mxu1 %v5364_v0 }
  0x93   :  { %3832 = vmatmul.mubr.msk.f32.gmra.mrb[14].mxu0 %vm168_vm3, %v5657_v43  ;;  %3842 = vmatmul.mubr.msk.f32.gmra.mrb[14].mxu1 %vm168_vm3, %v5663_v44 }
  0x94   :  { %360 = vmatprep.mubr.f32.mxu0 %v5364_v0  ;;  %420 = vmatprep.mubr.f32.mxu1 %v5364_v0 }
  0x97   :  { %3833 = vmatmul.mubr.msk.f32.gmra.mrb[16].mxu0 %vm168_vm3, %v5673_v45  ;;  %3843 = vmatmul.mubr.msk.f32.gmra.mrb[16].mxu1 %vm168_vm3, %v5679_v46 }
  0x98   :  { %366 = vmatprep.mubr.f32.mxu0 %v5364_v0  ;;  %426 = vmatprep.mubr.f32.mxu1 %v5364_v0 }
  0x9b   :  { %3834 = vmatmul.mubr.msk.f32.gmra.mrb[18].mxu0 %vm168_vm3, %v5689_v47  ;;  %3844 = vmatmul.mubr.msk.f32.gmra.mrb[18].mxu1 %vm168_vm3, %v5695_v52 }
  0x9c   :  { %530 = vmatprep.mubr.f32.mxu0 %v5364_v0  ;;  %432 = vmatprep.mubr.f32.mxu1 %v5364_v0 }
  0x9f   :  { %3851 = vmatmul.mubr.msk.f32.vlgmr.msra.gmra.mrb[0].mxu0 %vm168_vm3, %v126_v53  ;;  %3845 = vmatmul.mubr.msk.f32.gmra.mrb[20].mxu1 %vm168_vm3, %v5709_v58  ;;  %v1967_v53 = vld [vmem:[#allocation8 + $0x38] sm:$0xff] }
  0xa0   :  { %4651 = vmatpush1.bf16.msra.mxu0 %v4650_v54  ;;  %536 = vmatprep.mubr.f32.mxu0 %v5364_v0  ;;  %v4688_v54 = vpack.c.bf16 %v1967_v53, %v1966_v51 }
  0xa1   :  { %4654 = vmatprep.subr.msk.bf16.mxu0 %vm5527_vm2, %v4652_v55  ;;  %438 = vmatprep.mubr.f32.mxu1 %v5364_v0  ;;  %v1066_v55 = vld [vmem:[%s6626_s0 + $0xd0] sm:$0xff] }
  0xa3   :  { %3852 = vmatmul.mubr.msk.f32.gmra.mrb[2].mxu0 %vm168_vm3, %v5540_v21  ;;  %3846 = vmatmul.mubr.msk.f32.gmra.mrb[22].mxu1 %vm168_vm3, %v5721_v63  ;;  %v4670_v21 = vpack.c.bf16 %v1438_v18, %v1436_v17 }
  0xa4   :  { %542 = vmatprep.mubr.f32.mxu0 %v5364_v0  ;;  %4657 = vmatpush1.bf16.msk.msra.mxu0 %vm5527_vm2, %v4655_v61 }
  0xa5   :  { %4659 = vmatprep.subr.bf16.mxu0 %v4658_v62  ;;  %444 = vmatprep.mubr.f32.mxu1 %v5364_v0 }
  0xa7   :  { %3853 = vmatmul.mubr.msk.f32.gmra.mrb[4].mxu0 %vm168_vm3, %v5557_v29  ;;  %3847 = vmatmul.mubr.msk.f32.gmra.mrb[24].mxu1 %vm168_vm3, %v5734_v1 }
  0xa8   :  { %548 = vmatprep.mubr.f32.mxu0 %v5364_v0  ;;  %450 = vmatprep.mubr.f32.mxu1 %v5364_v0 }
  0xab   :  { %3854 = vmatmul.mubr.msk.f32.gmra.mrb[6].mxu0 %vm168_vm3, %v5575_v33  ;;  %3848 = vmatmul.mubr.msk.f32.gmra.mrb[26].mxu1 %vm168_vm3, %v5778_v2 }
  0xac   :  { %554 = vmatprep.mubr.f32.mxu0 %v5364_v0 }
  0xaf   :  { %3855 = vmatmul.mubr.msk.f32.gmra.mrb[8].mxu0 %vm168_vm3, %v5593_v35 }
  0xb0   :  { %560 = vmatprep.mubr.f32.mxu0 %v5364_v0 }
  0xb3   :  { %3856 = vmatmul.mubr.msk.f32.gmra.mrb[10].mxu0 %vm168_vm3, %v5609_v37 }
  0xb4   :  { %566 = vmatprep.mubr.f32.mxu0 %v5364_v0 }
  0xb7   :  { %3857 = vmatmul.mubr.msk.f32.gmra.mrb[12].mxu0 %vm168_vm3, %v5625_v39 }
  0xb8   :  { %572 = vmatprep.mubr.f32.mxu0 %v5364_v0 }
  0xbb   :  { %3858 = vmatmul.mubr.msk.f32.gmra.mrb[14].mxu0 %vm168_vm3, %v5641_v41 }
  0xbc   :  { %578 = vmatprep.mubr.f32.mxu0 %v5364_v0 }
  0xbf   :  { %3859 = vmatmul.mubr.msk.f32.gmra.mrb[16].mxu0 %vm168_vm3, %v5657_v43 }
  0xc0   :  { %584 = vmatprep.mubr.f32.mxu0 %v5364_v0 }
  0xc3   :  { %3860 = vmatmul.mubr.msk.f32.gmra.mrb[18].mxu0 %vm168_vm3, %v5673_v45 }
  0xc4   :  { %590 = vmatprep.mubr.f32.mxu0 %v5364_v0 }
  0xc7   :  { %3861 = vmatmul.mubr.msk.f32.gmra.mrb[20].mxu0 %vm168_vm3, %v5689_v47 }
  0xc8   :  { %596 = vmatprep.mubr.f32.mxu0 %v5364_v0 }
  0xcb   :  { %3862 = vmatmul.mubr.msk.f32.gmra.mrb[22].mxu0 %vm168_vm3, %v5547_v28 }
  0xcc   :  { %602 = vmatprep.mubr.f32.mxu0 %v5364_v0 }
  0xcf   :  { %3863 = vmatmul.mubr.msk.f32.gmra.mrb[24].mxu0 %vm168_vm3, %v5565_v32 }
  0xd0   :  { %608 = vmatprep.mubr.f32.mxu0 %v5364_v0 }
  0xd3   :  { %3864 = vmatmul.mubr.msk.f32.gmra.mrb[26].mxu0 %vm168_vm3, %v5583_v34 }
  0xd4   :  { %614 = vmatprep.mubr.f32.mxu0 %v5364_v0 }
  0xd7   :  { %3865 = vmatmul.mubr.msk.f32.gmra.mrb[28].mxu0 %vm168_vm3, %v5599_v36 }
  0xd8   :  { %620 = vmatprep.mubr.f32.mxu0 %v5364_v0 }
  0xdb   :  { %3866 = vmatmul.mubr.msk.f32.gmra.mrb[30].mxu0 %vm168_vm3, %v5615_v38 }
  0xdc   :  { %626 = vmatprep.mubr.f32.mxu0 %v5364_v0 }
  0xdf   :  { %3867 = vmatmul.mubr.msk.f32.gmra.mrb[32].mxu0 %vm168_vm3, %v5631_v40 }
  0xe0   :  { %632 = vmatprep.mubr.f32.mxu0 %v5364_v0 }
  0xe3   :  { %3868 = vmatmul.mubr.msk.f32.gmra.mrb[34].mxu0 %vm168_vm3, %v5647_v42 }
  0xe4   :  { %638 = vmatprep.mubr.f32.mxu0 %v5364_v0 }
  0xe7   :  { %3869 = vmatmul.mubr.msk.f32.gmra.mrb[36].mxu0 %vm168_vm3, %v5663_v44 }
  0xe8   :  { %644 = vmatprep.mubr.f32.mxu0 %v5364_v0 }
  0xeb   :  { %3870 = vmatmul.mubr.msk.f32.gmra.mrb[38].mxu0 %vm168_vm3, %v5679_v46 }
  0xec   :  { %650 = vmatprep.mubr.f32.mxu0 %v5364_v0 }
  0xef   :  { %3871 = vmatmul.mubr.msk.f32.gmra.mrb[40].mxu0 %vm168_vm3, %v5695_v52 }
  0xf0   :  { %656 = vmatprep.mubr.f32.mxu0 %v5364_v0 }
  0xf3   :  { %3872 = vmatmul.mubr.msk.f32.gmra.mrb[42].mxu0 %vm168_vm3, %v5709_v58 }
  0xf4   :  { %662 = vmatprep.mubr.f32.mxu0 %v5364_v0 }
  0xf7   :  { %3873 = vmatmul.mubr.msk.f32.gmra.mrb[44].mxu0 %vm168_vm3, %v5721_v63 }
  0xf8   :  { %668 = vmatprep.mubr.f32.mxu0 %v5364_v0 }
  0xfb   :  { %3874 = vmatmul.mubr.msk.f32.gmra.mrb[46].mxu0 %vm168_vm3, %v5734_v1 }
  0xfc   :  { %850 = vmatprep.mubr.f32.mxu0 %v5364_v0 }
  0xff   :  { %3877 = vmatmul.mubr.msk.f32.vlgmr.msra.gmra.mrb[0].mxu0 %vm168_vm3, %v5557_v29  ;;  %v5366_v29 = vmov 0.0|0.0  }
 0x100   :  { %4661 = vmatpush1.bf16.msra.mxu0 %v4660_v7  ;;  %856 = vmatprep.mubr.f32.mxu0 %v5364_v0 }
 0x101   :  { %4664 = vmatprep.subr.msk.bf16.mxu0 %vm5527_vm2, %v4662_v8  ;;  %4678 = vmatprep.subr.bf16.mxu1 %v5366_v29 }
 0x102   :  { %4680 = vmatpush1.bf16.msra.mxu1 %v4679_v30 }
 0x103   :  { %3878 = vmatmul.mubr.msk.f32.gmra.mrb[2].mxu0 %vm168_vm3, %v5575_v33  ;;  %4681 = vmatprep.subr.bf16.mxu1 %v5366_v29 }
 0x104   :  { %862 = vmatprep.mubr.f32.mxu0 %v5364_v0  ;;  %4667 = vmatpush1.bf16.msk.msra.mxu0 %vm5527_vm2, %v4665_v14 }
 0x105   :  { %4669 = vmatprep.subr.bf16.mxu0 %v4668_v15 }
 0x107   :  { %3879 = vmatmul.mubr.msk.f32.gmra.mrb[4].mxu0 %vm168_vm3, %v5593_v35 }
 0x108   :  { %868 = vmatprep.mubr.f32.mxu0 %v5364_v0 }
 0x10b   :  { %3880 = vmatmul.mubr.msk.f32.gmra.mrb[6].mxu0 %vm168_vm3, %v5609_v37 }
 0x10c   :  { %874 = vmatprep.mubr.f32.mxu0 %v5364_v0 }
 0x10f   :  { %3881 = vmatmul.mubr.msk.f32.gmra.mrb[8].mxu0 %vm168_vm3, %v5625_v39 }
 0x110   :  { %880 = vmatprep.mubr.f32.mxu0 %v5364_v0 }
 0x113   :  { %3882 = vmatmul.mubr.msk.f32.gmra.mrb[10].mxu0 %vm168_vm3, %v5641_v41 }
 0x114   :  { %886 = vmatprep.mubr.f32.mxu0 %v5364_v0 }
 0x117   :  { %3883 = vmatmul.mubr.msk.f32.gmra.mrb[12].mxu0 %vm168_vm3, %v5657_v43 }
 0x118   :  { %892 = vmatprep.mubr.f32.mxu0 %v5364_v0 }
 0x11b   :  { %3884 = vmatmul.mubr.msk.f32.gmra.mrb[14].mxu0 %vm168_vm3, %v5673_v45 }
 0x11c   :  { %898 = vmatprep.mubr.f32.mxu0 %v5364_v0 }
 0x11f   :  { %3885 = vmatmul.mubr.msk.f32.gmra.mrb[16].mxu0 %vm168_vm3, %v5689_v47 }
 0x120   :  { %904 = vmatprep.mubr.f32.mxu0 %v5364_v0 }
 0x123   :  { %3886 = vmatmul.mubr.msk.f32.gmra.mrb[18].mxu0 %vm168_vm3, %v5547_v28 }
 0x124   :  { %910 = vmatprep.mubr.f32.mxu0 %v5364_v0 }
 0x127   :  { %3887 = vmatmul.mubr.msk.f32.gmra.mrb[20].mxu0 %vm168_vm3, %v5565_v32 }
 0x128   :  { %916 = vmatprep.mubr.f32.mxu0 %v5364_v0 }
 0x12b   :  { %3888 = vmatmul.mubr.msk.f32.gmra.mrb[22].mxu0 %vm168_vm3, %v5583_v34 }
 0x12c   :  { %922 = vmatprep.mubr.f32.mxu0 %v5364_v0 }
 0x12f   :  { %3889 = vmatmul.mubr.msk.f32.gmra.mrb[24].mxu0 %vm168_vm3, %v5599_v36 }
 0x130   :  { %928 = vmatprep.mubr.f32.mxu0 %v5364_v0 }
 0x133   :  { %3890 = vmatmul.mubr.msk.f32.gmra.mrb[26].mxu0 %vm168_vm3, %v5615_v38 }
 0x134   :  { %934 = vmatprep.mubr.f32.mxu0 %v5364_v0 }
 0x137   :  { %3891 = vmatmul.mubr.msk.f32.gmra.mrb[28].mxu0 %vm168_vm3, %v5631_v40 }
 0x138   :  { %940 = vmatprep.mubr.f32.mxu0 %v5364_v0 }
 0x13b   :  { %3892 = vmatmul.mubr.msk.f32.gmra.mrb[30].mxu0 %vm168_vm3, %v5647_v42 }
 0x13c   :  { %946 = vmatprep.mubr.f32.mxu0 %v5364_v0 }
 0x13f   :  { %3893 = vmatmul.mubr.msk.f32.gmra.mrb[32].mxu0 %vm168_vm3, %v5663_v44 }
 0x140   :  { %952 = vmatprep.mubr.f32.mxu0 %v5364_v0 }
 0x143   :  { %3894 = vmatmul.mubr.msk.f32.gmra.mrb[34].mxu0 %vm168_vm3, %v5679_v46 }
 0x144   :  { %958 = vmatprep.mubr.f32.mxu0 %v5364_v0 }
 0x147   :  { %3895 = vmatmul.mubr.msk.f32.gmra.mrb[36].mxu0 %vm168_vm3, %v5695_v52 }
 0x148   :  { %964 = vmatprep.mubr.f32.mxu0 %v5364_v0 }
 0x14b   :  { %3896 = vmatmul.mubr.msk.f32.gmra.mrb[38].mxu0 %vm168_vm3, %v5709_v58 }
 0x14c   :  { %970 = vmatprep.mubr.f32.mxu0 %v5364_v0 }
 0x14f   :  { %3897 = vmatmul.mubr.msk.f32.gmra.mrb[40].mxu0 %vm168_vm3, %v5721_v63 }
 0x150   :  { %976 = vmatprep.mubr.f32.mxu0 %v5364_v0 }
 0x153   :  { %3898 = vmatmul.mubr.msk.f32.gmra.mrb[42].mxu0 %vm168_vm3, %v5734_v1 }
 0x154   :  { %982 = vmatprep.mubr.f32.mxu0 %v5364_v0 }
 0x157   :  { %3899 = vmatmul.mubr.msk.f32.gmra.mrb[44].mxu0 %vm168_vm3, %v5778_v2 }
 0x158   :  { %988 = vmatprep.mubr.f32.mxu0 %v5364_v0 }
 0x15b   :  { %3900 = vmatmul.mubr.msk.f32.gmra.mrb[46].mxu0 %vm168_vm3, %v5888_v16 }
 0x15c   :  { %1218 = vmatprep.mubr.f32.mxu0 %v5364_v0 }
 0x15f   :  { %3903 = vmatmul.mubr.msk.f32.vlgmr.msra.gmra.mrb[0].mxu0 %vm168_vm3, %v5575_v33  ;;  %v4682_v33 = vpack.c.bf16 %v1963_v31, %v1962_v27 }
 0x160   :  { %4671 = vmatpush1.bf16.msra.mxu0 %v4670_v21  ;;  %1224 = vmatprep.mubr.f32.mxu0 %v5364_v0  ;;  %v1781_v21 = vlaneseq }
 0x161   :  { %4674 = vmatprep.subr.msk.bf16.mxu0 %vm5527_vm2, %v4672_v22  ;;  %4683 = vmatpush1.bf16.msra.mxu1 %v4682_v33 }
 0x162   :  { %4684 = vmatprep.subr.bf16.mxu1 %v5366_v29  ;;  %v1782_v22 = vshrl.u32 %v1781_v21, 7 }
 0x163   :  { %3904 = vmatmul.mubr.msk.f32.gmra.mrb[2].mxu0 %vm168_vm3, %v5593_v35 }
 0x164   :  { %1230 = vmatprep.mubr.f32.mxu0 %v5364_v0  ;;  %4677 = vmatpush1.bf16.msk.msra.mxu0 %vm5527_vm2, %v4675_v25  ;;  %v1783_v23 = vsub.s32 0, %v1782_v22  ;;  %v1787_v25 = vsub.s32 1, %v1782_v22 }
 0x165   :  { %4686 = vmatpush1.bf16.msra.mxu1 %v4685_v50 }
 0x166   :  { %4687 = vmatprep.subr.bf16.mxu1 %v5366_v29  ;;  %v6112_v10 = vrot.slane %v1779_v24, %v1783_v23  ;;  %v6114_v27 = vrot.slane %v1779_v24, %v1787_v25 }
 0x167   :  { %3905 = vmatmul.mubr.msk.f32.gmra.mrb[4].mxu0 %vm168_vm3, %v5609_v37 }
 0x168   :  { %1236 = vmatprep.mubr.f32.mxu0 %v5364_v0 }
 0x169   :  { %4689 = vmatpush1.bf16.msra.mxu1 %v4688_v54 }
 0x16a   :  { %4690 = vmatprep.subr.bf16.mxu1 %v5366_v29 }
 0x16b   :  { %3906 = vmatmul.mubr.msk.f32.gmra.mrb[6].mxu0 %vm168_vm3, %v5625_v39 }
 0x16c   :  { %1242 = vmatprep.mubr.f32.mxu0 %v5364_v0 }
 0x16f   :  { %3907 = vmatmul.mubr.msk.f32.gmra.mrb[8].mxu0 %vm168_vm3, %v5641_v41 }
 0x170   :  { %1248 = vmatprep.mubr.f32.mxu0 %v5364_v0 }
 0x173   :  { %3908 = vmatmul.mubr.msk.f32.gmra.mrb[10].mxu0 %vm168_vm3, %v5657_v43 }
 0x174   :  { %1254 = vmatprep.mubr.f32.mxu0 %v5364_v0 }
 0x177   :  { %3909 = vmatmul.mubr.msk.f32.gmra.mrb[12].mxu0 %vm168_vm3, %v5673_v45 }
 0x178   :  { %1260 = vmatprep.mubr.f32.mxu0 %v5364_v0 }
 0x17b   :  { %3910 = vmatmul.mubr.msk.f32.gmra.mrb[14].mxu0 %vm168_vm3, %v5689_v47 }
 0x17c   :  { %1266 = vmatprep.mubr.f32.mxu0 %v5364_v0 }
 0x17f   :  { %3911 = vmatmul.mubr.msk.f32.gmra.mrb[16].mxu0 %vm168_vm3, %v5547_v28 }
 0x180   :  { %1272 = vmatprep.mubr.f32.mxu0 %v5364_v0 }
 0x183   :  { %3912 = vmatmul.mubr.msk.f32.gmra.mrb[18].mxu0 %vm168_vm3, %v5565_v32 }
 0x184   :  { %1278 = vmatprep.mubr.f32.mxu0 %v5364_v0 }
 0x187   :  { %3913 = vmatmul.mubr.msk.f32.gmra.mrb[20].mxu0 %vm168_vm3, %v5583_v34 }
 0x188   :  { %1284 = vmatprep.mubr.f32.mxu0 %v5364_v0 }
 0x18b   :  { %3914 = vmatmul.mubr.msk.f32.gmra.mrb[22].mxu0 %vm168_vm3, %v5599_v36 }
 0x18c   :  { %1290 = vmatprep.mubr.f32.mxu0 %v5364_v0 }
 0x18f   :  { %3915 = vmatmul.mubr.msk.f32.gmra.mrb[24].mxu0 %vm168_vm3, %v5615_v38 }
 0x190   :  { %1296 = vmatprep.mubr.f32.mxu0 %v5364_v0 }
 0x193   :  { %3916 = vmatmul.mubr.msk.f32.gmra.mrb[26].mxu0 %vm168_vm3, %v5631_v40 }
 0x194   :  { %1302 = vmatprep.mubr.f32.mxu0 %v5364_v0 }
 0x197   :  { %3917 = vmatmul.mubr.msk.f32.gmra.mrb[28].mxu0 %vm168_vm3, %v5647_v42 }
 0x198   :  { %1308 = vmatprep.mubr.f32.mxu0 %v5364_v0 }
 0x19b   :  { %3918 = vmatmul.mubr.msk.f32.gmra.mrb[30].mxu0 %vm168_vm3, %v5663_v44 }
 0x19c   :  { %1314 = vmatprep.mubr.f32.mxu0 %v5364_v0 }
 0x19f   :  { %3919 = vmatmul.mubr.msk.f32.gmra.mrb[32].mxu0 %vm168_vm3, %v5679_v46 }
 0x1a0   :  { %1320 = vmatprep.mubr.f32.mxu0 %v5364_v0 }
 0x1a3   :  { %3920 = vmatmul.mubr.msk.f32.gmra.mrb[34].mxu0 %vm168_vm3, %v5695_v52 }
 0x1a4   :  { %1326 = vmatprep.mubr.f32.mxu0 %v5364_v0 }
 0x1a7   :  { %3921 = vmatmul.mubr.msk.f32.gmra.mrb[36].mxu0 %vm168_vm3, %v5709_v58 }
 0x1a8   :  { %1332 = vmatprep.mubr.f32.mxu0 %v5364_v0 }
 0x1ab   :  { %3922 = vmatmul.mubr.msk.f32.gmra.mrb[38].mxu0 %vm168_vm3, %v5721_v63 }
 0x1ac   :  { %1338 = vmatprep.mubr.f32.mxu0 %v5364_v0 }
 0x1af   :  { %3923 = vmatmul.mubr.msk.f32.gmra.mrb[40].mxu0 %vm168_vm3, %v5734_v1 }
 0x1b0   :  { %1344 = vmatprep.mubr.f32.mxu0 %v5364_v0 }
 0x1b3   :  { %3924 = vmatmul.mubr.msk.f32.gmra.mrb[42].mxu0 %vm168_vm3, %v5778_v2 }
 0x1b4   :  { %1350 = vmatprep.mubr.f32.mxu0 %v5364_v0 }
 0x1b7   :  { %3925 = vmatmul.mubr.msk.f32.gmra.mrb[44].mxu0 %vm168_vm3, %v5888_v16 }
 0x1b8   :  { %1356 = vmatprep.mubr.f32.mxu0 %v5364_v0 }
 0x1bb   :  { %3926 = vmatmul.mubr.msk.f32.gmra.mrb[46].mxu0 %vm168_vm3, %v1066_v55 }
 0x1bc   :  { %1586 = vmatprep.mubr.f32.mxu0 %v5364_v0 }
 0x1bf   :  { %3929 = vmatmul.mubr.msk.f32.vlgmr.msra.gmra.mrb[0].mxu0 %vm168_vm3, %v5593_v35  ;;  %v1970_v35 = vld [vmem:[#allocation8 + $0x50] sm:$0xff] }
 0x1c0   :  { %1592 = vmatprep.mubr.f32.mxu0 %v5364_v0 }
 0x1c3   :  { %3930 = vmatmul.mubr.msk.f32.gmra.mrb[2].mxu0 %vm168_vm3, %v5609_v37 }
 0x1c4   :  { %1598 = vmatprep.mubr.f32.mxu0 %v5364_v0 }
 0x1c7   :  { %3931 = vmatmul.mubr.msk.f32.gmra.mrb[4].mxu0 %vm168_vm3, %v5625_v39  ;;  %v1972_v39 = vld [vmem:[#allocation8 + $0x60] sm:$0xff] }
 0x1c8   :  { %1604 = vmatprep.mubr.f32.mxu0 %v5364_v0 }
 0x1cb   :  { %3932 = vmatmul.mubr.msk.f32.gmra.mrb[6].mxu0 %vm168_vm3, %v5641_v41 }
 0x1cc   :  { %1610 = vmatprep.mubr.f32.mxu0 %v5364_v0 }
 0x1cf   :  { %3933 = vmatmul.mubr.msk.f32.gmra.mrb[8].mxu0 %vm168_vm3, %v5657_v43  ;;  %v1975_v43 = vld [vmem:[#allocation8 + $0x78] sm:$0xff] }
 0x1d0   :  { %1616 = vmatprep.mubr.f32.mxu0 %v5364_v0 }
 0x1d3   :  { %3934 = vmatmul.mubr.msk.f32.gmra.mrb[10].mxu0 %vm168_vm3, %v5673_v45  ;;  %v1976_v45 = vld [vmem:[#allocation8 + $0x80] sm:$0xff] }
 0x1d4   :  { %1622 = vmatprep.mubr.f32.mxu0 %v5364_v0 }
 0x1d7   :  { %3935 = vmatmul.mubr.msk.f32.gmra.mrb[12].mxu0 %vm168_vm3, %v5689_v47 }
 0x1d8   :  { %1628 = vmatprep.mubr.f32.mxu0 %v5364_v0 }
 0x1db   :  { %3936 = vmatmul.mubr.msk.f32.gmra.mrb[14].mxu0 %vm168_vm3, %v5547_v28  ;;  %v1968_v28 = vld [vmem:[#allocation8 + $0x40] sm:$0xff] }
 0x1dc   :  { %1634 = vmatprep.mubr.f32.mxu0 %v5364_v0 }
 0x1df   :  { %3937 = vmatmul.mubr.msk.f32.gmra.mrb[16].mxu0 %vm168_vm3, %v5565_v32  ;;  %v1969_v32 = vld [vmem:[#allocation8 + $0x48] sm:$0xff] }
 0x1e0   :  { %1640 = vmatprep.mubr.f32.mxu0 %v5364_v0 }
 0x1e3   :  { %3938 = vmatmul.mubr.msk.f32.gmra.mrb[18].mxu0 %vm168_vm3, %v5583_v34  ;;  %v4691_v34 = vpack.c.bf16 %v1969_v32, %v1968_v28 }
 0x1e4   :  { %1646 = vmatprep.mubr.f32.mxu0 %v5364_v0 }
 0x1e5   :  { %4692 = vmatpush1.bf16.msra.mxu1 %v4691_v34 }
 0x1e6   :  { %4693 = vmatprep.subr.bf16.mxu1 %v5366_v29 }
 0x1e7   :  { %3939 = vmatmul.mubr.msk.f32.gmra.mrb[20].mxu0 %vm168_vm3, %v5599_v36  ;;  %v1971_v36 = vld [vmem:[#allocation8 + $0x58] sm:$0xff] }
 0x1e8   :  { %1652 = vmatprep.mubr.f32.mxu0 %v5364_v0  ;;  %v4694_v37 = vpack.c.bf16 %v1971_v36, %v1970_v35 }
 0x1ea   :  { %4695 = vmatpush1.bf16.msra.mxu1 %v4694_v37 }
 0x1eb   :  { %3940 = vmatmul.mubr.msk.f32.gmra.mrb[22].mxu0 %vm168_vm3, %v5615_v38  ;;  %v1434_v38 = vld [vmem:[%s6626_s0 + $0xd8] sm:$0xff]  ;;  %4696 = vmatprep.subr.bf16.mxu1 %v5366_v29 }
 0x1ec   :  { %1658 = vmatprep.mubr.f32.mxu0 %v5364_v0 }
 0x1ef   :  { %3941 = vmatmul.mubr.msk.f32.gmra.mrb[24].mxu0 %vm168_vm3, %v5631_v40  ;;  %v1973_v40 = vld [vmem:[#allocation8 + $0x68] sm:$0xff] }
 0x1f0   :  { %1664 = vmatprep.mubr.f32.mxu0 %v5364_v0  ;;  %v4697_v41 = vpack.c.bf16 %v1973_v40, %v1972_v39 }
 0x1f2   :  { %4698 = vmatpush1.bf16.msra.mxu1 %v4697_v41 }
 0x1f3   :  { %3942 = vmatmul.mubr.msk.f32.gmra.mrb[26].mxu0 %vm168_vm3, %v5647_v42  ;;  %4699 = vmatprep.subr.bf16.mxu1 %v5366_v29  ;;  %v1974_v42 = vld [vmem:[#allocation8 + $0x70] sm:$0xff] }
 0x1f4   :  { %1670 = vmatprep.mubr.f32.mxu0 %v5364_v0 }
 0x1f7   :  { %3943 = vmatmul.mubr.msk.f32.gmra.mrb[28].mxu0 %vm168_vm3, %v5663_v44  ;;  %v4700_v44 = vpack.c.bf16 %v1975_v43, %v1974_v42 }
 0x1f8   :  { %1676 = vmatprep.mubr.f32.mxu0 %v5364_v0 }
 0x1f9   :  { %4701 = vmatpush1.bf16.msra.mxu1 %v4700_v44 }
 0x1fa   :  { %4702 = vmatprep.subr.bf16.mxu1 %v5366_v29 }
 0x1fb   :  { %3944 = vmatmul.mubr.msk.f32.gmra.mrb[30].mxu0 %vm168_vm3, %v5679_v46  ;;  %v1977_v46 = vld [vmem:[#allocation8 + $0x88] sm:$0xff] }
 0x1fc   :  { %1682 = vmatprep.mubr.f32.mxu0 %v5364_v0  ;;  %v4703_v47 = vpack.c.bf16 %v1977_v46, %v1976_v45  ;;  %v2140_v45 = vld [vmem:[#allocation8 + $0x90] sm:$0xff]  ;;  %v2141_v46 = vld [vmem:[#allocation8 + $0x98] sm:$0xff] }
 0x1fe   :  { %4704 = vmatpush1.bf16.msra.mxu1 %v4703_v47 }
 0x1ff   :  { %3945 = vmatmul.mubr.msk.f32.gmra.mrb[32].mxu0 %vm168_vm3, %v5695_v52  ;;  %4705 = vmatprep.subr.bf16.mxu1 %v5366_v29  ;;  %v6053_v52 = vpop.f32.mrb[0].mxu1 }
 0x200   :  { %1688 = vmatprep.mubr.f32.mxu0 %v5364_v0  ;;  %v6055_v56 = vpop.f32.mrb[1].mxu1 }
 0x201   :  { %v6057_v57 = vpop.f32.mrb[2].mxu1 }
 0x203   :  { %3946 = vmatmul.mubr.msk.f32.gmra.mrb[34].mxu0 %vm168_vm3, %v5709_v58  ;;  %v6059_v58 = vpop.f32.mrb[3].mxu1 }
 0x204   :  { %1694 = vmatprep.mubr.f32.mxu0 %v5364_v0  ;;  %v6061_v59 = vpop.f32.mrb[4].mxu1 }
 0x205   :  { %v6063_v60 = vpop.f32.mrb[5].mxu1 }
 0x206   :  { %v6065_v61 = vpop.f32.mrb[6].mxu1 }
 0x207   :  { %3947 = vmatmul.mubr.msk.f32.gmra.mrb[36].mxu0 %vm168_vm3, %v5721_v63  ;;  %v6067_v62 = vpop.f32.mrb[7].mxu1 }
 0x208   :  { %1700 = vmatprep.mubr.f32.mxu0 %v5364_v0  ;;  %v6069_v63 = vpop.f32.mrb[8].mxu1 }
 0x20b   :  { %3948 = vmatmul.mubr.msk.f32.gmra.mrb[38].mxu0 %vm168_vm3, %v5734_v1  ;;  %v6071_v1 = vpop.f32.mrb[9].mxu1 }
 0x20c   :  { %1706 = vmatprep.mubr.f32.mxu0 %v5364_v0 }
 0x20f   :  { %3949 = vmatmul.mubr.msk.f32.gmra.mrb[40].mxu0 %vm168_vm3, %v5778_v2  ;;  %v6073_v2 = vpop.f32.mrb[10].mxu1 }
 0x210   :  { %1712 = vmatprep.mubr.f32.mxu0 %v5364_v0  ;;  %v6075_v3 = vpop.f32.mrb[11].mxu1 }
 0x211   :  { %v6077_v4 = vpop.f32.mrb[12].mxu1 }
 0x212   :  { %v6079_v5 = vpop.f32.mrb[13].mxu1 }
 0x213   :  { %3950 = vmatmul.mubr.msk.f32.gmra.mrb[42].mxu0 %vm168_vm3, %v5888_v16  ;;  %v6081_v6 = vpop.f32.mrb[14].mxu1 }
 0x214   :  { %1718 = vmatprep.mubr.f32.mxu0 %v5364_v0  ;;  %v6083_v7 = vpop.f32.mrb[15].mxu1 }
 0x215   :  { %v6085_v8 = vpop.f32.mrb[16].mxu1 }
 0x216   :  { %v6087_v9 = vpop.f32.mrb[17].mxu1 }
 0x217   :  { %3951 = vmatmul.mubr.msk.f32.gmra.mrb[44].mxu0 %vm168_vm3, %v1066_v55  ;;  %v6089_v11 = vpop.f32.mrb[18].mxu1 }
 0x218   :  { %1724 = vmatprep.mubr.f32.mxu0 %v5364_v0  ;;  %v6091_v12 = vpop.f32.mrb[19].mxu1 }
 0x219   :  { %v6093_v13 = vpop.f32.mrb[20].mxu1 }
 0x21a   :  { %v6095_v14 = vpop.f32.mrb[21].mxu1 }
 0x21b   :  { %3952 = vmatmul.mubr.msk.f32.gmra.mrb[46].mxu0 %vm168_vm3, %v1434_v38  ;;  %v6097_v15 = vpop.f32.mrb[22].mxu1 }
 0x21c   :  { %v6099_v16 = vpop.f32.mrb[23].mxu1 }
 0x21d   :  { %v6101_v17 = vpop.f32.mrb[24].mxu1 }
 0x21e   :  { %v6103_v18 = vpop.f32.mrb[25].mxu1 }
 0x21f   :  { %v6105_v19 = vpop.f32.mrb[26].mxu1 }
 0x220   :  { %v6107_v20 = vpop.f32.mrb[27].mxu1 }
 0x292   :  { %v1588_v26 = vpop.f32.mrb[0].mxu0 }
 0x293   :  { %v1590_v30 = vpop.f32.mrb[1].mxu0  ;;  %v1791_v31 = vadd.f32 %v6112_v10, %v1588_v26  ;;  %v4706_v26 = vpack.c.bf16 %v2141_v46, %v2140_v45  ;;  %v2146_v46 = vld [vmem:[#allocation8 + $0xc0] sm:$0xff] }
 0x294   :  { %v1792_v33 = vadd.f32 %v6114_v27, %v1590_v30 }
 0x295   :  { %v1839_v53 = vmax.f32 %v1791_v31, 0.0 }
 0x296   :  { %v1594_v48 = vpop.f32.mrb[2].mxu0  ;;  %v1840_v55 = vmax.f32 %v1792_v33, 0.0  ;;  %v2142_v33 = vld [vmem:[#allocation8 + $0xa0] sm:$0xff] }
 0x297   :  { %v1793_v49 = vadd.f32 %v6112_v10, %v1594_v48  ;;  %v1596_v50 = vpop.f32.mrb[3].mxu0  ;;  %v2143_v48 = vld [vmem:[#allocation8 + $0xa8] sm:$0xff] }
 0x298   :  { %v1794_v51 = vadd.f32 %v6114_v27, %v1596_v50 }
 0x299   :  { %v1841_v54 = vmax.f32 %v1793_v49, 0.0 }
 0x29a   :  { %v1842_v28 = vmax.f32 %v1794_v51, 0.0  ;;  %v1600_v32 = vpop.f32.mrb[4].mxu0 }
 0x29b   :  { %v6120_v34 = vmax.f32 %v1839_v53, %v1841_v54  ;;  %v1602_v35 = vpop.f32.mrb[5].mxu0  ;;  %v1795_v37 = vadd.f32 %v6112_v10, %v1600_v32 }
 0x29c   :  { %v1888_v36 = vmax.f32 %v1840_v55, %v1842_v28  ;;  %v1796_v38 = vadd.f32 %v6114_v27, %v1602_v35  ;;  %v4709_v55 = vpack.c.bf16 %v2143_v48, %v2142_v33  ;;  %v2144_v35 = vld [vmem:[#allocation8 + $0xb0] sm:$0xff] }
 0x29d   :  { %v1843_v43 = vmax.f32 %v1795_v37, 0.0 }
 0x29e   :  { %1891 = vst.msk [vmem:[#allocation2 + $0x8] sm:$0xff] %vm1890_vm4, %v1888_v36  ;;  %v1606_v39 = vpop.f32.mrb[6].mxu0  ;;  %v1844_v47 = vmax.f32 %v1796_v38, 0.0  ;;  %v2145_v36 = vld [vmem:[#allocation8 + $0xb8] sm:$0xff] }
 0x29f   :  { %v1797_v40 = vadd.f32 %v6112_v10, %v1606_v39  ;;  %v1608_v41 = vpop.f32.mrb[7].mxu0 }
 0x2a0   :  { %v1798_v42 = vadd.f32 %v6114_v27, %v1608_v41 }
 0x2a1   :  { %v1845_v44 = vmax.f32 %v1797_v40, 0.0 }
 0x2a2   :  { %v1846_v21 = vmax.f32 %v1798_v42, 0.0  ;;  %v1612_v22 = vpop.f32.mrb[8].mxu0 }
 0x2a3   :  { %v6127_v23 = vmax.f32 %v1843_v43, %v1845_v44  ;;  %v1614_v24 = vpop.f32.mrb[9].mxu0  ;;  %v1799_v30 = vadd.f32 %v6112_v10, %v1612_v22  ;;  %v4712_v43 = vpack.c.bf16 %v2145_v36, %v2144_v35 }
 0x2a4   :  { %v1893_v25 = vmax.f32 %v1844_v47, %v1846_v21  ;;  %v1800_v49 = vadd.f32 %v6114_v27, %v1614_v24  ;;  %v2147_v47 = vld [vmem:[#allocation8 + $0xc8] sm:$0xff] }
 0x2a5   :  { %v6130_v31 = vld [vmem:[#allocation2 + $0x8] sm:$0xff]  ;;  %v1847_v28 = vmax.f32 %v1799_v30, 0.0  ;;  %v4715_v30 = vpack.c.bf16 %v2147_v47, %v2146_v46 }
 0x2a6   :  { %1895 = vst.msk [vmem:[#allocation2 + $0x18] sm:$0xff] %vm1890_vm4, %v1893_v25  ;;  %v1618_v50 = vpop.f32.mrb[10].mxu0  ;;  %3953 = vmatprep.mubr.msk.f32.mxu1 %vm1890_vm4, %v6130_v31  ;;  %v1848_v37 = vmax.f32 %v1800_v49, 0.0  ;;  %v2148_v49 = vld [vmem:[#allocation8 + $0xd0] sm:$0xff] }
 0x2a7   :  { %v1801_v51 = vadd.f32 %v6112_v10, %v1618_v50  ;;  %v1620_v53 = vpop.f32.mrb[11].mxu0  ;;  %2079 = vmatmul.mubr.f32.vlgmr.msra.gmra.mrb[28].mxu1 %v6120_v34  ;;  %v2149_v50 = vld [vmem:[#allocation8 + $0xd8] sm:$0xff] }
 0x2a8   :  { %v1802_v54 = vadd.f32 %v6114_v27, %v1620_v53  ;;  %4707 = vmatpush1.bf16.msra.mxu1 %v4706_v26  ;;  %v4718_v35 = vpack.c.bf16 %v2149_v50, %v2148_v49 }
 0x2a9   :  { %v1849_v32 = vmax.f32 %v1801_v51, 0.0  ;;  %4708 = vmatprep.subr.bf16.mxu1 %v5366_v29 }
 0x2aa   :  { %v1850_v38 = vmax.f32 %v1802_v54, 0.0  ;;  %v1624_v39 = vpop.f32.mrb[12].mxu0 }
 0x2ab   :  { %v6140_v40 = vmax.f32 %v1847_v28, %v1849_v32  ;;  %v1626_v41 = vpop.f32.mrb[13].mxu0  ;;  %v1803_v44 = vadd.f32 %v6112_v10, %v1624_v39  ;;  %v2151_v39 = vld [vmem:[#allocation8 + $0xe8] sm:$0xff] }
 0x2ac   :  { %v1897_v42 = vmax.f32 %v1848_v37, %v1850_v38  ;;  %4710 = vmatpush1.bf16.msra.mxu1 %v4709_v55  ;;  %v1804_v21 = vadd.f32 %v6114_v27, %v1626_v41  ;;  %v2150_v38 = vld [vmem:[#allocation8 + $0xe0] sm:$0xff] }
 0x2ad   :  { %v6143_v45 = vld [vmem:[#allocation2 + $0x18] sm:$0xff]  ;;  %4711 = vmatprep.subr.bf16.mxu1 %v5366_v29  ;;  %v1851_v33 = vmax.f32 %v1803_v44, 0.0  ;;  %v4721_v47 = vpack.c.bf16 %v2151_v39, %v2150_v38 }
 0x2ae   :  { %1899 = vst.msk [vmem:[#allocation2 + $0x28] sm:$0xff] %vm1890_vm4, %v1897_v42  ;;  %v1630_v22 = vpop.f32.mrb[14].mxu0  ;;  %3954 = vmatprep.mubr.msk.f32.mxu1 %vm1890_vm4, %v6143_v45  ;;  %v1852_v51 = vmax.f32 %v1804_v21, 0.0 }
 0x2af   :  { %v1805_v24 = vadd.f32 %v6112_v10, %v1630_v22  ;;  %v1632_v25 = vpop.f32.mrb[15].mxu0  ;;  %2084 = vmatmul.mubr.f32.gmra.mrb[30].mxu1 %v6127_v23 }
 0x2b0   :  { %v1806_v26 = vadd.f32 %v6114_v27, %v1632_v25  ;;  %4713 = vmatpush1.bf16.msra.mxu1 %v4712_v43  ;;  %v2153_v25 = vld [vmem:[#allocation8 + $0xf8] sm:$0xff] }
 0x2b1   :  { %v1853_v48 = vmax.f32 %v1805_v24, 0.0  ;;  %4714 = vmatprep.subr.bf16.mxu1 %v5366_v29  ;;  %v2152_v24 = vld [vmem:[#allocation8 + $0xf0] sm:$0xff] }
 0x2b2   :  { %v1854_v53 = vmax.f32 %v1806_v26, 0.0  ;;  %v1636_v54 = vpop.f32.mrb[16].mxu0 }
 0x2b3   :  { %v6154_v55 = vmax.f32 %v1851_v33, %v1853_v48  ;;  %v1638_v28 = vpop.f32.mrb[17].mxu0  ;;  %v1807_v36 = vadd.f32 %v6112_v10, %v1636_v54  ;;  %v4724_v54 = vpack.c.bf16 %v2153_v25, %v2152_v24 }
 0x2b4   :  { %v1901_v32 = vmax.f32 %v1852_v51, %v1854_v53  ;;  %4716 = vmatpush1.bf16.msra.mxu1 %v4715_v30  ;;  %v1808_v41 = vadd.f32 %v6114_v27, %v1638_v28 }
 0x2b5   :  { %v6157_v37 = vld [vmem:[#allocation2 + $0x28] sm:$0xff]  ;;  %4717 = vmatprep.subr.bf16.mxu1 %v5366_v29  ;;  %v1855_v21 = vmax.f32 %v1807_v36, 0.0 }
 0x2b6   :  { %1903 = vst.msk [vmem:[#allocation2 + $0x38] sm:$0xff] %vm1890_vm4, %v1901_v32  ;;  %v1642_v42 = vpop.f32.mrb[18].mxu0  ;;  %3955 = vmatprep.mubr.msk.f32.mxu1 %vm1890_vm4, %v6157_v37  ;;  %v1856_v26 = vmax.f32 %v1808_v41, 0.0  ;;  %v2154_v32 = vld [vmem:[#allocation8 + $0x100] sm:$0xff] }
 0x2b7   :  { %v1809_v43 = vadd.f32 %v6112_v10, %v1642_v42  ;;  %v1644_v44 = vpop.f32.mrb[19].mxu0  ;;  %2089 = vmatmul.mubr.f32.gmra.mrb[32].mxu1 %v6140_v40 }
 0x2b8   :  { %v1810_v46 = vadd.f32 %v6114_v27, %v1644_v44  ;;  %4719 = vmatpush1.bf16.msra.mxu1 %v4718_v35  ;;  %v2155_v35 = vld [vmem:[#allocation8 + $0x108] sm:$0xff]  ;;  %v2156_v44 = vld [vmem:[#allocation8 + $0x110] sm:$0xff] }
 0x2b9   :  { %v1857_v22 = vmax.f32 %v1809_v43, 0.0  ;;  %4720 = vmatprep.subr.bf16.mxu1 %v5366_v29  ;;  %v4727_v42 = vpack.c.bf16 %v2155_v35, %v2154_v32 }
 0x2ba   :  { %v1858_v30 = vmax.f32 %v1810_v46, 0.0  ;;  %v1648_v33 = vpop.f32.mrb[20].mxu0  ;;  %v2157_v46 = vld [vmem:[#allocation8 + $0x118] sm:$0xff] }
 0x2bb   :  { %v6168_v48 = vmax.f32 %v1855_v21, %v1857_v22  ;;  %v4976_v49 = vadd.f32 %v1648_v33, %v6053_v52  ;;  %v1650_v50 = vpop.f32.mrb[21].mxu0  ;;  %v4730_v33 = vpack.c.bf16 %v2157_v46, %v2156_v44 }
 0x2bc   :  { %v1905_v51 = vmax.f32 %v1856_v26, %v1858_v30  ;;  %v4977_v53 = vadd.f32 %v1650_v50, %v6055_v56  ;;  %4722 = vmatpush1.bf16.msra.mxu1 %v4721_v47 }
 0x2bd   :  { %v6172_v28 = vld [vmem:[#allocation2 + $0x38] sm:$0xff]  ;;  %4723 = vmatprep.subr.bf16.mxu1 %v5366_v29  ;;  %v1811_v52 = vadd.f32 %v4976_v49, %v6112_v10 }
 0x2be   :  { %1907 = vst.msk [vmem:[#allocation2 + $0x48] sm:$0xff] %vm1890_vm4, %v1905_v51  ;;  %v1654_v36 = vpop.f32.mrb[22].mxu0  ;;  %3956 = vmatprep.mubr.msk.f32.mxu1 %vm1890_vm4, %v6172_v28  ;;  %v1812_v56 = vadd.f32 %v4977_v53, %v6114_v27 }
 0x2bf   :  { %v4978_v38 = vadd.f32 %v1654_v36, %v6057_v57  ;;  %v1656_v39 = vpop.f32.mrb[23].mxu0  ;;  %2094 = vmatmul.mubr.f32.gmra.mrb[34].mxu1 %v6154_v55  ;;  %v1859_v22 = vmax.f32 %v1811_v52, 0.0 }
 0x2c0   :  { %v4979_v41 = vadd.f32 %v1656_v39, %v6059_v58  ;;  %4725 = vmatpush1.bf16.msra.mxu1 %v4724_v54  ;;  %v1860_v26 = vmax.f32 %v1812_v56, 0.0 }
 0x2c1   :  { %v1813_v43 = vadd.f32 %v4978_v38, %v6112_v10  ;;  %4726 = vmatprep.subr.bf16.mxu1 %v5366_v29 }
 0x2c2   :  { %v1814_v47 = vadd.f32 %v4979_v41, %v6114_v27  ;;  %v1660_v21 = vpop.f32.mrb[24].mxu0 }
 0x2c3   :  { %v1861_v57 = vmax.f32 %v1813_v43, 0.0  ;;  %v4980_v24 = vadd.f32 %v1660_v21, %v6061_v59  ;;  %v1662_v25 = vpop.f32.mrb[25].mxu0 }
 0x2c4   :  { %v1862_v30 = vmax.f32 %v1814_v47, 0.0  ;;  %v4981_v58 = vadd.f32 %v1662_v25, %v6063_v60  ;;  %4728 = vmatpush1.bf16.msra.mxu1 %v4727_v42 }
 0x2c5   :  { %v6188_v49 = vmax.f32 %v1859_v22, %v1861_v57  ;;  %v6190_v50 = vld [vmem:[#allocation2 + $0x48] sm:$0xff]  ;;  %4729 = vmatprep.subr.bf16.mxu1 %v5366_v29  ;;  %v1815_v59 = vadd.f32 %v4980_v24, %v6112_v10 }
 0x2c6   :  { %v1909_v51 = vmax.f32 %v1860_v26, %v1862_v30  ;;  %v1666_v53 = vpop.f32.mrb[26].mxu0  ;;  %3957 = vmatprep.mubr.msk.f32.mxu1 %vm1890_vm4, %v6190_v50  ;;  %v1816_v60 = vadd.f32 %v4981_v58, %v6114_v27 }
 0x2c7   :  { %v4982_v54 = vadd.f32 %v1666_v53, %v6065_v61  ;;  %v1668_v32 = vpop.f32.mrb[27].mxu0  ;;  %2099 = vmatmul.mubr.f32.gmra.mrb[36].mxu1 %v6168_v48  ;;  %v1863_v39 = vmax.f32 %v1815_v59, 0.0 }
 0x2c8   :  { %1911 = vst.msk [vmem:[#allocation2 + $0x58] sm:$0xff] %vm1890_vm4, %v1909_v51  ;;  %v4983_v35 = vadd.f32 %v1668_v32, %v6067_v62  ;;  %4731 = vmatpush1.bf16.msra.mxu1 %v4730_v33  ;;  %v1864_v42 = vmax.f32 %v1816_v60, 0.0 }
 0x2c9   :  { %v1817_v36 = vadd.f32 %v4982_v54, %v6112_v10 }
 0x2ca   :  { %v1818_v52 = vadd.f32 %v4983_v35, %v6114_v27  ;;  %v1672_v38 = vpop.f32.mrb[28].mxu0 }
 0x2cb   :  { %v1865_v56 = vmax.f32 %v1817_v36, 0.0  ;;  %v4984_v41 = vadd.f32 %v1672_v38, %v6069_v63  ;;  %v1674_v61 = vpop.f32.mrb[29].mxu0 }
 0x2cc   :  { %v1866_v43 = vmax.f32 %v1818_v52, 0.0  ;;  %v4985_v44 = vadd.f32 %v1674_v61, %v6071_v1 }
 0x2cd   :  { %v6205_v46 = vmax.f32 %v1863_v39, %v1865_v56  ;;  %v1819_v62 = vadd.f32 %v4984_v41, %v6112_v10 }
 0x2ce   :  { %v1913_v47 = vmax.f32 %v1864_v42, %v1866_v43  ;;  %v1678_v21 = vpop.f32.mrb[30].mxu0  ;;  %v1820_v63 = vadd.f32 %v4985_v44, %v6114_v27 }
 0x2cf   :  { %v4986_v22 = vadd.f32 %v1678_v21, %v6073_v2  ;;  %v1680_v57 = vpop.f32.mrb[31].mxu0  ;;  %v6209_v24 = vld [vmem:[#allocation2 + $0x58] sm:$0xff]  ;;  %v1867_v2 = vmax.f32 %v1819_v62, 0.0 }
 0x2d0   :  { %1915 = vst.msk [vmem:[#allocation2 + $0x68] sm:$0xff] %vm1890_vm4, %v1913_v47  ;;  %v4987_v25 = vadd.f32 %v1680_v57, %v6075_v3  ;;  %3958 = vmatprep.mubr.msk.f32.mxu1 %vm1890_vm4, %v6209_v24  ;;  %v1868_v53 = vmax.f32 %v1820_v63, 0.0 }
 0x2d1   :  { %v1821_v1 = vadd.f32 %v4986_v22, %v6112_v10  ;;  %2104 = vmatmul.mubr.f32.gmra.mrb[38].mxu1 %v6188_v49 }
 0x2d2   :  { %v1822_v26 = vadd.f32 %v4987_v25, %v6114_v27  ;;  %v1684_v30 = vpop.f32.mrb[32].mxu0 }
 0x2d3   :  { %v1869_v58 = vmax.f32 %v1821_v1, 0.0  ;;  %v4988_v33 = vadd.f32 %v1684_v30, %v6077_v4  ;;  %v1686_v51 = vpop.f32.mrb[33].mxu0 }
 0x2d4   :  { %v1870_v59 = vmax.f32 %v1822_v26, 0.0  ;;  %v4989_v54 = vadd.f32 %v1686_v51, %v6079_v5 }
 0x2d5   :  { %v6221_v3 = vmax.f32 %v1867_v2, %v1869_v58  ;;  %v1823_v35 = vadd.f32 %v4988_v33, %v6112_v10 }
 0x2d6   :  { %v1917_v32 = vmax.f32 %v1868_v53, %v1870_v59  ;;  %v1690_v60 = vpop.f32.mrb[34].mxu0  ;;  %v1824_v4 = vadd.f32 %v4989_v54, %v6114_v27 }
 0x2d7   :  { %v4990_v36 = vadd.f32 %v1690_v60, %v6081_v6  ;;  %v1692_v52 = vpop.f32.mrb[35].mxu0  ;;  %v6225_v38 = vld [vmem:[#allocation2 + $0x68] sm:$0xff]  ;;  %v1871_v6 = vmax.f32 %v1823_v35, 0.0 }
 0x2d8   :  { %1919 = vst.msk [vmem:[#allocation2 + $0x78] sm:$0xff] %vm1890_vm4, %v1917_v32  ;;  %v4991_v39 = vadd.f32 %v1692_v52, %v6083_v7  ;;  %3959 = vmatprep.mubr.msk.f32.mxu1 %vm1890_vm4, %v6225_v38  ;;  %v1872_v44 = vmax.f32 %v1824_v4, 0.0 }
 0x2d9   :  { %v1825_v5 = vadd.f32 %v4990_v36, %v6112_v10  ;;  %2109 = vmatmul.mubr.f32.gmra.mrb[40].mxu1 %v6205_v46 }
 0x2da   :  { %v1826_v56 = vadd.f32 %v4991_v39, %v6114_v27  ;;  %v1696_v41 = vpop.f32.mrb[36].mxu0 }
 0x2db   :  { %v1873_v61 = vmax.f32 %v1825_v5, 0.0  ;;  %v4992_v42 = vadd.f32 %v1696_v41, %v6085_v8  ;;  %v1698_v43 = vpop.f32.mrb[37].mxu0 }
 0x2dc   :  { %v1874_v47 = vmax.f32 %v1826_v56, 0.0  ;;  %v4993_v21 = vadd.f32 %v1698_v43, %v6087_v9 }
 0x2dd   :  { %v6237_v7 = vmax.f32 %v1871_v6, %v1873_v61  ;;  %v1827_v57 = vadd.f32 %v4992_v42, %v6112_v10 }
 0x2de   :  { %v1921_v62 = vmax.f32 %v1872_v44, %v1874_v47  ;;  %v1702_v22 = vpop.f32.mrb[38].mxu0  ;;  %v1828_v8 = vadd.f32 %v4993_v21, %v6114_v27 }
 0x2df   :  { %v4994_v63 = vadd.f32 %v1702_v22, %v6089_v11  ;;  %v1704_v25 = vpop.f32.mrb[39].mxu0  ;;  %v6241_v1 = vld [vmem:[#allocation2 + $0x78] sm:$0xff]  ;;  %v1875_v11 = vmax.f32 %v1827_v57, 0.0 }
 0x2e0   :  { %1923 = vst.msk [vmem:[#allocation2 + $0x88] sm:$0xff] %vm1890_vm4, %v1921_v62  ;;  %v4995_v26 = vadd.f32 %v1704_v25, %v6091_v12  ;;  %3960 = vmatprep.mubr.msk.f32.mxu1 %vm1890_vm4, %v6241_v1  ;;  %v1876_v53 = vmax.f32 %v1828_v8, 0.0 }
 0x2e1   :  { %v1829_v9 = vadd.f32 %v4994_v63, %v6112_v10  ;;  %2114 = vmatmul.mubr.f32.gmra.mrb[42].mxu1 %v6221_v3 }
 0x2e2   :  { %v1830_v30 = vadd.f32 %v4995_v26, %v6114_v27  ;;  %v1708_v2 = vpop.f32.mrb[40].mxu0 }
 0x2e3   :  { %v1877_v58 = vmax.f32 %v1829_v9, 0.0  ;;  %v4996_v33 = vadd.f32 %v1708_v2, %v6093_v13  ;;  %v1710_v51 = vpop.f32.mrb[41].mxu0 }
 0x2e4   :  { %v1878_v59 = vmax.f32 %v1830_v30, 0.0  ;;  %v4997_v54 = vadd.f32 %v1710_v51, %v6095_v14 }
 0x2e5   :  { %v6253_v12 = vmax.f32 %v1875_v11, %v1877_v58  ;;  %v1831_v35 = vadd.f32 %v4996_v33, %v6112_v10 }
 0x2e6   :  { %v1925_v32 = vmax.f32 %v1876_v53, %v1878_v59  ;;  %v1714_v60 = vpop.f32.mrb[42].mxu0  ;;  %v1832_v39 = vadd.f32 %v4997_v54, %v6114_v27 }
 0x2e7   :  { %v4998_v36 = vadd.f32 %v1714_v60, %v6097_v15  ;;  %v1716_v52 = vpop.f32.mrb[43].mxu0  ;;  %v1953_v4 = vld [vmem:[#allocation2 + $0x88] sm:$0xff]  ;;  %v1879_v41 = vmax.f32 %v1831_v35, 0.0 }
 0x2e8   :  { %1927 = vst.msk [vmem:[#allocation2 + $0x98] sm:$0xff] %vm1890_vm4, %v1925_v32  ;;  %v4999_v13 = vadd.f32 %v1716_v52, %v6099_v16  ;;  %3961 = vmatprep.mubr.msk.f32.mxu1 %vm1890_vm4, %v1953_v4  ;;  %v1880_v42 = vmax.f32 %v1832_v39, 0.0 }
 0x2e9   :  { %v1833_v14 = vadd.f32 %v4998_v36, %v6112_v10  ;;  %2119 = vmatmul.mubr.f32.gmra.mrb[44].mxu1 %v6237_v7 }
 0x2ea   :  { %v1834_v5 = vadd.f32 %v4999_v13, %v6114_v27  ;;  %v1720_v56 = vpop.f32.mrb[44].mxu0 }
 0x2eb   :  { %v1881_v6 = vmax.f32 %v1833_v14, 0.0  ;;  %v5000_v15 = vadd.f32 %v1720_v56, %v6101_v17  ;;  %v1722_v61 = vpop.f32.mrb[45].mxu0 }
 0x2ec   :  { %v1882_v43 = vmax.f32 %v1834_v5, 0.0  ;;  %v5001_v44 = vadd.f32 %v1722_v61, %v6103_v18 }
 0x2ed   :  { %v1928_v47 = vmax.f32 %v1879_v41, %v1881_v6  ;;  %v1835_v62 = vadd.f32 %v5000_v15, %v6112_v10 }
 0x2ee   :  { %v1929_v16 = vmax.f32 %v1880_v42, %v1882_v43  ;;  %v1726_v21 = vpop.f32.mrb[46].mxu0  ;;  %v1836_v25 = vadd.f32 %v5001_v44, %v6114_v27 }
 0x2ef   :  { %v5002_v22 = vadd.f32 %v1726_v21, %v6105_v19  ;;  %v1728_v57 = vpop.f32.mrb[47].mxu0  ;;  %v1955_v63 = vld [vmem:[#allocation2 + $0x98] sm:$0xff]  ;;  %v1883_v26 = vmax.f32 %v1835_v62, 0.0 }
 0x2f0   :  { %1931 = vst.msk [vmem:[#allocation2 + $0xa8] sm:$0xff] %vm1890_vm4, %v1929_v16  ;;  %v5003_v17 = vadd.f32 %v1728_v57, %v6107_v20  ;;  %3962 = vmatprep.mubr.msk.f32.mxu1 %vm1890_vm4, %v1955_v63  ;;  %v1884_v30 = vmax.f32 %v1836_v25, 0.0 }
 0x2f1   :  { %v1837_v8 = vadd.f32 %v5002_v22, %v6112_v10  ;;  %2124 = vmatmul.mubr.f32.gmra.mrb[46].mxu1 %v6253_v12  ;;  %v3977_v10 = vld [vmem:[%s6630_s4 + $0x48] sm:$0xff] }
 0x2f2   :  { %v1838_v18 = vadd.f32 %v5003_v17, %v6114_v27  ;;  %v3978_v27 = vld [vmem:[%s6630_s4 + $0x50] sm:$0xff] }
 0x2f3   :  { %v1885_v9 = vmax.f32 %v1837_v8, 0.0 }
 0x2f4   :  { %v1886_v19 = vmax.f32 %v1838_v18, 0.0  ;;  %v2318_v18 = vld [vmem:[%s6630_s4 + $0x10] sm:$0xff] }
 0x2f5   :  { %v1932_v2 = vmax.f32 %v1883_v26, %v1885_v9  ;;  %v2319_v26 = vld [vmem:[%s6630_s4 + $0x18] sm:$0xff] }
 0x2f6   :  { %v1933_v11 = vmax.f32 %v1884_v30, %v1886_v19 }
 0x2f7   :  { %v1957_v58 = vld [vmem:[#allocation2 + $0xa8] sm:$0xff] }
 0x2f8   :  { %1935 = vst.msk [vmem:[#allocation2 + $0xb8] sm:$0xff] %vm1890_vm4, %v1933_v11  ;;  %3963 = vmatprep.mubr.msk.f32.mxu1 %vm1890_vm4, %v1957_v58 }
 0x2f9   :  { %2129 = vmatmul.mubr.f32.gmra.mrb[48].mxu1 %v1928_v47 }
 0x2ff   :  { %v1959_v20 = vld [vmem:[#allocation2 + $0xb8] sm:$0xff] }
 0x300   :  { %3964 = vmatprep.mubr.msk.f32.mxu1 %vm1890_vm4, %v1959_v20 }
 0x301   :  { %2134 = vmatmul.mubr.f32.gmra.mrb[50].mxu1 %v1932_v2 }
 0x302   :  { %3965 = vmatprep.mubr.msk.f32.mxu1 %vm1890_vm4, %v6130_v31  ;;  %v3980_v31 = vld [vmem:[%s6630_s4 + $0x60] sm:$0xff] }
 0x305   :  { %2223 = vmatmul.mubr.f32.vlgmr.msra.gmra.mrb[52].mxu1 %v6120_v34  ;;  %v4732_v34 = vpack.c.bf16 %v3978_v27, %v3977_v10 }
 0x306   :  { %3966 = vmatprep.mubr.msk.f32.mxu1 %vm1890_vm4, %v6143_v45  ;;  %v3981_v45 = vld [vmem:[%s6630_s4 + $0x68] sm:$0xff] }
 0x307   :  { %4733 = vmatprep.subr.bf16.mxu1 %v4732_v34 }
 0x308   :  { %4735 = vmatpush3.bf16.msra.mxu1 %v4732_v34 }
 0x309   :  { %2228 = vmatmul.mubr.f32.gmra.mrb[54].mxu1 %v6127_v23  ;;  %v3979_v23 = vld [vmem:[%s6630_s4 + $0x58] sm:$0xff] }
 0x30a   :  { %3967 = vmatprep.mubr.msk.f32.mxu1 %vm1890_vm4, %v6157_v37 }
 0x30d   :  { %2233 = vmatmul.mubr.f32.gmra.mrb[56].mxu1 %v6140_v40  ;;  %v4736_v40 = vpack.c.bf16 %v3980_v31, %v3979_v23 }
 0x30e   :  { %3968 = vmatprep.mubr.msk.f32.mxu1 %vm1890_vm4, %v6172_v28  ;;  %v3984_v28 = vld [vmem:[%s6630_s4 + $0x80] sm:$0xff] }
 0x30f   :  { %4737 = vmatprep.subr.bf16.mxu1 %v4736_v40 }
 0x310   :  { %4739 = vmatpush3.bf16.msra.mxu1 %v4736_v40  ;;  %v2322_v40 = vld [vmem:[%s6630_s4 + $0x30] sm:$0xff] }
 0x311   :  { %2238 = vmatmul.mubr.f32.gmra.mrb[58].mxu1 %v6154_v55  ;;  %v3982_v55 = vld [vmem:[%s6630_s4 + $0x70] sm:$0xff] }
 0x312   :  { %3969 = vmatprep.mubr.msk.f32.mxu1 %vm1890_vm4, %v6190_v50  ;;  %v4740_v37 = vpack.c.bf16 %v3982_v55, %v3981_v45  ;;  %v3985_v50 = vld [vmem:[%s6630_s4 + $0x88] sm:$0xff]  ;;  %v2323_v45 = vld [vmem:[%s6630_s4 + $0x38] sm:$0xff] }
 0x314   :  { %4741 = vmatprep.subr.bf16.mxu1 %v4740_v37 }
 0x315   :  { %2243 = vmatmul.mubr.f32.gmra.mrb[60].mxu1 %v6168_v48  ;;  %v3983_v48 = vld [vmem:[%s6630_s4 + $0x78] sm:$0xff] }
 0x316   :  { %3970 = vmatprep.mubr.msk.f32.mxu1 %vm1890_vm4, %v6209_v24  ;;  %4743 = vmatpush3.bf16.msra.mxu1 %v4740_v37  ;;  %v2317_v24 = vld [vmem:[%s6630_s4 + $0x8] sm:$0xff] }
 0x319   :  { %2248 = vmatmul.mubr.f32.gmra.mrb[62].mxu1 %v6188_v49  ;;  %v4744_v49 = vpack.c.bf16 %v3984_v28, %v3983_v48  ;;  %v4760_v28 = vpack.c.bf16 %v2323_v45, %v2322_v40  ;;  %v4040_v40 = vld [vmem:[%s6630_s4 + $0x140] sm:$0xff] }
 0x31a   :  { %3971 = vmatprep.mubr.msk.f32.mxu1 %vm1890_vm4, %v6225_v38 }
 0x31b   :  { %4745 = vmatprep.subr.bf16.mxu1 %v4744_v49 }
 0x31c   :  { %4747 = vmatpush3.bf16.msra.mxu1 %v4744_v49 }
 0x31d   :  { %2253 = vmatmul.mubr.f32.gmra.mrb[64].mxu1 %v6205_v46  ;;  %4272 = vmatprep.subr.mxu1 %v3985_v50  ;;  %v2316_v46 = vld [vmem:[%s6630_s4] sm:$0xff] }
 0x31e   :  { %3972 = vmatprep.mubr.msk.f32.mxu1 %vm1890_vm4, %v6241_v1 }
 0x320   :  { %4273 = vmatpush3.msra.mxu1 %v3985_v50 }
 0x321   :  { %2258 = vmatmul.mubr.f32.gmra.mrb[66].mxu1 %v6221_v3  ;;  %v4748_v3 = vpack.c.bf16 %v2317_v24, %v2316_v46 }
 0x322   :  { %3973 = vmatprep.mubr.msk.f32.mxu1 %vm1890_vm4, %v1953_v4 }
 0x323   :  { %4749 = vmatprep.subr.bf16.mxu1 %v4748_v3 }
 0x325   :  { %2263 = vmatmul.mubr.f32.gmra.mrb[68].mxu1 %v6237_v7 }
 0x326   :  { %3974 = vmatprep.mubr.msk.f32.mxu1 %vm1890_vm4, %v1955_v63 }
 0x329   :  { %2268 = vmatmul.mubr.f32.gmra.mrb[70].mxu1 %v6253_v12 }
 0x32a   :  { %3975 = vmatprep.mubr.msk.f32.mxu1 %vm1890_vm4, %v1957_v58  ;;  %v2320_v58 = vld [vmem:[%s6630_s4 + $0x20] sm:$0xff] }
 0x32d   :  { %2273 = vmatmul.mubr.f32.gmra.mrb[72].mxu1 %v1928_v47 }
 0x32e   :  { %3976 = vmatprep.mubr.msk.f32.mxu1 %vm1890_vm4, %v1959_v20  ;;  %v2321_v20 = vld [vmem:[%s6630_s4 + $0x28] sm:$0xff] }
 0x32f   :  { %v4756_v23 = vpack.c.bf16 %v2321_v20, %v2320_v58  ;;  %v4036_v58 = vld [vmem:[%s6630_s4 + $0x120] sm:$0xff]  ;;  %v4037_v20 = vld [vmem:[%s6630_s4 + $0x128] sm:$0xff] }
 0x331   :  { %2278 = vmatmul.mubr.f32.gmra.mrb[74].mxu1 %v1932_v2  ;;  %v4752_v2 = vpack.c.bf16 %v2319_v26, %v2318_v18  ;;  %v4024_v18 = vld [vmem:[%s6630_s4 + $0x100] sm:$0xff] }
 0x37a   :  { %v2080_v38 = vpop.f32.mrb[28].mxu1 }
 0x37b   :  { %v2082_v7 = vpop.f32.mrb[29].mxu1 }
 0x37c   :  { %v4002_v7 = vld [vmem:[%s6630_s4 + $0x90] sm:$0xff] }
 0x382   :  { %v2085_v1 = vpop.f32.mrb[30].mxu1 }
 0x383   :  { %v2087_v33 = vpop.f32.mrb[31].mxu1 }
 0x38a   :  { %v2090_v51 = vpop.f32.mrb[32].mxu1 }
 0x38b   :  { %v2092_v53 = vpop.f32.mrb[33].mxu1 }
 0x392   :  { %v2095_v59 = vpop.f32.mrb[34].mxu1 }
 0x393   :  { %v2097_v54 = vpop.f32.mrb[35].mxu1 }
 0x39a   :  { %v2100_v12 = vpop.f32.mrb[36].mxu1 }
 0x39b   :  { %v2102_v32 = vpop.f32.mrb[37].mxu1 }
 0x3a4   :  { %v2105_v60 = vpop.f32.mrb[38].mxu1 }
 0x3a5   :  { %v2107_v35 = vpop.f32.mrb[39].mxu1 }
 0x3ac   :  { %v2110_v36 = vpop.f32.mrb[40].mxu1 }
 0x3ad   :  { %v2112_v52 = vpop.f32.mrb[41].mxu1 }
 0x3b4   :  { %v6341_v4 = vpop.f32.mrb[42].mxu1 }
 0x3b5   :  { %v2117_v39 = vpop.f32.mrb[43].mxu1 }
 0x3bc   :  { %v6343_v13 = vpop.f32.mrb[44].mxu1 }
 0x3bd   :  { %v2122_v14 = vpop.f32.mrb[45].mxu1 }
 0x3be   :  { %v4005_v14 = vld [vmem:[%s6630_s4 + $0xa8] sm:$0xff] }
 0x3c4   :  { %v6345_v5 = vpop.f32.mrb[46].mxu1 }
 0x3c5   :  { %v2127_v56 = vpop.f32.mrb[47].mxu1 }
 0x3cc   :  { %v6347_v41 = vpop.f32.mrb[48].mxu1 }
 0x3cd   :  { %v2132_v6 = vpop.f32.mrb[49].mxu1 }
 0x3d4   :  { %v6349_v15 = vpop.f32.mrb[50].mxu1 }
 0x3d5   :  { %v2137_v61 = vpop.f32.mrb[51].mxu1 }
 0x3d8   :  { %v2224_v42 = vpop.f32.mrb[52].mxu1 }
 0x3d9   :  { %v2283_v43 = vmax.f32 %v2080_v38, %v2224_v42  ;;  %v2226_v44 = vpop.f32.mrb[53].mxu1  ;;  %v4006_v42 = vld [vmem:[%s6630_s4 + $0xb0] sm:$0xff] }
 0x3da   :  { %v4008_v44 = vld [vmem:[%s6630_s4 + $0xc0] sm:$0xff] }
 0x3db   :  { %2296 = vst.msk [vmem:[#allocation3] sm:$0xff] %vm2295_vm5, %v2283_v43  ;;  %v4007_v43 = vld [vmem:[%s6630_s4 + $0xb8] sm:$0xff] }
 0x3dc   :  { %v2229_v47 = vpop.f32.mrb[54].mxu1 }
 0x3dd   :  { %v2284_v16 = vmax.f32 %v2085_v1, %v2229_v47  ;;  %v2231_v21 = vpop.f32.mrb[55].mxu1  ;;  %v4003_v1 = vld [vmem:[%s6630_s4 + $0x98] sm:$0xff]  ;;  %v4009_v47 = vld [vmem:[%s6630_s4 + $0xc8] sm:$0xff] }
 0x3de   :  { %v4010_v21 = vld [vmem:[%s6630_s4 + $0xd0] sm:$0xff] }
 0x3df   :  { %2297 = vst.msk [vmem:[#allocation3 + $0x8] sm:$0xff] %vm2295_vm5, %v2284_v16  ;;  %v4776_v16 = vpack.c.bf16 %v4009_v47, %v4008_v44 }
 0x3e0   :  { %v2234_v62 = vpop.f32.mrb[56].mxu1 }
 0x3e1   :  { %v2285_v22 = vmax.f32 %v2090_v51, %v2234_v62  ;;  %v2236_v57 = vpop.f32.mrb[57].mxu1  ;;  %v4019_v62 = vld [vmem:[%s6630_s4 + $0xd8] sm:$0xff] }
 0x3e2   :  { %v4021_v57 = vld [vmem:[%s6630_s4 + $0xe8] sm:$0xff] }
 0x3e3   :  { %2298 = vst.msk [vmem:[#allocation3 + $0x10] sm:$0xff] %vm2295_vm5, %v2285_v22  ;;  %v4020_v22 = vld [vmem:[%s6630_s4 + $0xe0] sm:$0xff] }
 0x3e4   :  { %v2239_v63 = vpop.f32.mrb[58].mxu1 }
 0x3e5   :  { %v2286_v25 = vmax.f32 %v2095_v59, %v2239_v63  ;;  %v2241_v17 = vpop.f32.mrb[59].mxu1  ;;  %v4764_v59 = vpack.c.bf16 %v4003_v1, %v4002_v7  ;;  %v4022_v63 = vld [vmem:[%s6630_s4 + $0xf0] sm:$0xff]  ;;  %v3076_v7 = vld [vmem:[#allocation10 + $0x18] sm:$0xff] }
 0x3e6   :  { %v6354_v8 = vld [vmem:[#allocation3 + $0x8] sm:$0xff]  ;;  %v4784_v17 = vpack.c.bf16 %v4022_v63, %v4021_v57 }
 0x3e7   :  { %2299 = vst.msk [vmem:[#allocation3 + $0x18] sm:$0xff] %vm2295_vm5, %v2286_v25  ;;  %4274 = vmatprep.mubr.msk.f32.mxu1 %vm2295_vm5, %v6354_v8  ;;  %v4780_v25 = vpack.c.bf16 %v4020_v22, %v4019_v62 }
 0x3e8   :  { %v2244_v9 = vpop.f32.mrb[60].mxu1 }
 0x3e9   :  { %v2287_v30 = vmax.f32 %v2100_v12, %v2244_v9  ;;  %v2246_v19 = vpop.f32.mrb[61].mxu1  ;;  %v4025_v9 = vld [vmem:[%s6630_s4 + $0x108] sm:$0xff] }
 0x3ea   :  { %v6365_v11 = vld [vmem:[#allocation3 + $0x10] sm:$0xff] }
 0x3eb   :  { %2300 = vst.msk [vmem:[#allocation3 + $0x20] sm:$0xff] %vm2295_vm5, %v2287_v30  ;;  %4275 = vmatmul.mubr.msk.f32.vlgmr.msra.gmra.mrb[76].mxu1 %vm2295_vm5, %v6365_v11  ;;  %v4026_v30 = vld [vmem:[%s6630_s4 + $0x110] sm:$0xff] }
 0x3ec   :  { %v2249_v10 = vpop.f32.mrb[62].mxu1  ;;  %4751 = vmatpush3.bf16.msra.mxu1 %v4748_v3  ;;  %v2324_v3 = vld [vmem:[%s6630_s4 + $0x40] sm:$0xff]  ;;  %v4792_v19 = vpack.c.bf16 %v4026_v30, %v4025_v9 }
 0x3ed   :  { %v2288_v27 = vmax.f32 %v2105_v60, %v2249_v10  ;;  %v2251_v34 = vpop.f32.mrb[63].mxu1  ;;  %4753 = vmatprep.subr.bf16.mxu1 %v4752_v2  ;;  %v4038_v10 = vld [vmem:[%s6630_s4 + $0x130] sm:$0xff] }
 0x3ee   :  { %v6376_v31 = vld [vmem:[#allocation3 + $0x18] sm:$0xff]  ;;  %v4796_v34 = vpack.c.bf16 %v4037_v20, %v4036_v58 }
 0x3ef   :  { %2301 = vst.msk [vmem:[#allocation3 + $0x28] sm:$0xff] %vm2295_vm5, %v2288_v27  ;;  %4277 = vmatprep.mubr.msk.f32.mxu1 %vm2295_vm5, %v6376_v31  ;;  %v4039_v27 = vld [vmem:[%s6630_s4 + $0x138] sm:$0xff] }
 0x3f0   :  { %v2254_v55 = vpop.f32.mrb[64].mxu1  ;;  %4755 = vmatpush3.bf16.msra.mxu1 %v4752_v2  ;;  %v4027_v2 = vld [vmem:[%s6630_s4 + $0x118] sm:$0xff] }
 0x3f1   :  { %v2289_v37 = vmax.f32 %v2110_v36, %v2254_v55  ;;  %v2256_v48 = vpop.f32.mrb[65].mxu1  ;;  %4757 = vmatprep.subr.bf16.mxu1 %v4756_v23  ;;  %v4042_v55 = vld [vmem:[%s6630_s4 + $0x150] sm:$0xff] }
 0x3f2   :  { %v6387_v49 = vld [vmem:[#allocation3 + $0x20] sm:$0xff] }
 0x3f3   :  { %2302 = vst.msk [vmem:[#allocation3 + $0x30] sm:$0xff] %vm2295_vm5, %v2289_v37  ;;  %4278 = vmatmul.mubr.msk.f32.gmra.mrb[78].mxu1 %vm2295_vm5, %v6387_v49  ;;  %v4043_v37 = vld [vmem:[%s6630_s4 + $0x158] sm:$0xff] }
 0x3f4   :  { %v2259_v50 = vpop.f32.mrb[66].mxu1  ;;  %4759 = vmatpush3.bf16.msra.mxu1 %v4756_v23  ;;  %v4800_v23 = vpack.c.bf16 %v4039_v27, %v4038_v10  ;;  %v4808_v48 = vpack.c.bf16 %v4043_v37, %v4042_v55  ;;  %v3179_v27 = vld [vmem:[#allocation10 + $0xa0] sm:$0xff] }
 0x3f5   :  { %v2290_v46 = vmax.f32 %v6341_v4, %v2259_v50  ;;  %v2261_v24 = vpop.f32.mrb[67].mxu1  ;;  %4761 = vmatprep.subr.bf16.mxu1 %v4760_v28 }
 0x3f6   :  { %v6396_v38 = vld [vmem:[#allocation3 + $0x28] sm:$0xff] }
 0x3f7   :  { %2303 = vst.msk [vmem:[#allocation3 + $0x38] sm:$0xff] %vm2295_vm5, %v2290_v46  ;;  %4280 = vmatprep.mubr.msk.f32.mxu1 %vm2295_vm5, %v6396_v38  ;;  %v3073_v46 = vld [vmem:[#allocation10] sm:$0xff]  ;;  %v3074_v24 = vld [vmem:[#allocation10 + $0x8] sm:$0xff] }
 0x3f8   :  { %v2264_v33 = vpop.f32.mrb[68].mxu1  ;;  %4763 = vmatpush3.bf16.msra.mxu1 %v4760_v28  ;;  %v4044_v28 = vld [vmem:[%s6630_s4 + $0x160] sm:$0xff]  ;;  %v4812_v1 = vpack.c.bf16 %v3074_v24, %v3073_v46  ;;  %v3182_v46 = vld [vmem:[#allocation10 + $0xb8] sm:$0xff] }
 0x3f9   :  { %v2291_v51 = vmax.f32 %v6343_v13, %v2264_v33  ;;  %v2266_v53 = vpop.f32.mrb[69].mxu1  ;;  %4302 = vmatprep.subr.mxu1 %v2324_v3  ;;  %v4004_v13 = vld [vmem:[%s6630_s4 + $0xa0] sm:$0xff] }
 0x3fa   :  { %v6408_v54 = vld [vmem:[#allocation3 + $0x30] sm:$0xff]  ;;  %v4768_v61 = vpack.c.bf16 %v4005_v14, %v4004_v13  ;;  %v3078_v53 = vld [vmem:[#allocation10 + $0x28] sm:$0xff] }
 0x3fb   :  { %2304 = vst.msk [vmem:[#allocation3 + $0x40] sm:$0xff] %vm2295_vm5, %v2291_v51  ;;  %4281 = vmatmul.mubr.msk.f32.gmra.mrb[80].mxu1 %vm2295_vm5, %v6408_v54  ;;  %v3077_v51 = vld [vmem:[#allocation10 + $0x20] sm:$0xff]  ;;  %v3086_v13 = vld [vmem:[#allocation10 + $0x68] sm:$0xff] }
 0x3fc   :  { %v2269_v12 = vpop.f32.mrb[70].mxu1  ;;  %4303 = vmatpush3.msra.mxu1 %v2324_v3  ;;  %v3075_v3 = vld [vmem:[#allocation10 + $0x10] sm:$0xff] }
 0x3fd   :  { %v2292_v32 = vmax.f32 %v6345_v5, %v2269_v12  ;;  %v2271_v60 = vpop.f32.mrb[71].mxu1  ;;  %4765 = vmatprep.subr.bf16.mxu1 %v4764_v59  ;;  %v2308_v5 = vld [vmem:[#allocation3] sm:$0xff]  ;;  %v4816_v33 = vpack.c.bf16 %v3076_v7, %v3075_v3  ;;  %v3079_v12 = vld [vmem:[#allocation10 + $0x30] sm:$0xff] }
 0x3fe   :  { %v6414_v35 = vld [vmem:[#allocation3 + $0x38] sm:$0xff]  ;;  %v3081_v60 = vld [vmem:[#allocation10 + $0x40] sm:$0xff] }
 0x3ff   :  { %2305 = vst.msk [vmem:[#allocation3 + $0x48] sm:$0xff] %vm2295_vm5, %v2292_v32  ;;  %4283 = vmatprep.mubr.msk.f32.mxu1 %vm2295_vm5, %v6414_v35 }
 0x400   :  { %v2274_v36 = vpop.f32.mrb[72].mxu1 }
 0x401   :  { %v2293_v52 = vmax.f32 %v6347_v41, %v2274_v36  ;;  %v2276_v4 = vpop.f32.mrb[73].mxu1 }
 0x402   :  { %v6420_v39 = vld [vmem:[#allocation3 + $0x40] sm:$0xff]  ;;  %v3084_v4 = vld [vmem:[#allocation10 + $0x58] sm:$0xff] }
 0x403   :  { %2306 = vst.msk [vmem:[#allocation3 + $0x50] sm:$0xff] %vm2295_vm5, %v2293_v52  ;;  %4284 = vmatmul.mubr.msk.f32.gmra.mrb[82].mxu1 %vm2295_vm5, %v6420_v39  ;;  %v3083_v52 = vld [vmem:[#allocation10 + $0x50] sm:$0xff] }
 0x404   :  { %v2279_v56 = vpop.f32.mrb[74].mxu1  ;;  %4304 = vmatprep.mubr.msk.f32.mxu1 %vm2295_vm5, %v2308_v5  ;;  %v3087_v5 = vld [vmem:[#allocation10 + $0x70] sm:$0xff] }
 0x405   :  { %v2294_v41 = vmax.f32 %v6349_v15, %v2279_v56  ;;  %v2281_v6 = vpop.f32.mrb[75].mxu1  ;;  %v4772_v15 = vpack.c.bf16 %v4007_v43, %v4006_v42  ;;  %v3088_v56 = vld [vmem:[#allocation10 + $0x78] sm:$0xff]  ;;  %v4053_v43 = vld [vmem:[%s6631_s5] ss:$0 sm:$0xff] }
 0x406   :  { %v3175_v6 = vld [vmem:[#allocation10 + $0x80] sm:$0xff] }
 0x407   :  { %2307 = vst.msk [vmem:[#allocation3 + $0x58] sm:$0xff] %vm2295_vm5, %v2294_v41  ;;  %4305 = vmatmul.mubr.msk.f32.vlgmr.msra.gmra.mrb[76].mxu1 %vm2295_vm5, %v6354_v8  ;;  %v4023_v8 = vld [vmem:[%s6630_s4 + $0xf8] sm:$0xff]  ;;  %v4840_v41 = vpack.c.bf16 %v3088_v56, %v3087_v5  ;;  %v3300_v5 = vld [vmem:[#allocation11 + $0x60] sm:$0xff]  ;;  %v3301_v56 = vld [vmem:[#allocation11 + $0x68] sm:$0xff] }
 0x408   :  { %4767 = vmatpush3.bf16.msra.mxu1 %v4764_v59  ;;  %4307 = vmatprep.mubr.msk.f32.mxu1 %vm2295_vm5, %v6365_v11  ;;  %v4788_v26 = vpack.c.bf16 %v4024_v18, %v4023_v8  ;;  %v4820_v59 = vpack.c.bf16 %v3078_v53, %v3077_v51  ;;  %v3177_v18 = vld [vmem:[#allocation10 + $0x90] sm:$0xff] }
 0x409   :  { %4769 = vmatprep.subr.bf16.mxu1 %v4768_v61  ;;  %v3185_v53 = vld [vmem:[#allocation10 + $0xd0] sm:$0xff] }
 0x40a   :  { %v2735_v50 = vld [vmem:[#allocation3 + $0x50] sm:$0xff] }
 0x40b   :  { %4308 = vmatmul.mubr.msk.f32.gmra.mrb[78].mxu1 %vm2295_vm5, %v6376_v31 }
 0x40c   :  { %4771 = vmatpush3.bf16.msra.mxu1 %v4768_v61  ;;  %4310 = vmatprep.mubr.msk.f32.mxu1 %vm2295_vm5, %v6387_v49  ;;  %v3176_v61 = vld [vmem:[#allocation10 + $0x88] sm:$0xff] }
 0x40d   :  { %4773 = vmatprep.subr.bf16.mxu1 %v4772_v15  ;;  %v4844_v42 = vpack.c.bf16 %v3176_v61, %v3175_v6  ;;  %v3302_v6 = vld [vmem:[#allocation11 + $0x70] sm:$0xff]  ;;  %v3303_v61 = vld [vmem:[#allocation11 + $0x78] sm:$0xff] }
 0x40e   :  { %v2890_v36 = vld [vmem:[#allocation3 + $0x58] sm:$0xff] }
 0x40f   :  { %4311 = vmatmul.mubr.msk.f32.gmra.mrb[80].mxu1 %vm2295_vm5, %v6396_v38 }
 0x410   :  { %4775 = vmatpush3.bf16.msra.mxu1 %v4772_v15  ;;  %4313 = vmatprep.mubr.msk.f32.mxu1 %vm2295_vm5, %v6408_v54 }
 0x411   :  { %4777 = vmatprep.subr.bf16.mxu1 %v4776_v16 }
 0x413   :  { %4314 = vmatmul.mubr.msk.f32.gmra.mrb[82].mxu1 %vm2295_vm5, %v6414_v35 }
 0x414   :  { %4779 = vmatpush3.bf16.msra.mxu1 %v4776_v16  ;;  %4334 = vmatprep.mubr.msk.f32.mxu1 %vm2295_vm5, %v6365_v11  ;;  %v2580_v11 = vld [vmem:[#allocation3 + $0x48] sm:$0xff] }
 0x415   :  { %4332 = vmatprep.subr.mxu1 %v4010_v21 }
 0x418   :  { %4333 = vmatpush3.msra.mxu1 %v4010_v21 }
 0x419   :  { %4335 = vmatmul.mubr.msk.f32.vlgmr.msra.gmra.mrb[76].mxu1 %vm2295_vm5, %v6376_v31  ;;  %4781 = vmatprep.subr.bf16.mxu1 %v4780_v25 }
 0x41a   :  { %4337 = vmatprep.mubr.msk.f32.mxu1 %vm2295_vm5, %v6387_v49  ;;  %4783 = vmatpush3.bf16.msra.mxu1 %v4780_v25 }
 0x41b   :  { %4785 = vmatprep.subr.bf16.mxu1 %v4784_v17 }
 0x41d   :  { %4338 = vmatmul.mubr.msk.f32.gmra.mrb[78].mxu1 %vm2295_vm5, %v6396_v38 }
 0x41e   :  { %4340 = vmatprep.mubr.msk.f32.mxu1 %vm2295_vm5, %v6408_v54  ;;  %4787 = vmatpush3.bf16.msra.mxu1 %v4784_v17 }
 0x41f   :  { %4789 = vmatprep.subr.bf16.mxu1 %v4788_v26 }
 0x421   :  { %4341 = vmatmul.mubr.msk.f32.gmra.mrb[80].mxu1 %vm2295_vm5, %v6414_v35 }
 0x422   :  { %4343 = vmatprep.mubr.msk.f32.mxu1 %vm2295_vm5, %v6420_v39  ;;  %4791 = vmatpush3.bf16.msra.mxu1 %v4788_v26  ;;  %v3178_v26 = vld [vmem:[#allocation10 + $0x98] sm:$0xff] }
 0x423   :  { %4793 = vmatprep.subr.bf16.mxu1 %v4792_v19  ;;  %v4848_v20 = vpack.c.bf16 %v3178_v26, %v3177_v18 }
 0x425   :  { %4344 = vmatmul.mubr.msk.f32.gmra.mrb[82].mxu1 %vm2295_vm5, %v2580_v11 }
 0x426   :  { %4795 = vmatpush3.bf16.msra.mxu1 %v4792_v19  ;;  %4364 = vmatprep.mubr.msk.f32.mxu1 %vm2295_vm5, %v6376_v31  ;;  %v4041_v31 = vld [vmem:[%s6630_s4 + $0x148] sm:$0xff] }
 0x427   :  { %4362 = vmatprep.subr.mxu1 %v4027_v2  ;;  %v4804_v45 = vpack.c.bf16 %v4041_v31, %v4040_v40 }
 0x42a   :  { %4363 = vmatpush3.msra.mxu1 %v4027_v2 }
 0x42b   :  { %4365 = vmatmul.mubr.msk.f32.vlgmr.msra.gmra.mrb[76].mxu1 %vm2295_vm5, %v6387_v49  ;;  %4797 = vmatprep.subr.bf16.mxu1 %v4796_v34 }
 0x42c   :  { %4367 = vmatprep.mubr.msk.f32.mxu1 %vm2295_vm5, %v6396_v38  ;;  %4799 = vmatpush3.bf16.msra.mxu1 %v4796_v34  ;;  %v3180_v34 = vld [vmem:[#allocation10 + $0xa8] sm:$0xff] }
 0x42d   :  { %4801 = vmatprep.subr.bf16.mxu1 %v4800_v23 }
 0x42f   :  { %4368 = vmatmul.mubr.msk.f32.gmra.mrb[78].mxu1 %vm2295_vm5, %v6408_v54 }
 0x430   :  { %4370 = vmatprep.mubr.msk.f32.mxu1 %vm2295_vm5, %v6414_v35  ;;  %4803 = vmatpush3.bf16.msra.mxu1 %v4800_v23 }
 0x431   :  { %4805 = vmatprep.subr.bf16.mxu1 %v4804_v45 }
 0x433   :  { %4371 = vmatmul.mubr.msk.f32.gmra.mrb[80].mxu1 %vm2295_vm5, %v6420_v39 }
 0x434   :  { %4373 = vmatprep.mubr.msk.f32.mxu1 %vm2295_vm5, %v2580_v11  ;;  %4807 = vmatpush3.bf16.msra.mxu1 %v4804_v45 }
 0x435   :  { %4809 = vmatprep.subr.bf16.mxu1 %v4808_v48 }
 0x437   :  { %4374 = vmatmul.mubr.msk.f32.gmra.mrb[82].mxu1 %vm2295_vm5, %v2735_v50 }
 0x438   :  { %4811 = vmatpush3.bf16.msra.mxu1 %v4808_v48  ;;  %4394 = vmatprep.mubr.msk.f32.mxu1 %vm2295_vm5, %v6387_v49  ;;  %v3080_v49 = vld [vmem:[#allocation10 + $0x38] sm:$0xff]  ;;  %v4852_v48 = vpack.c.bf16 %v3180_v34, %v3179_v27 }
 0x439   :  { %4392 = vmatprep.subr.mxu1 %v4044_v28  ;;  %v4824_v32 = vpack.c.bf16 %v3080_v49, %v3079_v12  ;;  %v3187_v49 = vld [vmem:[#allocation10 + $0xe0] sm:$0xff]  ;;  %v3293_v27 = vld [vmem:[#allocation11 + $0x38] sm:$0xff] }
 0x43c   :  { %4393 = vmatpush3.msra.mxu1 %v4044_v28 }
 0x43d   :  { %4395 = vmatmul.mubr.msk.f32.vlgmr.msra.gmra.mrb[76].mxu1 %vm2295_vm5, %v6396_v38  ;;  %4813 = vmatprep.subr.bf16.mxu1 %v4812_v1  ;;  %v3082_v38 = vld [vmem:[#allocation10 + $0x48] sm:$0xff] }
 0x43e   :  { %4397 = vmatprep.mubr.msk.f32.mxu1 %vm2295_vm5, %v6408_v54  ;;  %4815 = vmatpush3.bf16.msra.mxu1 %v4812_v1  ;;  %v4828_v54 = vpack.c.bf16 %v3082_v38, %v3081_v60  ;;  %v3183_v1 = vld [vmem:[#allocation10 + $0xc0] sm:$0xff]  ;;  %v3189_v38 = vld [vmem:[#allocation10 + $0xf0] sm:$0xff] }
 0x43f   :  { %4817 = vmatprep.subr.bf16.mxu1 %v4816_v33 }
 0x441   :  { %4398 = vmatmul.mubr.msk.f32.gmra.mrb[78].mxu1 %vm2295_vm5, %v6414_v35  ;;  %v4832_v35 = vpack.c.bf16 %v3084_v4, %v3083_v52  ;;  %v3296_v52 = vld [vmem:[#allocation11 + $0x40] sm:$0xff]  ;;  %v3297_v4 = vld [vmem:[#allocation11 + $0x48] sm:$0xff] }
 0x442   :  { %4400 = vmatprep.mubr.msk.f32.mxu1 %vm2295_vm5, %v6420_v39  ;;  %4819 = vmatpush3.bf16.msra.mxu1 %v4816_v33  ;;  %v3085_v39 = vld [vmem:[#allocation10 + $0x60] sm:$0xff]  ;;  %v3184_v33 = vld [vmem:[#allocation10 + $0xc8] sm:$0xff] }
 0x443   :  { %4821 = vmatprep.subr.bf16.mxu1 %v4820_v59  ;;  %v4836_v14 = vpack.c.bf16 %v3086_v13, %v3085_v39  ;;  %v4860_v51 = vpack.c.bf16 %v3184_v33, %v3183_v1  ;;  %v4877_v39 = vpack.c.bf16 %v3297_v4, %v3296_v52  ;;  %v3299_v13 = vld [vmem:[#allocation11 + $0x58] sm:$0xff]  ;;  %v3536_v1 = vld [vmem:[#allocation11 + $0xc0] sm:$0xff]  ;;  %v3537_v33 = vld [vmem:[#allocation11 + $0xc8] sm:$0xff] }
 0x445   :  { %4401 = vmatmul.mubr.msk.f32.gmra.mrb[80].mxu1 %vm2295_vm5, %v2580_v11 }
 0x446   :  { %4403 = vmatprep.mubr.msk.f32.mxu1 %vm2295_vm5, %v2735_v50  ;;  %4823 = vmatpush3.bf16.msra.mxu1 %v4820_v59  ;;  %v3181_v50 = vld [vmem:[#allocation10 + $0xb0] sm:$0xff]  ;;  %v3186_v59 = vld [vmem:[#allocation10 + $0xd8] sm:$0xff] }
 0x447   :  { %4825 = vmatprep.subr.bf16.mxu1 %v4824_v32  ;;  %v4856_v7 = vpack.c.bf16 %v3182_v46, %v3181_v50  ;;  %v4864_v12 = vpack.c.bf16 %v3186_v59, %v3185_v53  ;;  %v3457_v50 = vld [vmem:[#allocation11 + $0xa8] sm:$0xff]  ;;  %v3538_v53 = vld [vmem:[#allocation11 + $0xd0] sm:$0xff]  ;;  %v3539_v59 = vld [vmem:[#allocation11 + $0xd8] sm:$0xff] }
 0x449   :  { %4404 = vmatmul.mubr.msk.f32.gmra.mrb[82].mxu1 %vm2295_vm5, %v2890_v36 }
 0x44a   :  { %4827 = vmatpush3.bf16.msra.mxu1 %v4824_v32  ;;  %v3188_v32 = vld [vmem:[#allocation10 + $0xe8] sm:$0xff] }
 0x44b   :  { %4829 = vmatprep.subr.bf16.mxu1 %v4828_v54  ;;  %v4868_v60 = vpack.c.bf16 %v3188_v32, %v3187_v49  ;;  %v4916_v49 = vpack.c.bf16 %v3539_v59, %v3538_v53  ;;  %v3540_v32 = vld [vmem:[#allocation11 + $0xe0] sm:$0xff]  ;;  %v3730_v53 = vld [vmem:[#allocation14 + $0x48] sm:$0xff] }
 0x44e   :  { %4831 = vmatpush3.bf16.msra.mxu1 %v4828_v54  ;;  %v3190_v54 = vld [vmem:[#allocation10 + $0xf8] sm:$0xff] }
 0x44f   :  { %4833 = vmatprep.subr.bf16.mxu1 %v4832_v35  ;;  %v4872_v36 = vpack.c.bf16 %v3190_v54, %v3189_v38  ;;  %v3542_v54 = vld [vmem:[#allocation11 + $0xf0] sm:$0xff] }
 0x452   :  { %4835 = vmatpush3.bf16.msra.mxu1 %v4832_v35  ;;  %v3298_v35 = vld [vmem:[#allocation11 + $0x50] sm:$0xff] }
 0x453   :  { %4837 = vmatprep.subr.bf16.mxu1 %v4836_v14 }
 0x456   :  { %4839 = vmatpush3.bf16.msra.mxu1 %v4836_v14  ;;  %v4880_v14 = vpack.c.bf16 %v3299_v13, %v3298_v35  ;;  %v3627_v35 = vld [vmem:[#allocation13] sm:$0xff]  ;;  %v3629_v13 = vld [vmem:[#allocation13 + $0x10] sm:$0xff] }
 0x457   :  { %4841 = vmatprep.subr.bf16.mxu1 %v4840_v41 }
 0x45a   :  { %4843 = vmatpush3.bf16.msra.mxu1 %v4840_v41  ;;  %v4883_v41 = vpack.c.bf16 %v3301_v56, %v3300_v5  ;;  %v3630_v5 = vld [vmem:[#allocation13 + $0x18] sm:$0xff] }
 0x45b   :  { %4845 = vmatprep.subr.bf16.mxu1 %v4844_v42  ;;  %v4928_v56 = vpack.c.bf16 %v3630_v5, %v3629_v13  ;;  %v4060_v5 = vld [vmem:[%s6638_s12] ss:$0 sm:$0xff] }
 0x510   :  { %v4396_v15 = vpop.f32.mrb[76].mxu1 }
 0x511   :  { %v3046_v44 = vadd.f32 %v4396_v15, %v4053_v43  ;;  %v2991_v47 = vpop.f32.mrb[77].mxu1 }
 0x512   :  { %v3045_v16 = vadd.f32 %v4053_v43, %v2991_v47 }
 0x513   :  { %v3054_v21 = vmax.f32 %v3046_v44, 0.0 }
 0x514   :  { %v3053_v62 = vmax.f32 %v3045_v16, 0.0  ;;  %v4399_v22 = vpop.f32.mrb[78].mxu1 }
 0x515   :  { %v3048_v57 = vadd.f32 %v4399_v22, %v4053_v43  ;;  %v3001_v63 = vpop.f32.mrb[79].mxu1 }
 0x516   :  { %v3061_v25 = vmax.f32 %v3053_v62, %v3054_v21  ;;  %v3047_v17 = vadd.f32 %v4053_v43, %v3001_v63 }
 0x517   :  { %v3056_v8 = vmax.f32 %v3048_v57, 0.0 }
 0x518   :  { %v3055_v9 = vmax.f32 %v3047_v17, 0.0  ;;  %v4402_v30 = vpop.f32.mrb[80].mxu1  ;;  %4438 = vmatprep.mubr.f32.mxu1 %v3061_v25  ;;  %v3286_v17 = vld [vmem:[#allocation11] sm:$0xff] }
 0x519   :  { %v3050_v19 = vadd.f32 %v4402_v30, %v4053_v43  ;;  %v3011_v2 = vpop.f32.mrb[81].mxu1  ;;  %v3289_v30 = vld [vmem:[#allocation11 + $0x18] sm:$0xff] }
 0x51a   :  { %v3063_v11 = vmax.f32 %v3055_v9, %v3056_v8  ;;  %v3049_v58 = vadd.f32 %v4053_v43, %v3011_v2  ;;  %v3287_v8 = vld [vmem:[#allocation11 + $0x8] sm:$0xff]  ;;  %v3288_v9 = vld [vmem:[#allocation11 + $0x10] sm:$0xff] }
 0x51b   :  { %v3058_v10 = vmax.f32 %v3050_v19, 0.0  ;;  %v4889_v26 = vpack.c.bf16 %v3287_v8, %v3286_v17  ;;  %v4892_v2 = vpack.c.bf16 %v3289_v30, %v3288_v9  ;;  %v3641_v17 = vld [vmem:[#allocation13 + $0x70] sm:$0xff]  ;;  %v3642_v8 = vld [vmem:[#allocation13 + $0x78] sm:$0xff] }
 0x51c   :  { %v3057_v23 = vmax.f32 %v3049_v58, 0.0  ;;  %v4405_v40 = vpop.f32.mrb[82].mxu1  ;;  %4439 = vmatmul.mubr.f32.vlgmr.msra.gmra.mrb[84].mxu1 %v3063_v11  ;;  %v3291_v58 = vld [vmem:[#allocation11 + $0x28] sm:$0xff] }
 0x51d   :  { %v3052_v31 = vadd.f32 %v4405_v40, %v4053_v43  ;;  %4847 = vmatpush3.bf16.msra.mxu1 %v4844_v42  ;;  %v3021_v45 = vpop.f32.mrb[83].mxu1  ;;  %v4886_v42 = vpack.c.bf16 %v3303_v61, %v3302_v6  ;;  %v3453_v40 = vld [vmem:[#allocation11 + $0x88] sm:$0xff] }
 0x51e   :  { %v3065_v55 = vmax.f32 %v3057_v23, %v3058_v10  ;;  %v3051_v37 = vadd.f32 %v4053_v43, %v3021_v45  ;;  %4849 = vmatprep.subr.bf16.mxu1 %v4848_v20  ;;  %v3292_v10 = vld [vmem:[#allocation11 + $0x30] sm:$0xff]  ;;  %v3452_v23 = vld [vmem:[#allocation11 + $0x80] sm:$0xff]  ;;  %v3632_v6 = vld [vmem:[#allocation13 + $0x28] sm:$0xff] }
 0x51f   :  { %v3060_v28 = vmax.f32 %v3052_v31, 0.0  ;;  %v4898_v34 = vpack.c.bf16 %v3293_v27, %v3292_v10  ;;  %v4901_v31 = vpack.c.bf16 %v3453_v40, %v3452_v23  ;;  %v3454_v45 = vld [vmem:[#allocation11 + $0x90] sm:$0xff]  ;;  %v4058_v27 = vld [vmem:[%s6634_s8] ss:$0 sm:$0xff] }
 0x520   :  { %v3059_v24 = vmax.f32 %v3051_v37, 0.0  ;;  %4441 = vmatprep.mubr.f32.mxu1 %v3065_v55  ;;  %v3721_v40 = vld [vmem:[#allocation14] sm:$0xff] }
 0x521   :  { %4851 = vmatpush3.bf16.msra.mxu1 %v4848_v20 }
 0x522   :  { %v3067_v3 = vmax.f32 %v3059_v24, %v3060_v28  ;;  %4853 = vmatprep.subr.bf16.mxu1 %v4852_v48  ;;  %v3456_v28 = vld [vmem:[#allocation11 + $0xa0] sm:$0xff]  ;;  %v3458_v24 = vld [vmem:[#allocation11 + $0xb0] sm:$0xff] }
 0x523   :  { %v4907_v46 = vpack.c.bf16 %v3457_v50, %v3456_v28  ;;  %v3724_v28 = vld [vmem:[#allocation14 + $0x18] sm:$0xff] }
 0x524   :  { %4442 = vmatmul.mubr.f32.gmra.mrb[86].mxu1 %v3067_v3 }
 0x525   :  { %4855 = vmatpush3.bf16.msra.mxu1 %v4852_v48  ;;  %4476 = vmatprep.mubr.f32.mxu1 %v3061_v25 }
 0x526   :  { %4857 = vmatprep.subr.bf16.mxu1 %v4856_v7 }
 0x529   :  { %4859 = vmatpush3.bf16.msra.mxu1 %v4856_v7 }
 0x52a   :  { %4861 = vmatprep.subr.bf16.mxu1 %v4860_v51 }
 0x52d   :  { %4863 = vmatpush3.bf16.msra.mxu1 %v4860_v51  ;;  %v4913_v51 = vpack.c.bf16 %v3537_v33, %v3536_v1  ;;  %v3728_v1 = vld [vmem:[#allocation14 + $0x38] sm:$0xff] }
 0x52e   :  { %4865 = vmatprep.subr.bf16.mxu1 %v4864_v12 }
 0x531   :  { %4867 = vmatpush3.bf16.msra.mxu1 %v4864_v12 }
 0x532   :  { %4869 = vmatprep.subr.bf16.mxu1 %v4868_v60 }
 0x535   :  { %4871 = vmatpush3.bf16.msra.mxu1 %v4868_v60  ;;  %v3541_v60 = vld [vmem:[#allocation11 + $0xe8] sm:$0xff] }
 0x536   :  { %4873 = vmatprep.subr.bf16.mxu1 %v4872_v36  ;;  %v4919_v38 = vpack.c.bf16 %v3541_v60, %v3540_v32  ;;  %v3733_v32 = vld [vmem:[#allocation14 + $0x60] sm:$0xff]  ;;  %v3734_v60 = vld [vmem:[#allocation14 + $0x68] sm:$0xff] }
 0x539   :  { %4875 = vmatpush3.bf16.msra.mxu1 %v4872_v36  ;;  %v3543_v36 = vld [vmem:[#allocation11 + $0xf8] sm:$0xff] }
 0x53a   :  { %4876 = vmatprep.subr.bf16.mxu1 %v5366_v29  ;;  %v4922_v52 = vpack.c.bf16 %v3543_v36, %v3542_v54  ;;  %v3735_v54 = vld [vmem:[#allocation14 + $0x70] sm:$0xff]  ;;  %v3736_v36 = vld [vmem:[#allocation14 + $0x78] sm:$0xff] }
 0x53c   :  { %4477 = vmatmul.mubr.f32.vlgmr.msra.gmra.mrb[88].mxu1 %v3063_v11  ;;  %v3290_v11 = vld [vmem:[#allocation11 + $0x20] sm:$0xff] }
 0x53d   :  { %4479 = vmatprep.mubr.f32.mxu1 %v3065_v55  ;;  %4878 = vmatpush3.bf16.msra.mxu1 %v4877_v39  ;;  %v4895_v20 = vpack.c.bf16 %v3291_v58, %v3290_v11  ;;  %v3455_v55 = vld [vmem:[#allocation11 + $0x98] sm:$0xff]  ;;  %v3628_v39 = vld [vmem:[#allocation13 + $0x8] sm:$0xff] }
 0x53e   :  { %4879 = vmatprep.subr.bf16.mxu1 %v5366_v29  ;;  %v4904_v48 = vpack.c.bf16 %v3455_v55, %v3454_v45 }
 0x540   :  { %4480 = vmatmul.mubr.f32.gmra.mrb[90].mxu1 %v3067_v3  ;;  %v3459_v3 = vld [vmem:[#allocation11 + $0xb8] sm:$0xff] }
 0x541   :  { %4881 = vmatpush3.bf16.msra.mxu1 %v4880_v14  ;;  %4498 = vmatprep.mubr.msk.f32.mxu1 %vm5367_vm6, %v5364_v0  ;;  %v4910_v7 = vpack.c.bf16 %v3459_v3, %v3458_v24  ;;  %v4925_v14 = vpack.c.bf16 %v3628_v39, %v3627_v35  ;;  %v3726_v24 = vld [vmem:[#allocation14 + $0x28] sm:$0xff] }
 0x542   :  { %4882 = vmatprep.subr.bf16.mxu1 %v5366_v29 }
 0x545   :  { %4884 = vmatpush3.bf16.msra.mxu1 %v4883_v41  ;;  %v3631_v41 = vld [vmem:[#allocation13 + $0x20] sm:$0xff] }
 0x546   :  { %4885 = vmatprep.subr.bf16.mxu1 %v5366_v29  ;;  %v4931_v61 = vpack.c.bf16 %v3632_v6, %v3631_v41 }
 0x549   :  { %4887 = vmatpush3.bf16.msra.mxu1 %v4886_v42  ;;  %v3633_v42 = vld [vmem:[#allocation13 + $0x30] sm:$0xff] }
 0x54a   :  { %4888 = vmatprep.subr.bf16.mxu1 %v5366_v29 }
 0x5ef   :  { %v4440_v43 = vpop.f32.mrb[84].mxu1 }
 0x5f0   :  { %v3155_v15 = vpop.f32.mrb[85].mxu1 }
 0x5f7   :  { %v4443_v44 = vpop.f32.mrb[86].mxu1 }
 0x5f8   :  { %v3165_v47 = vpop.f32.mrb[87].mxu1 }
 0x60f   :  { %v4478_v16 = vpop.f32.mrb[88].mxu1 }
 0x610   :  { %v3277_v21 = vmax.f32 %v4440_v43, %v4478_v16  ;;  %v3257_v62 = vpop.f32.mrb[89].mxu1  ;;  %v3634_v43 = vld [vmem:[#allocation13 + $0x38] sm:$0xff] }
 0x611   :  { %v3276_v22 = vmax.f32 %v3155_v15, %v3257_v62  ;;  %v3635_v15 = vld [vmem:[#allocation13 + $0x40] sm:$0xff]  ;;  %v3638_v62 = vld [vmem:[#allocation13 + $0x58] sm:$0xff] }
 0x612   :  { %3282 = vst.msk [vmem:[#allocation5 + $0x8] sm:$0xff] %vm3280_vm7, %v3277_v21  ;;  %v3637_v21 = vld [vmem:[#allocation13 + $0x50] sm:$0xff] }
 0x613   :  { %3281 = vst.msk [vmem:[#allocation5] sm:$0xff] %vm3280_vm7, %v3276_v22  ;;  %v4481_v57 = vpop.f32.mrb[90].mxu1  ;;  %v4940_v22 = vpack.c.bf16 %v3638_v62, %v3637_v21 }
 0x614   :  { %v3279_v63 = vmax.f32 %v4443_v44, %v4481_v57  ;;  %v3267_v25 = vpop.f32.mrb[91].mxu1  ;;  %v4934_v44 = vpack.c.bf16 %v3634_v43, %v3633_v42  ;;  %v3639_v57 = vld [vmem:[#allocation13 + $0x60] sm:$0xff] }
 0x615   :  { %v3278_v18 = vmax.f32 %v3165_v47, %v3267_v25  ;;  %v3636_v47 = vld [vmem:[#allocation13 + $0x48] sm:$0xff] }
 0x616   :  { %3284 = vst.msk [vmem:[#allocation5 + $0x18] sm:$0xff] %vm3280_vm7, %v3279_v63  ;;  %v4937_v16 = vpack.c.bf16 %v3636_v47, %v3635_v15  ;;  %v3640_v63 = vld [vmem:[#allocation13 + $0x68] sm:$0xff] }
 0x617   :  { %3283 = vst.msk [vmem:[#allocation5 + $0x10] sm:$0xff] %vm3280_vm7, %v3278_v18  ;;  %v4943_v25 = vpack.c.bf16 %v3640_v63, %v3639_v57  ;;  %v4946_v18 = vpack.c.bf16 %v3642_v8, %v3641_v17 }
 0x619   :  { %v3294_v19 = vld [vmem:[#allocation5 + $0x8] sm:$0xff] }
 0x61a   :  { %4499 = vmatmul.mubr.msk.f32.vlgmr.msra.gmra.mrb[92].mxu1 %vm3280_vm7, %v3294_v19  ;;  %v3285_v37 = vld [vmem:[#allocation5] sm:$0xff] }
 0x61b   :  { %4890 = vmatpush3.bf16.msra.mxu1 %v4889_v26  ;;  %4517 = vmatprep.mubr.msk.f32.mxu1 %vm5367_vm6, %v5364_v0 }
 0x61c   :  { %4891 = vmatprep.subr.bf16.mxu1 %v5366_v29 }
 0x61d   :  { %v3534_v4 = vld [vmem:[#allocation5 + $0x18] sm:$0xff] }
 0x61e   :  { %v3450_v12 = vld [vmem:[#allocation5 + $0x10] sm:$0xff] }
 0x61f   :  { %4893 = vmatpush3.bf16.msra.mxu1 %v4892_v2 }
 0x620   :  { %4894 = vmatprep.subr.bf16.mxu1 %v5366_v29 }
 0x623   :  { %4896 = vmatpush3.bf16.msra.mxu1 %v4895_v20 }
 0x624   :  { %4897 = vmatprep.subr.bf16.mxu1 %v5366_v29 }
 0x627   :  { %4899 = vmatpush3.bf16.msra.mxu1 %v4898_v34 }
 0x628   :  { %4900 = vmatprep.subr.bf16.mxu1 %v5366_v29 }
 0x62a   :  { %4518 = vmatmul.mubr.msk.f32.vlgmr.msra.gmra.mrb[94].mxu1 %vm3280_vm7, %v3285_v37 }
 0x62b   :  { %4902 = vmatpush3.bf16.msra.mxu1 %v4901_v31  ;;  %4536 = vmatprep.mubr.msk.f32.mxu1 %vm5367_vm6, %v5364_v0  ;;  %v3722_v31 = vld [vmem:[#allocation14 + $0x8] sm:$0xff] }
 0x62c   :  { %4903 = vmatprep.subr.bf16.mxu1 %v5366_v29  ;;  %v4949_v55 = vpack.c.bf16 %v3722_v31, %v3721_v40 }
 0x62f   :  { %4905 = vmatpush3.bf16.msra.mxu1 %v4904_v48  ;;  %v3723_v48 = vld [vmem:[#allocation14 + $0x10] sm:$0xff] }
 0x630   :  { %4906 = vmatprep.subr.bf16.mxu1 %v5366_v29  ;;  %v4952_v50 = vpack.c.bf16 %v3724_v28, %v3723_v48 }
 0x633   :  { %4908 = vmatpush3.bf16.msra.mxu1 %v4907_v46  ;;  %v3725_v46 = vld [vmem:[#allocation14 + $0x20] sm:$0xff] }
 0x634   :  { %4909 = vmatprep.subr.bf16.mxu1 %v5366_v29  ;;  %v4955_v3 = vpack.c.bf16 %v3726_v24, %v3725_v46 }
 0x637   :  { %4911 = vmatpush3.bf16.msra.mxu1 %v4910_v7  ;;  %v3727_v7 = vld [vmem:[#allocation14 + $0x30] sm:$0xff] }
 0x638   :  { %4912 = vmatprep.subr.bf16.mxu1 %v5366_v29  ;;  %v4958_v33 = vpack.c.bf16 %v3728_v1, %v3727_v7 }
 0x63a   :  { %4537 = vmatmul.mubr.msk.f32.vlgmr.msra.gmra.mrb[96].mxu1 %vm3280_vm7, %v3450_v12  ;;  %v3732_v12 = vld [vmem:[#allocation14 + $0x58] sm:$0xff] }
 0x63b   :  { %4914 = vmatpush3.bf16.msra.mxu1 %v4913_v51  ;;  %4555 = vmatprep.mubr.msk.f32.mxu1 %vm5367_vm6, %v5364_v0  ;;  %v3729_v51 = vld [vmem:[#allocation14 + $0x40] sm:$0xff] }
 0x63c   :  { %4915 = vmatprep.subr.bf16.mxu1 %v5366_v29  ;;  %v4961_v59 = vpack.c.bf16 %v3730_v53, %v3729_v51 }
 0x63f   :  { %4917 = vmatpush3.bf16.msra.mxu1 %v4916_v49 }
 0x640   :  { %4918 = vmatprep.subr.bf16.mxu1 %v5366_v29 }
 0x643   :  { %4920 = vmatpush3.bf16.msra.mxu1 %v4919_v38  ;;  %v4967_v38 = vpack.c.bf16 %v3734_v60, %v3733_v32 }
 0x644   :  { %4921 = vmatprep.subr.bf16.mxu1 %v5366_v29 }
 0x647   :  { %4923 = vmatpush3.bf16.msra.mxu1 %v4922_v52  ;;  %v4970_v52 = vpack.c.bf16 %v3736_v36, %v3735_v54 }
 0x648   :  { %4924 = vmatprep.subr.bf16.mxu1 %v5366_v29 }
 0x64a   :  { %4556 = vmatmul.mubr.msk.f32.vlgmr.msra.gmra.mrb[98].mxu1 %vm3280_vm7, %v3534_v4  ;;  %v4059_v4 = vld [vmem:[%s6636_s10] ss:$0 sm:$0xff] }
 0x64b   :  { %4590 = vmatprep.mubr.msk.f32.mxu1 %vm5367_vm6, %v5364_v0  ;;  %4926 = vmatpush3.bf16.msra.mxu1 %v4925_v14 }
 0x64c   :  { %4927 = vmatprep.subr.bf16.mxu1 %v5366_v29 }
 0x64f   :  { %4929 = vmatpush3.bf16.msra.mxu1 %v4928_v56 }
 0x650   :  { %4930 = vmatprep.subr.bf16.mxu1 %v5366_v29 }
 0x653   :  { %4932 = vmatpush3.bf16.msra.mxu1 %v4931_v61 }
 0x654   :  { %4933 = vmatprep.subr.bf16.mxu1 %v5366_v29 }
 0x657   :  { %4935 = vmatpush3.bf16.msra.mxu1 %v4934_v44 }
 0x658   :  { %4936 = vmatprep.subr.bf16.mxu1 %v5366_v29 }
 0x65b   :  { %4938 = vmatpush3.bf16.msra.mxu1 %v4937_v16 }
 0x65c   :  { %4939 = vmatprep.subr.bf16.mxu1 %v5366_v29 }
 0x65f   :  { %4941 = vmatpush3.bf16.msra.mxu1 %v4940_v22 }
 0x660   :  { %4942 = vmatprep.subr.bf16.mxu1 %v5366_v29 }
 0x663   :  { %4944 = vmatpush3.bf16.msra.mxu1 %v4943_v25 }
 0x664   :  { %4945 = vmatprep.subr.bf16.mxu1 %v5366_v29 }
 0x667   :  { %4947 = vmatpush3.bf16.msra.mxu1 %v4946_v18 }
 0x668   :  { %4948 = vmatprep.subr.bf16.mxu1 %v5366_v29 }
 0x6ed   :  { %v3373_v26 = vpop.f32.mrb[92].mxu1 }
 0x6ee   :  { %v4500_v9 = vpop.f32.mrb[93].mxu1 }
 0x6fd   :  { %v3446_v30 = vpop.f32.mrb[94].mxu1 }
 0x6fe   :  { %v3447_v19 = vadd.f32 %v3446_v30, %v3373_v26  ;;  %v4519_v2 = vpop.f32.mrb[95].mxu1 }
 0x70d   :  { %v3529_v11 = vpop.f32.mrb[96].mxu1 }
 0x70e   :  { %v3533_v58 = vadd.f32 %v3529_v11, %v3447_v19  ;;  %v4538_v20 = vpop.f32.mrb[97].mxu1 }
 0x71d   :  { %v3613_v10 = vpop.f32.mrb[98].mxu1 }
 0x71e   :  { %v3617_v34 = vadd.f32 %v3613_v10, %v3533_v58  ;;  %v4557_v23 = vpop.f32.mrb[99].mxu1 }
 0x720   :  { %v3625_v45 = vadd.f32 %v4058_v27, %v3617_v34 }
 0x722   :  { %v3626_v37 = vmax.f32 %v3625_v45, 0.0 }
 0x724   :  { %4591 = vmatmul.mubr.f32.vlgmr.msra.gmra.mrb[100].mxu1 %v3626_v37 }
 0x725   :  { %4950 = vmatpush3.bf16.msra.mxu1 %v4949_v55  ;;  %4625 = vmatprep.mubr.msk.f32.mxu1 %vm5367_vm6, %v5364_v0  ;;  %v3731_v0 = vld [vmem:[#allocation14 + $0x50] sm:$0xff] }
 0x726   :  { %4951 = vmatprep.subr.bf16.mxu1 %v5366_v29  ;;  %v4964_v49 = vpack.c.bf16 %v3732_v12, %v3731_v0 }
 0x729   :  { %4953 = vmatpush3.bf16.msra.mxu1 %v4952_v50 }
 0x72a   :  { %4954 = vmatprep.subr.bf16.mxu1 %v5366_v29 }
 0x72d   :  { %4956 = vmatpush3.bf16.msra.mxu1 %v4955_v3 }
 0x72e   :  { %4957 = vmatprep.subr.bf16.mxu1 %v5366_v29 }
 0x731   :  { %4959 = vmatpush3.bf16.msra.mxu1 %v4958_v33 }
 0x732   :  { %4960 = vmatprep.subr.bf16.mxu1 %v5366_v29 }
 0x735   :  { %4962 = vmatpush3.bf16.msra.mxu1 %v4961_v59 }
 0x736   :  { %4963 = vmatprep.subr.bf16.mxu1 %v5366_v29 }
 0x739   :  { %4965 = vmatpush3.bf16.msra.mxu1 %v4964_v49 }
 0x73a   :  { %4966 = vmatprep.subr.bf16.mxu1 %v5366_v29 }
 0x73d   :  { %4968 = vmatpush3.bf16.msra.mxu1 %v4967_v38 }
 0x73e   :  { %4969 = vmatprep.subr.bf16.mxu1 %v5366_v29 }
 0x741   :  { %4971 = vmatpush3.bf16.msra.mxu1 %v4970_v52 }
 0x7f7   :  { %v3716_v35 = vpop.f32.mrb[100].mxu1 }
 0x7f8   :  { %v3717_v39 = vadd.f32 %v4059_v4, %v3716_v35  ;;  %v4592_v13 = vpop.f32.mrb[101].mxu1 }
 0x7fa   :  { %v3720_v14 = vmax.f32 %v3717_v39, 0.0 }
 0x7fc   :  { %4626 = vmatmul.mubr.f32.vlgmr.msra.gmra.mrb[102].mxu1 %v3720_v14 }
 0x8cf   :  { %v3810_v56 = vpop.f32.mrb[102].mxu1 }
 0x8d0   :  { %v3811_v41 = vadd.f32 %v4060_v5, %v3810_v56  ;;  %v4627_v29 = vpop.f32.mrb[103].mxu1 }
 0x8d2   :  { %3814 = vst [vmem:[%s6639_s13] sm:$0xff] %v3811_v41 }
 0x8d3   :  { %3819 = vsyncpa [#allocation7], 1 }
 0x8d4   :  { %3820 = vsyncpa [#allocation9], 1 }
 0x8d5   :  { %3821 = vsyncpa [#allocation12], 1 }
 0x8d6   :  { %3822 = vsyncpa [#allocation15], 1 }

</bundles_post_ra>
